<compile_context>
chip_gen: v6e
topology: v6e:2x2x1
jax: 0.10.0
libtpu: 0.0.40
codegen_flags: <defaults>
</compile_context>

<pallas_src>
import functools

import jax
import jax.numpy as jnp
from jax.experimental import pallas as pl
from jax.experimental.pallas import tpu as pltpu

NEG_SLOPE = 0.2
BN_EPS = 1e-5
COMPUTE_DTYPE = jnp.bfloat16   # MXU operand dtype; accumulation / BN math stay f32


def _lrelu(x):
    return jnp.where(x >= 0, x, NEG_SLOPE * x)


def _compiler_params():
    return pltpu.CompilerParams(
        dimension_semantics=("parallel",),      # image-block grid -> both TCs on v7x
        vmem_limit_bytes=32 * 1024 * 1024,      # well under v7x's 64 MiB physical VMEM
    )


# ----------------------------- Pallas kernels ------------------------------ #

def _conv_kernel(x_ref, w_ref, *rest, k, stride, cin, ho, wo, bn,
                 apply_lrelu, emit_stats):
    """One conv layer on a block of `bn` images.

    x_ref : (bn, k*stride, cin, Hf*wo)  width-unfolded / height-folded input:
            x_ref[b, kw*stride+ph, c, hf*wo+ow] = x_pad[b, c, stride*hf+ph,
                                                        stride*ow+kw]
            so the patch row of tap (kh, kw) is the contiguous lane slice
            [(kh//stride)*wo : (kh//stride)*wo + ho*wo] of row kw*stride+kh%stride.
    w_ref : (cout, k*k*cin)   weight as matmul LHS, columns ordered (kh, kw, cin)
    o_ref : (bn, cout, ho*wo) conv output, channel-major, spatial on lanes
    st_ref: (1, 2, cout)      per-block [sum, sum-of-squares]  (only if emit_stats)
    patch_ref: VMEM scratch (k*k*cin, bn*ho*wo) bf16 - the matmul RHS
    """
    if emit_stats:
        o_ref, st_ref, patch_ref = rest
    else:
        o_ref, patch_ref = rest
        st_ref = None

    s = ho * wo
    for b in range(bn):
        for kh in range(k):
            src = (kh // stride) * wo
            for kw in range(k):
                row = (kh * k + kw) * cin
                # Full-row, lane-dense slab copy (bf16 -> bf16, no casts); the
                # column offset b*s is a multiple of 128 for conv0/conv1.
                patch_ref[row:row + cin, b * s:(b + 1) * s] = (
                    x_ref[b, kw * stride + (kh % stride), :, src:src + s])

    # Weight as LHS, patch as RHS: output lanes = bn*ho*wo (fills the MXU N dim).
    y = jnp.dot(w_ref[...], patch_ref[...],
                preferred_element_type=jnp.float32)          # (cout, bn*s) f32
    if apply_lrelu:
        y = _lrelu(y)
    for b in range(bn):
        o_ref[b] = y[:, b * s:(b + 1) * s].astype(o_ref.dtype)
    if emit_stats:
        st_ref[0, 0:1, :] = jnp.sum(y, axis=1)[None, :]
        st_ref[0, 1:2, :] = jnp.sum(y * y, axis=1)[None, :]


def _bn_lrelu_kernel(y_ref, sc_ref, sh_ref, o_ref):
    """BatchNorm affine + LeakyReLU on a (bn, C, S) channel-major block."""
    o_ref[...] = _lrelu(y_ref[...] * sc_ref[...] + sh_ref[...])


# ------------------------------ kernel wrappers ----------------------------- #

def conv_layer(x_unf, w_lhs, *, bn, k, stride, cin, ho, wo,
               apply_lrelu, emit_stats, out_dtype):
    n, ks, cin_, hfwo = x_unf.shape
    assert ks == k * stride and cin_ == cin and n % bn == 0
    cout, kk = w_lhs.shape
    s = ho * wo
    nblk = n // bn
    kernel = functools.partial(
        _conv_kernel, k=k, stride=stride, cin=cin, ho=ho, wo=wo, bn=bn,
        apply_lrelu=apply_lrelu, emit_stats=emit_stats)

    out_shape = jax.ShapeDtypeStruct((n, cout, s), out_dtype)
    out_spec = pl.BlockSpec((bn, cout, s), lambda i: (i, 0, 0))
    if emit_stats:
        out_shape = (out_shape, jax.ShapeDtypeStruct((nblk, 2, cout), jnp.float32))
        out_spec = (out_spec, pl.BlockSpec((1, 2, cout), lambda i: (i, 0, 0)))

    return pl.pallas_call(
        kernel,
        out_shape=out_shape,
        grid=(nblk,),
        in_specs=[
            pl.BlockSpec((bn, k * stride, cin, hfwo), lambda i: (i, 0, 0, 0)),
            pl.BlockSpec((cout, kk), lambda i: (0, 0)),
        ],
        out_specs=out_spec,
        scratch_shapes=[pltpu.VMEM((kk, bn * s), COMPUTE_DTYPE)],
        compiler_params=_compiler_params(),
    )(x_unf, w_lhs)


def bn_lrelu(y, scale, shift, *, bn):
    n, c, s = y.shape
    return pl.pallas_call(
        _bn_lrelu_kernel,
        out_shape=jax.ShapeDtypeStruct((n, c, s), jnp.float32),
        grid=(n // bn,),
        in_specs=[
            pl.BlockSpec((bn, c, s), lambda i: (i, 0, 0)),
            pl.BlockSpec((1, c, 1), lambda i: (0, 0, 0)),
            pl.BlockSpec((1, c, 1), lambda i: (0, 0, 0)),
        ],
        out_specs=pl.BlockSpec((bn, c, s), lambda i: (i, 0, 0)),
        compiler_params=_compiler_params(),
    )(y, scale.reshape(1, c, 1), shift.reshape(1, c, 1))


# --------------------------------- glue ------------------------------------ #

def _weight_lhs(w_oihw):
    """OIHW conv weight -> (cout, kh*kw*cin) matmul LHS, cols ordered (kh, kw, cin)."""
    cout, cin, kh, kw = w_oihw.shape
    return (jnp.transpose(w_oihw, (0, 2, 3, 1))
            .reshape(cout, kh * kw * cin).astype(COMPUTE_DTYPE))


def _unfold(y_flat, h, w, c, *, k, stride, pad, scale=None, shift=None):
    """Channel-major activation (N, C, h*w) -> the conv input layout consumed by
    _conv_kernel: (N, k*stride, C, Hf*wo) bf16 with
        out[n, kw*stride+ph, c, hf*wo+ow] = y_pad[n, c, stride*hf+ph, stride*ow+kw].
    Optionally fuses a preceding BatchNorm affine + LeakyReLU into this single
    XLA re-layout pass (used for BN1 -> conv[2])."""
    n = y_flat.shape[0]
    y = y_flat.reshape(n, c, h, w)
    if scale is not None:
        y = _lrelu(y.astype(jnp.float32) * scale.reshape(1, c, 1, 1)
                   + shift.reshape(1, c, 1, 1))
    y = jnp.pad(y, ((0, 0), (0, 0), (pad, pad), (pad, pad)))
    hp, wp = h + 2 * pad, w + 2 * pad
    ho = (hp - k) // stride + 1
    wo = (wp - k) // stride + 1
    hf = hp // stride
    y = y.reshape(n, c, hf, stride, wp)
    taps = jnp.stack(
        [y[..., kw:kw + stride * (wo - 1) + 1:stride] for kw in range(k)], axis=1)
    taps = jnp.transpose(taps, (0, 1, 4, 2, 3, 5))        # (n, k, stride, c, hf, wo)
    return taps.reshape(n, k * stride, c, hf * wo).astype(COMPUTE_DTYPE), ho, wo


def _bn_affine(stats, gamma, beta, count):
    """Training-mode BatchNorm (biased variance) from per-block sum / sumsq."""
    s = jnp.sum(stats[:, 0, :], axis=0)
    sq = jnp.sum(stats[:, 1, :], axis=0)
    mean = s / count
    # TODO(synk): E[x^2]-E[x]^2 in f32 loses precision if |mean| >> std; fine here
    # because bias-free conv outputs on normalized inputs are near zero-mean.
    var = jnp.maximum(sq / count - mean * mean, 0.0)
    scale = gamma * jax.lax.rsqrt(var + BN_EPS)
    shift = beta - mean * scale
    return scale, shift


def kaiming_normal_oihw(key, shape_oihw):
    """kaiming_normal_(mode='fan_in', nonlinearity='leaky_relu', a=0) equivalent."""
    _, cin, kh, kw = shape_oihw
    fan_in = cin * kh * kw
    std = (2.0 ** 0.5) / (fan_in ** 0.5)
    return std * jax.random.normal(key, shape_oihw, dtype=jnp.float32)


def init_params(key, c_in, nf):
    k0, k1, k2 = jax.random.split(key, 3)
    return {
        "w0": kaiming_normal_oihw(k0, (nf, c_in, 5, 5)),
        "w1": kaiming_normal_oihw(k1, (nf * 2, nf, 4, 4)),
        "g1": jnp.ones((nf * 2,), jnp.float32),
        "b1": jnp.zeros((nf * 2,), jnp.float32),
        "w2": kaiming_normal_oihw(k2, (nf * 4, nf * 2, 4, 4)),
        "g2": jnp.ones((nf * 4,), jnp.float32),
        "b2": jnp.zeros((nf * 4,), jnp.float32),
    }


def discriminator_recon(params, x_recon, x_original, *, bn=2):
    """Forward pass, mode='RECON', recon_level=2.  Inputs are NCHW like PyTorch."""
    z = jnp.concatenate([x_recon, x_original], axis=0)            # (N, C, H, W)
    n, c_in, h, w = z.shape
    nf = params["w0"].shape[0]
    assert n % bn == 0, "image-block size must divide the concatenated batch"

    # conv[0]: Conv2d(c_in, nf, 5, 1, 2, bias=False) + LeakyReLU(0.2)
    x0u, h0, w0 = _unfold(z.reshape(n, c_in, h * w), h, w, c_in, k=5, stride=1, pad=2)
    y0 = conv_layer(x0u, _weight_lhs(params["w0"]), bn=bn, k=5, stride=1, cin=c_in,
                    ho=h0, wo=w0, apply_lrelu=True, emit_stats=False,
                    out_dtype=COMPUTE_DTYPE)                      # (N, nf, H*W) bf16

    # conv[1]: Conv2d(nf, 2nf, 4, 2, 1, bias=False) + BN(train) + LeakyReLU(0.2)
    x1u, h1, w1 = _unfold(y0, h0, w0, nf, k=4, stride=2, pad=1)
    y1, st1 = conv_layer(x1u, _weight_lhs(params["w1"]), bn=bn, k=4, stride=2, cin=nf,
                         ho=h1, wo=w1, apply_lrelu=False, emit_stats=True,
                         out_dtype=jnp.float32)                   # pre-BN, f32
    sc1, sh1 = _bn_affine(st1, params["g1"], params["b1"], float(n) * h1 * w1)

    # conv[2] (recon_level): Conv2d(2nf, 4nf, 4, 2, 1, bias=False) + BN + LeakyReLU
    # BN1 affine + LeakyReLU are fused into the re-layout pass feeding conv[2].
    x2u, h2, w2 = _unfold(y1, h1, w1, 2 * nf, k=4, stride=2, pad=1,
                          scale=sc1, shift=sh1)
    y2, st2 = conv_layer(x2u, _weight_lhs(params["w2"]), bn=bn, k=4, stride=2,
                         cin=2 * nf, ho=h2, wo=w2, apply_lrelu=False, emit_stats=True,
                         out_dtype=jnp.float32)
    sc2, sh2 = _bn_affine(st2, params["g2"], params["b2"], float(n) * h2 * w2)

    out = bn_lrelu(y2, sc2, sh2, bn=bn)                           # (N, 4nf, h2*w2)
    # Channel-major (N, C, S) -> (N, C*S) is a free row-major reshape and equals
    # PyTorch's z.view(len(z), -1) on the NCHW activation.
    return out.reshape(n, -1)


def _ref_forward(params, x_recon, x_original):
    """Pure-XLA f32 reference of the same forward pass (validation only)."""
    dn = ("NCHW", "OIHW", "NCHW")

    def bnorm(z, gamma, beta):
        mean = jnp.mean(z, axis=(0, 2, 3), keepdims=True)
        var = jnp.var(z, axis=(0, 2, 3), keepdims=True)
        zn = (z - mean) * jax.lax.rsqrt(var + BN_EPS)
        return zn * gamma.reshape(1, -1, 1, 1) + beta.reshape(1, -1, 1, 1)

    z = jnp.concatenate([x_recon, x_original], axis=0)
    z = jax.lax.conv_general_dilated(z, params["w0"], (1, 1), ((2, 2), (2, 2)),
                                     dimension_numbers=dn)
    z = _lrelu(z)
    z = jax.lax.conv_general_dilated(z, params["w1"], (2, 2), ((1, 1), (1, 1)),
                                     dimension_numbers=dn)
    z = _lrelu(bnorm(z, params["g1"], params["b1"]))
    z = jax.lax.conv_general_dilated(z, params["w2"], (2, 2), ((1, 1), (1, 1)),
                                     dimension_numbers=dn)
    z = _lrelu(bnorm(z, params["g2"], params["b2"]))
    return z.reshape(z.shape[0], -1)


if __name__ == "__main__":
    # Small, module-consistent shapes: c_in=1, H=32, W=16 (module defaults),
    # nf=8 (scaled down from 32), batch 2 + 2 -> N=4 concatenated images.
    c_in, nf, H, W, B = 1, 8, 32, 16, 2

    key = jax.random.PRNGKey(0)
    kp, kr, ko = jax.random.split(key, 3)
    params = init_params(kp, c_in, nf)

    x_recon = jax.random.normal(kr, (B, c_in, H, W), dtype=jnp.float32)
    x_original = jax.random.normal(ko, (B, c_in, H, W), dtype=jnp.float32)

    fwd = jax.jit(discriminator_recon)
    layer_repre = fwd(params, x_recon, x_original)
    jax.block_until_ready(layer_repre)

    expected = (2 * B, (nf * 4) * (H // 4) * (W // 4))
    assert layer_repre.shape == expected, (layer_repre.shape, expected)
    assert bool(jnp.all(jnp.isfinite(layer_repre)))

    # Sanity-check against a pure-XLA f32 reference (bf16 MXU operands -> loose tol).
    ref = jax.jit(_ref_forward)(params, x_recon, x_original)
    max_err = float(jnp.max(jnp.abs(layer_repre - ref)))
    mean_err = float(jnp.mean(jnp.abs(layer_repre - ref)))
    assert max_err < 0.5 and mean_err < 0.08, (max_err, mean_err)

    print("KERNEL_OK")
</pallas_src>

<mosaic_0001>
module attributes {stable_mosaic.version = 11 : i64} {
  func.func @_conv_kernel(%arg0: i32, %arg1: memref<2x5x1x576xbf16, #tpu.memory_space<vmem>>, %arg2: memref<8x25xbf16, #tpu.memory_space<vmem>>, %arg3: memref<2x8x512xbf16, #tpu.memory_space<vmem>>, %arg4: memref<25x1024xbf16, #tpu.memory_space<vmem>>) attributes {dimension_semantics = [#tpu.dimension_semantics<parallel>], iteration_bounds = array<i64: 2>, scalar_prefetch = 0 : i64, scratch_operands = 1 : i64, tpu.core_type = #tpu.core_type<tc>, window_params = [{transform_indices = @transform_0, window_bounds = array<i64: 2, 5, 1, 576>}, {pipeline_mode = #tpu.pipeline_mode<synchronous>, transform_indices = @transform_1, window_bounds = array<i64: 8, 25>}, {transform_indices = @transform_2, window_bounds = array<i64: 2, 8, 512>}]} {
    %c0 = arith.constant 0 : index
    %c0_0 = arith.constant 0 : index
    %c0_1 = arith.constant 0 : index
    %c0_2 = arith.constant 0 : index
    %0 = vector.load %arg1[%c0, %c0_0, %c0_1, %c0_2] : memref<2x5x1x576xbf16, #tpu.memory_space<vmem>>, vector<1x1x1x512xbf16>
    %1 = vector.shape_cast %0 : vector<1x1x1x512xbf16> to vector<1x512xbf16>
    %c0_3 = arith.constant 0 : index
    %c0_4 = arith.constant 0 : index
    %2 = vector.load %arg4[%c0_3, %c0_4] : memref<25x1024xbf16, #tpu.memory_space<vmem>>, vector<1x512xbf16>
    tpu.vector_store %arg4[%c0_3, %c0_4], %1 {strides = array<i32>} : memref<25x1024xbf16, #tpu.memory_space<vmem>>, vector<1x512xbf16>,
    %c0_5 = arith.constant 0 : index
    %c1 = arith.constant 1 : index
    %c0_6 = arith.constant 0 : index
    %c0_7 = arith.constant 0 : index
    %3 = vector.load %arg1[%c0_5, %c1, %c0_6, %c0_7] : memref<2x5x1x576xbf16, #tpu.memory_space<vmem>>, vector<1x1x1x512xbf16>
    %4 = vector.shape_cast %3 : vector<1x1x1x512xbf16> to vector<1x512xbf16>
    %c1_8 = arith.constant 1 : index
    %c0_9 = arith.constant 0 : index
    %5 = vector.load %arg4[%c1_8, %c0_9] : memref<25x1024xbf16, #tpu.memory_space<vmem>>, vector<1x512xbf16>
    tpu.vector_store %arg4[%c1_8, %c0_9], %4 {strides = array<i32>} : memref<25x1024xbf16, #tpu.memory_space<vmem>>, vector<1x512xbf16>,
    %c0_10 = arith.constant 0 : index
    %c2 = arith.constant 2 : index
    %c0_11 = arith.constant 0 : index
    %c0_12 = arith.constant 0 : index
    %6 = vector.load %arg1[%c0_10, %c2, %c0_11, %c0_12] : memref<2x5x1x576xbf16, #tpu.memory_space<vmem>>, vector<1x1x1x512xbf16>
    %7 = vector.shape_cast %6 : vector<1x1x1x512xbf16> to vector<1x512xbf16>
    %c2_13 = arith.constant 2 : index
    %c0_14 = arith.constant 0 : index
    %8 = vector.load %arg4[%c2_13, %c0_14] : memref<25x1024xbf16, #tpu.memory_space<vmem>>, vector<1x512xbf16>
    tpu.vector_store %arg4[%c2_13, %c0_14], %7 {strides = array<i32>} : memref<25x1024xbf16, #tpu.memory_space<vmem>>, vector<1x512xbf16>,
    %c0_15 = arith.constant 0 : index
    %c3 = arith.constant 3 : index
    %c0_16 = arith.constant 0 : index
    %c0_17 = arith.constant 0 : index
    %9 = vector.load %arg1[%c0_15, %c3, %c0_16, %c0_17] : memref<2x5x1x576xbf16, #tpu.memory_space<vmem>>, vector<1x1x1x512xbf16>
    %10 = vector.shape_cast %9 : vector<1x1x1x512xbf16> to vector<1x512xbf16>
    %c3_18 = arith.constant 3 : index
    %c0_19 = arith.constant 0 : index
    %11 = vector.load %arg4[%c3_18, %c0_19] : memref<25x1024xbf16, #tpu.memory_space<vmem>>, vector<1x512xbf16>
    tpu.vector_store %arg4[%c3_18, %c0_19], %10 {strides = array<i32>} : memref<25x1024xbf16, #tpu.memory_space<vmem>>, vector<1x512xbf16>,
    %c0_20 = arith.constant 0 : index
    %c4 = arith.constant 4 : index
    %c0_21 = arith.constant 0 : index
    %c0_22 = arith.constant 0 : index
    %12 = vector.load %arg1[%c0_20, %c4, %c0_21, %c0_22] : memref<2x5x1x576xbf16, #tpu.memory_space<vmem>>, vector<1x1x1x512xbf16>
    %13 = vector.shape_cast %12 : vector<1x1x1x512xbf16> to vector<1x512xbf16>
    %c4_23 = arith.constant 4 : index
    %c0_24 = arith.constant 0 : index
    %14 = vector.load %arg4[%c4_23, %c0_24] : memref<25x1024xbf16, #tpu.memory_space<vmem>>, vector<1x512xbf16>
    tpu.vector_store %arg4[%c4_23, %c0_24], %13 {strides = array<i32>} : memref<25x1024xbf16, #tpu.memory_space<vmem>>, vector<1x512xbf16>,
    %c0_25 = arith.constant 0 : index
    %c0_26 = arith.constant 0 : index
    %c0_27 = arith.constant 0 : index
    %c16 = arith.constant 16 : index
    %15 = vector.load %arg1[%c0_25, %c0_26, %c0_27, %c16] : memref<2x5x1x576xbf16, #tpu.memory_space<vmem>>, vector<1x1x1x512xbf16>
    %16 = vector.shape_cast %15 : vector<1x1x1x512xbf16> to vector<1x512xbf16>
    %c5 = arith.constant 5 : index
    %c0_28 = arith.constant 0 : index
    %17 = vector.load %arg4[%c5, %c0_28] : memref<25x1024xbf16, #tpu.memory_space<vmem>>, vector<1x512xbf16>
    tpu.vector_store %arg4[%c5, %c0_28], %16 {strides = array<i32>} : memref<25x1024xbf16, #tpu.memory_space<vmem>>, vector<1x512xbf16>,
    %c0_29 = arith.constant 0 : index
    %c1_30 = arith.constant 1 : index
    %c0_31 = arith.constant 0 : index
    %c16_32 = arith.constant 16 : index
    %18 = vector.load %arg1[%c0_29, %c1_30, %c0_31, %c16_32] : memref<2x5x1x576xbf16, #tpu.memory_space<vmem>>, vector<1x1x1x512xbf16>
    %19 = vector.shape_cast %18 : vector<1x1x1x512xbf16> to vector<1x512xbf16>
    %c6 = arith.constant 6 : index
    %c0_33 = arith.constant 0 : index
    %20 = vector.load %arg4[%c6, %c0_33] : memref<25x1024xbf16, #tpu.memory_space<vmem>>, vector<1x512xbf16>
    tpu.vector_store %arg4[%c6, %c0_33], %19 {strides = array<i32>} : memref<25x1024xbf16, #tpu.memory_space<vmem>>, vector<1x512xbf16>,
    %c0_34 = arith.constant 0 : index
    %c2_35 = arith.constant 2 : index
    %c0_36 = arith.constant 0 : index
    %c16_37 = arith.constant 16 : index
    %21 = vector.load %arg1[%c0_34, %c2_35, %c0_36, %c16_37] : memref<2x5x1x576xbf16, #tpu.memory_space<vmem>>, vector<1x1x1x512xbf16>
    %22 = vector.shape_cast %21 : vector<1x1x1x512xbf16> to vector<1x512xbf16>
    %c7 = arith.constant 7 : index
    %c0_38 = arith.constant 0 : index
    %23 = vector.load %arg4[%c7, %c0_38] : memref<25x1024xbf16, #tpu.memory_space<vmem>>, vector<1x512xbf16>
    tpu.vector_store %arg4[%c7, %c0_38], %22 {strides = array<i32>} : memref<25x1024xbf16, #tpu.memory_space<vmem>>, vector<1x512xbf16>,
    %c0_39 = arith.constant 0 : index
    %c3_40 = arith.constant 3 : index
    %c0_41 = arith.constant 0 : index
    %c16_42 = arith.constant 16 : index
    %24 = vector.load %arg1[%c0_39, %c3_40, %c0_41, %c16_42] : memref<2x5x1x576xbf16, #tpu.memory_space<vmem>>, vector<1x1x1x512xbf16>
    %25 = vector.shape_cast %24 : vector<1x1x1x512xbf16> to vector<1x512xbf16>
    %c8 = arith.constant 8 : index
    %c0_43 = arith.constant 0 : index
    %26 = vector.load %arg4[%c8, %c0_43] : memref<25x1024xbf16, #tpu.memory_space<vmem>>, vector<1x512xbf16>
    tpu.vector_store %arg4[%c8, %c0_43], %25 {strides = array<i32>} : memref<25x1024xbf16, #tpu.memory_space<vmem>>, vector<1x512xbf16>,
    %c0_44 = arith.constant 0 : index
    %c4_45 = arith.constant 4 : index
    %c0_46 = arith.constant 0 : index
    %c16_47 = arith.constant 16 : index
    %27 = vector.load %arg1[%c0_44, %c4_45, %c0_46, %c16_47] : memref<2x5x1x576xbf16, #tpu.memory_space<vmem>>, vector<1x1x1x512xbf16>
    %28 = vector.shape_cast %27 : vector<1x1x1x512xbf16> to vector<1x512xbf16>
    %c9 = arith.constant 9 : index
    %c0_48 = arith.constant 0 : index
    %29 = vector.load %arg4[%c9, %c0_48] : memref<25x1024xbf16, #tpu.memory_space<vmem>>, vector<1x512xbf16>
    tpu.vector_store %arg4[%c9, %c0_48], %28 {strides = array<i32>} : memref<25x1024xbf16, #tpu.memory_space<vmem>>, vector<1x512xbf16>,
    %c0_49 = arith.constant 0 : index
    %c0_50 = arith.constant 0 : index
    %c0_51 = arith.constant 0 : index
    %c32 = arith.constant 32 : index
    %30 = vector.load %arg1[%c0_49, %c0_50, %c0_51, %c32] : memref<2x5x1x576xbf16, #tpu.memory_space<vmem>>, vector<1x1x1x512xbf16>
    %31 = vector.shape_cast %30 : vector<1x1x1x512xbf16> to vector<1x512xbf16>
    %c10 = arith.constant 10 : index
    %c0_52 = arith.constant 0 : index
    %32 = vector.load %arg4[%c10, %c0_52] : memref<25x1024xbf16, #tpu.memory_space<vmem>>, vector<1x512xbf16>
    tpu.vector_store %arg4[%c10, %c0_52], %31 {strides = array<i32>} : memref<25x1024xbf16, #tpu.memory_space<vmem>>, vector<1x512xbf16>,
    %c0_53 = arith.constant 0 : index
    %c1_54 = arith.constant 1 : index
    %c0_55 = arith.constant 0 : index
    %c32_56 = arith.constant 32 : index
    %33 = vector.load %arg1[%c0_53, %c1_54, %c0_55, %c32_56] : memref<2x5x1x576xbf16, #tpu.memory_space<vmem>>, vector<1x1x1x512xbf16>
    %34 = vector.shape_cast %33 : vector<1x1x1x512xbf16> to vector<1x512xbf16>
    %c11 = arith.constant 11 : index
    %c0_57 = arith.constant 0 : index
    %35 = vector.load %arg4[%c11, %c0_57] : memref<25x1024xbf16, #tpu.memory_space<vmem>>, vector<1x512xbf16>
    tpu.vector_store %arg4[%c11, %c0_57], %34 {strides = array<i32>} : memref<25x1024xbf16, #tpu.memory_space<vmem>>, vector<1x512xbf16>,
    %c0_58 = arith.constant 0 : index
    %c2_59 = arith.constant 2 : index
    %c0_60 = arith.constant 0 : index
    %c32_61 = arith.constant 32 : index
    %36 = vector.load %arg1[%c0_58, %c2_59, %c0_60, %c32_61] : memref<2x5x1x576xbf16, #tpu.memory_space<vmem>>, vector<1x1x1x512xbf16>
    %37 = vector.shape_cast %36 : vector<1x1x1x512xbf16> to vector<1x512xbf16>
    %c12 = arith.constant 12 : index
    %c0_62 = arith.constant 0 : index
    %38 = vector.load %arg4[%c12, %c0_62] : memref<25x1024xbf16, #tpu.memory_space<vmem>>, vector<1x512xbf16>
    tpu.vector_store %arg4[%c12, %c0_62], %37 {strides = array<i32>} : memref<25x1024xbf16, #tpu.memory_space<vmem>>, vector<1x512xbf16>,
    %c0_63 = arith.constant 0 : index
    %c3_64 = arith.constant 3 : index
    %c0_65 = arith.constant 0 : index
    %c32_66 = arith.constant 32 : index
    %39 = vector.load %arg1[%c0_63, %c3_64, %c0_65, %c32_66] : memref<2x5x1x576xbf16, #tpu.memory_space<vmem>>, vector<1x1x1x512xbf16>
    %40 = vector.shape_cast %39 : vector<1x1x1x512xbf16> to vector<1x512xbf16>
    %c13 = arith.constant 13 : index
    %c0_67 = arith.constant 0 : index
    %41 = vector.load %arg4[%c13, %c0_67] : memref<25x1024xbf16, #tpu.memory_space<vmem>>, vector<1x512xbf16>
    tpu.vector_store %arg4[%c13, %c0_67], %40 {strides = array<i32>} : memref<25x1024xbf16, #tpu.memory_space<vmem>>, vector<1x512xbf16>,
    %c0_68 = arith.constant 0 : index
    %c4_69 = arith.constant 4 : index
    %c0_70 = arith.constant 0 : index
    %c32_71 = arith.constant 32 : index
    %42 = vector.load %arg1[%c0_68, %c4_69, %c0_70, %c32_71] : memref<2x5x1x576xbf16, #tpu.memory_space<vmem>>, vector<1x1x1x512xbf16>
    %43 = vector.shape_cast %42 : vector<1x1x1x512xbf16> to vector<1x512xbf16>
    %c14 = arith.constant 14 : index
    %c0_72 = arith.constant 0 : index
    %44 = vector.load %arg4[%c14, %c0_72] : memref<25x1024xbf16, #tpu.memory_space<vmem>>, vector<1x512xbf16>
    tpu.vector_store %arg4[%c14, %c0_72], %43 {strides = array<i32>} : memref<25x1024xbf16, #tpu.memory_space<vmem>>, vector<1x512xbf16>,
    %c0_73 = arith.constant 0 : index
    %c0_74 = arith.constant 0 : index
    %c0_75 = arith.constant 0 : index
    %c48 = arith.constant 48 : index
    %45 = vector.load %arg1[%c0_73, %c0_74, %c0_75, %c48] : memref<2x5x1x576xbf16, #tpu.memory_space<vmem>>, vector<1x1x1x512xbf16>
    %46 = vector.shape_cast %45 : vector<1x1x1x512xbf16> to vector<1x512xbf16>
    %c15 = arith.constant 15 : index
    %c0_76 = arith.constant 0 : index
    %47 = vector.load %arg4[%c15, %c0_76] : memref<25x1024xbf16, #tpu.memory_space<vmem>>, vector<1x512xbf16>
    tpu.vector_store %arg4[%c15, %c0_76], %46 {strides = array<i32>} : memref<25x1024xbf16, #tpu.memory_space<vmem>>, vector<1x512xbf16>,
    %c0_77 = arith.constant 0 : index
    %c1_78 = arith.constant 1 : index
    %c0_79 = arith.constant 0 : index
    %c48_80 = arith.constant 48 : index
    %48 = vector.load %arg1[%c0_77, %c1_78, %c0_79, %c48_80] : memref<2x5x1x576xbf16, #tpu.memory_space<vmem>>, vector<1x1x1x512xbf16>
    %49 = vector.shape_cast %48 : vector<1x1x1x512xbf16> to vector<1x512xbf16>
    %c16_81 = arith.constant 16 : index
    %c0_82 = arith.constant 0 : index
    %50 = vector.load %arg4[%c16_81, %c0_82] : memref<25x1024xbf16, #tpu.memory_space<vmem>>, vector<1x512xbf16>
    tpu.vector_store %arg4[%c16_81, %c0_82], %49 {strides = array<i32>} : memref<25x1024xbf16, #tpu.memory_space<vmem>>, vector<1x512xbf16>,
    %c0_83 = arith.constant 0 : index
    %c2_84 = arith.constant 2 : index
    %c0_85 = arith.constant 0 : index
    %c48_86 = arith.constant 48 : index
    %51 = vector.load %arg1[%c0_83, %c2_84, %c0_85, %c48_86] : memref<2x5x1x576xbf16, #tpu.memory_space<vmem>>, vector<1x1x1x512xbf16>
    %52 = vector.shape_cast %51 : vector<1x1x1x512xbf16> to vector<1x512xbf16>
    %c17 = arith.constant 17 : index
    %c0_87 = arith.constant 0 : index
    %53 = vector.load %arg4[%c17, %c0_87] : memref<25x1024xbf16, #tpu.memory_space<vmem>>, vector<1x512xbf16>
    tpu.vector_store %arg4[%c17, %c0_87], %52 {strides = array<i32>} : memref<25x1024xbf16, #tpu.memory_space<vmem>>, vector<1x512xbf16>,
    %c0_88 = arith.constant 0 : index
    %c3_89 = arith.constant 3 : index
    %c0_90 = arith.constant 0 : index
    %c48_91 = arith.constant 48 : index
    %54 = vector.load %arg1[%c0_88, %c3_89, %c0_90, %c48_91] : memref<2x5x1x576xbf16, #tpu.memory_space<vmem>>, vector<1x1x1x512xbf16>
    %55 = vector.shape_cast %54 : vector<1x1x1x512xbf16> to vector<1x512xbf16>
    %c18 = arith.constant 18 : index
    %c0_92 = arith.constant 0 : index
    %56 = vector.load %arg4[%c18, %c0_92] : memref<25x1024xbf16, #tpu.memory_space<vmem>>, vector<1x512xbf16>
    tpu.vector_store %arg4[%c18, %c0_92], %55 {strides = array<i32>} : memref<25x1024xbf16, #tpu.memory_space<vmem>>, vector<1x512xbf16>,
    %c0_93 = arith.constant 0 : index
    %c4_94 = arith.constant 4 : index
    %c0_95 = arith.constant 0 : index
    %c48_96 = arith.constant 48 : index
    %57 = vector.load %arg1[%c0_93, %c4_94, %c0_95, %c48_96] : memref<2x5x1x576xbf16, #tpu.memory_space<vmem>>, vector<1x1x1x512xbf16>
    %58 = vector.shape_cast %57 : vector<1x1x1x512xbf16> to vector<1x512xbf16>
    %c19 = arith.constant 19 : index
    %c0_97 = arith.constant 0 : index
    %59 = vector.load %arg4[%c19, %c0_97] : memref<25x1024xbf16, #tpu.memory_space<vmem>>, vector<1x512xbf16>
    tpu.vector_store %arg4[%c19, %c0_97], %58 {strides = array<i32>} : memref<25x1024xbf16, #tpu.memory_space<vmem>>, vector<1x512xbf16>,
    %c0_98 = arith.constant 0 : index
    %c0_99 = arith.constant 0 : index
    %c0_100 = arith.constant 0 : index
    %c64 = arith.constant 64 : index
    %60 = vector.load %arg1[%c0_98, %c0_99, %c0_100, %c64] : memref<2x5x1x576xbf16, #tpu.memory_space<vmem>>, vector<1x1x1x512xbf16>
    %61 = vector.shape_cast %60 : vector<1x1x1x512xbf16> to vector<1x512xbf16>
    %c20 = arith.constant 20 : index
    %c0_101 = arith.constant 0 : index
    %62 = vector.load %arg4[%c20, %c0_101] : memref<25x1024xbf16, #tpu.memory_space<vmem>>, vector<1x512xbf16>
    tpu.vector_store %arg4[%c20, %c0_101], %61 {strides = array<i32>} : memref<25x1024xbf16, #tpu.memory_space<vmem>>, vector<1x512xbf16>,
    %c0_102 = arith.constant 0 : index
    %c1_103 = arith.constant 1 : index
    %c0_104 = arith.constant 0 : index
    %c64_105 = arith.constant 64 : index
    %63 = vector.load %arg1[%c0_102, %c1_103, %c0_104, %c64_105] : memref<2x5x1x576xbf16, #tpu.memory_space<vmem>>, vector<1x1x1x512xbf16>
    %64 = vector.shape_cast %63 : vector<1x1x1x512xbf16> to vector<1x512xbf16>
    %c21 = arith.constant 21 : index
    %c0_106 = arith.constant 0 : index
    %65 = vector.load %arg4[%c21, %c0_106] : memref<25x1024xbf16, #tpu.memory_space<vmem>>, vector<1x512xbf16>
    tpu.vector_store %arg4[%c21, %c0_106], %64 {strides = array<i32>} : memref<25x1024xbf16, #tpu.memory_space<vmem>>, vector<1x512xbf16>,
    %c0_107 = arith.constant 0 : index
    %c2_108 = arith.constant 2 : index
    %c0_109 = arith.constant 0 : index
    %c64_110 = arith.constant 64 : index
    %66 = vector.load %arg1[%c0_107, %c2_108, %c0_109, %c64_110] : memref<2x5x1x576xbf16, #tpu.memory_space<vmem>>, vector<1x1x1x512xbf16>
    %67 = vector.shape_cast %66 : vector<1x1x1x512xbf16> to vector<1x512xbf16>
    %c22 = arith.constant 22 : index
    %c0_111 = arith.constant 0 : index
    %68 = vector.load %arg4[%c22, %c0_111] : memref<25x1024xbf16, #tpu.memory_space<vmem>>, vector<1x512xbf16>
    tpu.vector_store %arg4[%c22, %c0_111], %67 {strides = array<i32>} : memref<25x1024xbf16, #tpu.memory_space<vmem>>, vector<1x512xbf16>,
    %c0_112 = arith.constant 0 : index
    %c3_113 = arith.constant 3 : index
    %c0_114 = arith.constant 0 : index
    %c64_115 = arith.constant 64 : index
    %69 = vector.load %arg1[%c0_112, %c3_113, %c0_114, %c64_115] : memref<2x5x1x576xbf16, #tpu.memory_space<vmem>>, vector<1x1x1x512xbf16>
    %70 = vector.shape_cast %69 : vector<1x1x1x512xbf16> to vector<1x512xbf16>
    %c23 = arith.constant 23 : index
    %c0_116 = arith.constant 0 : index
    %71 = vector.load %arg4[%c23, %c0_116] : memref<25x1024xbf16, #tpu.memory_space<vmem>>, vector<1x512xbf16>
    tpu.vector_store %arg4[%c23, %c0_116], %70 {strides = array<i32>} : memref<25x1024xbf16, #tpu.memory_space<vmem>>, vector<1x512xbf16>,
    %c0_117 = arith.constant 0 : index
    %c4_118 = arith.constant 4 : index
    %c0_119 = arith.constant 0 : index
    %c64_120 = arith.constant 64 : index
    %72 = vector.load %arg1[%c0_117, %c4_118, %c0_119, %c64_120] : memref<2x5x1x576xbf16, #tpu.memory_space<vmem>>, vector<1x1x1x512xbf16>
    %73 = vector.shape_cast %72 : vector<1x1x1x512xbf16> to vector<1x512xbf16>
    %c24 = arith.constant 24 : index
    %c0_121 = arith.constant 0 : index
    %74 = vector.load %arg4[%c24, %c0_121] : memref<25x1024xbf16, #tpu.memory_space<vmem>>, vector<1x512xbf16>
    tpu.vector_store %arg4[%c24, %c0_121], %73 {strides = array<i32>} : memref<25x1024xbf16, #tpu.memory_space<vmem>>, vector<1x512xbf16>,
    %c1_122 = arith.constant 1 : index
    %c0_123 = arith.constant 0 : index
    %c0_124 = arith.constant 0 : index
    %c0_125 = arith.constant 0 : index
    %75 = vector.load %arg1[%c1_122, %c0_123, %c0_124, %c0_125] : memref<2x5x1x576xbf16, #tpu.memory_space<vmem>>, vector<1x1x1x512xbf16>
    %76 = vector.shape_cast %75 : vector<1x1x1x512xbf16> to vector<1x512xbf16>
    %c0_126 = arith.constant 0 : index
    %c512 = arith.constant 512 : index
    %77 = vector.load %arg4[%c0_126, %c512] : memref<25x1024xbf16, #tpu.memory_space<vmem>>, vector<1x512xbf16>
    tpu.vector_store %arg4[%c0_126, %c512], %76 {strides = array<i32>} : memref<25x1024xbf16, #tpu.memory_space<vmem>>, vector<1x512xbf16>,
    %c1_127 = arith.constant 1 : index
    %c1_128 = arith.constant 1 : index
    %c0_129 = arith.constant 0 : index
    %c0_130 = arith.constant 0 : index
    %78 = vector.load %arg1[%c1_127, %c1_128, %c0_129, %c0_130] : memref<2x5x1x576xbf16, #tpu.memory_space<vmem>>, vector<1x1x1x512xbf16>
    %79 = vector.shape_cast %78 : vector<1x1x1x512xbf16> to vector<1x512xbf16>
    %c1_131 = arith.constant 1 : index
    %c512_132 = arith.constant 512 : index
    %80 = vector.load %arg4[%c1_131, %c512_132] : memref<25x1024xbf16, #tpu.memory_space<vmem>>, vector<1x512xbf16>
    tpu.vector_store %arg4[%c1_131, %c512_132], %79 {strides = array<i32>} : memref<25x1024xbf16, #tpu.memory_space<vmem>>, vector<1x512xbf16>,
    %c1_133 = arith.constant 1 : index
    %c2_134 = arith.constant 2 : index
    %c0_135 = arith.constant 0 : index
    %c0_136 = arith.constant 0 : index
    %81 = vector.load %arg1[%c1_133, %c2_134, %c0_135, %c0_136] : memref<2x5x1x576xbf16, #tpu.memory_space<vmem>>, vector<1x1x1x512xbf16>
    %82 = vector.shape_cast %81 : vector<1x1x1x512xbf16> to vector<1x512xbf16>
    %c2_137 = arith.constant 2 : index
    %c512_138 = arith.constant 512 : index
    %83 = vector.load %arg4[%c2_137, %c512_138] : memref<25x1024xbf16, #tpu.memory_space<vmem>>, vector<1x512xbf16>
    tpu.vector_store %arg4[%c2_137, %c512_138], %82 {strides = array<i32>} : memref<25x1024xbf16, #tpu.memory_space<vmem>>, vector<1x512xbf16>,
    %c1_139 = arith.constant 1 : index
    %c3_140 = arith.constant 3 : index
    %c0_141 = arith.constant 0 : index
    %c0_142 = arith.constant 0 : index
    %84 = vector.load %arg1[%c1_139, %c3_140, %c0_141, %c0_142] : memref<2x5x1x576xbf16, #tpu.memory_space<vmem>>, vector<1x1x1x512xbf16>
    %85 = vector.shape_cast %84 : vector<1x1x1x512xbf16> to vector<1x512xbf16>
    %c3_143 = arith.constant 3 : index
    %c512_144 = arith.constant 512 : index
    %86 = vector.load %arg4[%c3_143, %c512_144] : memref<25x1024xbf16, #tpu.memory_space<vmem>>, vector<1x512xbf16>
    tpu.vector_store %arg4[%c3_143, %c512_144], %85 {strides = array<i32>} : memref<25x1024xbf16, #tpu.memory_space<vmem>>, vector<1x512xbf16>,
    %c1_145 = arith.constant 1 : index
    %c4_146 = arith.constant 4 : index
    %c0_147 = arith.constant 0 : index
    %c0_148 = arith.constant 0 : index
    %87 = vector.load %arg1[%c1_145, %c4_146, %c0_147, %c0_148] : memref<2x5x1x576xbf16, #tpu.memory_space<vmem>>, vector<1x1x1x512xbf16>
    %88 = vector.shape_cast %87 : vector<1x1x1x512xbf16> to vector<1x512xbf16>
    %c4_149 = arith.constant 4 : index
    %c512_150 = arith.constant 512 : index
    %89 = vector.load %arg4[%c4_149, %c512_150] : memref<25x1024xbf16, #tpu.memory_space<vmem>>, vector<1x512xbf16>
    tpu.vector_store %arg4[%c4_149, %c512_150], %88 {strides = array<i32>} : memref<25x1024xbf16, #tpu.memory_space<vmem>>, vector<1x512xbf16>,
    %c1_151 = arith.constant 1 : index
    %c0_152 = arith.constant 0 : index
    %c0_153 = arith.constant 0 : index
    %c16_154 = arith.constant 16 : index
    %90 = vector.load %arg1[%c1_151, %c0_152, %c0_153, %c16_154] : memref<2x5x1x576xbf16, #tpu.memory_space<vmem>>, vector<1x1x1x512xbf16>
    %91 = vector.shape_cast %90 : vector<1x1x1x512xbf16> to vector<1x512xbf16>
    %c5_155 = arith.constant 5 : index
    %c512_156 = arith.constant 512 : index
    %92 = vector.load %arg4[%c5_155, %c512_156] : memref<25x1024xbf16, #tpu.memory_space<vmem>>, vector<1x512xbf16>
    tpu.vector_store %arg4[%c5_155, %c512_156], %91 {strides = array<i32>} : memref<25x1024xbf16, #tpu.memory_space<vmem>>, vector<1x512xbf16>,
    %c1_157 = arith.constant 1 : index
    %c1_158 = arith.constant 1 : index
    %c0_159 = arith.constant 0 : index
    %c16_160 = arith.constant 16 : index
    %93 = vector.load %arg1[%c1_157, %c1_158, %c0_159, %c16_160] : memref<2x5x1x576xbf16, #tpu.memory_space<vmem>>, vector<1x1x1x512xbf16>
    %94 = vector.shape_cast %93 : vector<1x1x1x512xbf16> to vector<1x512xbf16>
    %c6_161 = arith.constant 6 : index
    %c512_162 = arith.constant 512 : index
    %95 = vector.load %arg4[%c6_161, %c512_162] : memref<25x1024xbf16, #tpu.memory_space<vmem>>, vector<1x512xbf16>
    tpu.vector_store %arg4[%c6_161, %c512_162], %94 {strides = array<i32>} : memref<25x1024xbf16, #tpu.memory_space<vmem>>, vector<1x512xbf16>,
    %c1_163 = arith.constant 1 : index
    %c2_164 = arith.constant 2 : index
    %c0_165 = arith.constant 0 : index
    %c16_166 = arith.constant 16 : index
    %96 = vector.load %arg1[%c1_163, %c2_164, %c0_165, %c16_166] : memref<2x5x1x576xbf16, #tpu.memory_space<vmem>>, vector<1x1x1x512xbf16>
    %97 = vector.shape_cast %96 : vector<1x1x1x512xbf16> to vector<1x512xbf16>
    %c7_167 = arith.constant 7 : index
    %c512_168 = arith.constant 512 : index
    %98 = vector.load %arg4[%c7_167, %c512_168] : memref<25x1024xbf16, #tpu.memory_space<vmem>>, vector<1x512xbf16>
    tpu.vector_store %arg4[%c7_167, %c512_168], %97 {strides = array<i32>} : memref<25x1024xbf16, #tpu.memory_space<vmem>>, vector<1x512xbf16>,
    %c1_169 = arith.constant 1 : index
    %c3_170 = arith.constant 3 : index
    %c0_171 = arith.constant 0 : index
    %c16_172 = arith.constant 16 : index
    %99 = vector.load %arg1[%c1_169, %c3_170, %c0_171, %c16_172] : memref<2x5x1x576xbf16, #tpu.memory_space<vmem>>, vector<1x1x1x512xbf16>
    %100 = vector.shape_cast %99 : vector<1x1x1x512xbf16> to vector<1x512xbf16>
    %c8_173 = arith.constant 8 : index
    %c512_174 = arith.constant 512 : index
    %101 = vector.load %arg4[%c8_173, %c512_174] : memref<25x1024xbf16, #tpu.memory_space<vmem>>, vector<1x512xbf16>
    tpu.vector_store %arg4[%c8_173, %c512_174], %100 {strides = array<i32>} : memref<25x1024xbf16, #tpu.memory_space<vmem>>, vector<1x512xbf16>,
    %c1_175 = arith.constant 1 : index
    %c4_176 = arith.constant 4 : index
    %c0_177 = arith.constant 0 : index
    %c16_178 = arith.constant 16 : index
    %102 = vector.load %arg1[%c1_175, %c4_176, %c0_177, %c16_178] : memref<2x5x1x576xbf16, #tpu.memory_space<vmem>>, vector<1x1x1x512xbf16>
    %103 = vector.shape_cast %102 : vector<1x1x1x512xbf16> to vector<1x512xbf16>
    %c9_179 = arith.constant 9 : index
    %c512_180 = arith.constant 512 : index
    %104 = vector.load %arg4[%c9_179, %c512_180] : memref<25x1024xbf16, #tpu.memory_space<vmem>>, vector<1x512xbf16>
    tpu.vector_store %arg4[%c9_179, %c512_180], %103 {strides = array<i32>} : memref<25x1024xbf16, #tpu.memory_space<vmem>>, vector<1x512xbf16>,
    %c1_181 = arith.constant 1 : index
    %c0_182 = arith.constant 0 : index
    %c0_183 = arith.constant 0 : index
    %c32_184 = arith.constant 32 : index
    %105 = vector.load %arg1[%c1_181, %c0_182, %c0_183, %c32_184] : memref<2x5x1x576xbf16, #tpu.memory_space<vmem>>, vector<1x1x1x512xbf16>
    %106 = vector.shape_cast %105 : vector<1x1x1x512xbf16> to vector<1x512xbf16>
    %c10_185 = arith.constant 10 : index
    %c512_186 = arith.constant 512 : index
    %107 = vector.load %arg4[%c10_185, %c512_186] : memref<25x1024xbf16, #tpu.memory_space<vmem>>, vector<1x512xbf16>
    tpu.vector_store %arg4[%c10_185, %c512_186], %106 {strides = array<i32>} : memref<25x1024xbf16, #tpu.memory_space<vmem>>, vector<1x512xbf16>,
    %c1_187 = arith.constant 1 : index
    %c1_188 = arith.constant 1 : index
    %c0_189 = arith.constant 0 : index
    %c32_190 = arith.constant 32 : index
    %108 = vector.load %arg1[%c1_187, %c1_188, %c0_189, %c32_190] : memref<2x5x1x576xbf16, #tpu.memory_space<vmem>>, vector<1x1x1x512xbf16>
    %109 = vector.shape_cast %108 : vector<1x1x1x512xbf16> to vector<1x512xbf16>
    %c11_191 = arith.constant 11 : index
    %c512_192 = arith.constant 512 : index
    %110 = vector.load %arg4[%c11_191, %c512_192] : memref<25x1024xbf16, #tpu.memory_space<vmem>>, vector<1x512xbf16>
    tpu.vector_store %arg4[%c11_191, %c512_192], %109 {strides = array<i32>} : memref<25x1024xbf16, #tpu.memory_space<vmem>>, vector<1x512xbf16>,
    %c1_193 = arith.constant 1 : index
    %c2_194 = arith.constant 2 : index
    %c0_195 = arith.constant 0 : index
    %c32_196 = arith.constant 32 : index
    %111 = vector.load %arg1[%c1_193, %c2_194, %c0_195, %c32_196] : memref<2x5x1x576xbf16, #tpu.memory_space<vmem>>, vector<1x1x1x512xbf16>
    %112 = vector.shape_cast %111 : vector<1x1x1x512xbf16> to vector<1x512xbf16>
    %c12_197 = arith.constant 12 : index
    %c512_198 = arith.constant 512 : index
    %113 = vector.load %arg4[%c12_197, %c512_198] : memref<25x1024xbf16, #tpu.memory_space<vmem>>, vector<1x512xbf16>
    tpu.vector_store %arg4[%c12_197, %c512_198], %112 {strides = array<i32>} : memref<25x1024xbf16, #tpu.memory_space<vmem>>, vector<1x512xbf16>,
    %c1_199 = arith.constant 1 : index
    %c3_200 = arith.constant 3 : index
    %c0_201 = arith.constant 0 : index
    %c32_202 = arith.constant 32 : index
    %114 = vector.load %arg1[%c1_199, %c3_200, %c0_201, %c32_202] : memref<2x5x1x576xbf16, #tpu.memory_space<vmem>>, vector<1x1x1x512xbf16>
    %115 = vector.shape_cast %114 : vector<1x1x1x512xbf16> to vector<1x512xbf16>
    %c13_203 = arith.constant 13 : index
    %c512_204 = arith.constant 512 : index
    %116 = vector.load %arg4[%c13_203, %c512_204] : memref<25x1024xbf16, #tpu.memory_space<vmem>>, vector<1x512xbf16>
    tpu.vector_store %arg4[%c13_203, %c512_204], %115 {strides = array<i32>} : memref<25x1024xbf16, #tpu.memory_space<vmem>>, vector<1x512xbf16>,
    %c1_205 = arith.constant 1 : index
    %c4_206 = arith.constant 4 : index
    %c0_207 = arith.constant 0 : index
    %c32_208 = arith.constant 32 : index
    %117 = vector.load %arg1[%c1_205, %c4_206, %c0_207, %c32_208] : memref<2x5x1x576xbf16, #tpu.memory_space<vmem>>, vector<1x1x1x512xbf16>
    %118 = vector.shape_cast %117 : vector<1x1x1x512xbf16> to vector<1x512xbf16>
    %c14_209 = arith.constant 14 : index
    %c512_210 = arith.constant 512 : index
    %119 = vector.load %arg4[%c14_209, %c512_210] : memref<25x1024xbf16, #tpu.memory_space<vmem>>, vector<1x512xbf16>
    tpu.vector_store %arg4[%c14_209, %c512_210], %118 {strides = array<i32>} : memref<25x1024xbf16, #tpu.memory_space<vmem>>, vector<1x512xbf16>,
    %c1_211 = arith.constant 1 : index
    %c0_212 = arith.constant 0 : index
    %c0_213 = arith.constant 0 : index
    %c48_214 = arith.constant 48 : index
    %120 = vector.load %arg1[%c1_211, %c0_212, %c0_213, %c48_214] : memref<2x5x1x576xbf16, #tpu.memory_space<vmem>>, vector<1x1x1x512xbf16>
    %121 = vector.shape_cast %120 : vector<1x1x1x512xbf16> to vector<1x512xbf16>
    %c15_215 = arith.constant 15 : index
    %c512_216 = arith.constant 512 : index
    %122 = vector.load %arg4[%c15_215, %c512_216] : memref<25x1024xbf16, #tpu.memory_space<vmem>>, vector<1x512xbf16>
    tpu.vector_store %arg4[%c15_215, %c512_216], %121 {strides = array<i32>} : memref<25x1024xbf16, #tpu.memory_space<vmem>>, vector<1x512xbf16>,
    %c1_217 = arith.constant 1 : index
    %c1_218 = arith.constant 1 : index
    %c0_219 = arith.constant 0 : index
    %c48_220 = arith.constant 48 : index
    %123 = vector.load %arg1[%c1_217, %c1_218, %c0_219, %c48_220] : memref<2x5x1x576xbf16, #tpu.memory_space<vmem>>, vector<1x1x1x512xbf16>
    %124 = vector.shape_cast %123 : vector<1x1x1x512xbf16> to vector<1x512xbf16>
    %c16_221 = arith.constant 16 : index
    %c512_222 = arith.constant 512 : index
    %125 = vector.load %arg4[%c16_221, %c512_222] : memref<25x1024xbf16, #tpu.memory_space<vmem>>, vector<1x512xbf16>
    tpu.vector_store %arg4[%c16_221, %c512_222], %124 {strides = array<i32>} : memref<25x1024xbf16, #tpu.memory_space<vmem>>, vector<1x512xbf16>,
    %c1_223 = arith.constant 1 : index
    %c2_224 = arith.constant 2 : index
    %c0_225 = arith.constant 0 : index
    %c48_226 = arith.constant 48 : index
    %126 = vector.load %arg1[%c1_223, %c2_224, %c0_225, %c48_226] : memref<2x5x1x576xbf16, #tpu.memory_space<vmem>>, vector<1x1x1x512xbf16>
    %127 = vector.shape_cast %126 : vector<1x1x1x512xbf16> to vector<1x512xbf16>
    %c17_227 = arith.constant 17 : index
    %c512_228 = arith.constant 512 : index
    %128 = vector.load %arg4[%c17_227, %c512_228] : memref<25x1024xbf16, #tpu.memory_space<vmem>>, vector<1x512xbf16>
    tpu.vector_store %arg4[%c17_227, %c512_228], %127 {strides = array<i32>} : memref<25x1024xbf16, #tpu.memory_space<vmem>>, vector<1x512xbf16>,
    %c1_229 = arith.constant 1 : index
    %c3_230 = arith.constant 3 : index
    %c0_231 = arith.constant 0 : index
    %c48_232 = arith.constant 48 : index
    %129 = vector.load %arg1[%c1_229, %c3_230, %c0_231, %c48_232] : memref<2x5x1x576xbf16, #tpu.memory_space<vmem>>, vector<1x1x1x512xbf16>
    %130 = vector.shape_cast %129 : vector<1x1x1x512xbf16> to vector<1x512xbf16>
    %c18_233 = arith.constant 18 : index
    %c512_234 = arith.constant 512 : index
    %131 = vector.load %arg4[%c18_233, %c512_234] : memref<25x1024xbf16, #tpu.memory_space<vmem>>, vector<1x512xbf16>
    tpu.vector_store %arg4[%c18_233, %c512_234], %130 {strides = array<i32>} : memref<25x1024xbf16, #tpu.memory_space<vmem>>, vector<1x512xbf16>,
    %c1_235 = arith.constant 1 : index
    %c4_236 = arith.constant 4 : index
    %c0_237 = arith.constant 0 : index
    %c48_238 = arith.constant 48 : index
    %132 = vector.load %arg1[%c1_235, %c4_236, %c0_237, %c48_238] : memref<2x5x1x576xbf16, #tpu.memory_space<vmem>>, vector<1x1x1x512xbf16>
    %133 = vector.shape_cast %132 : vector<1x1x1x512xbf16> to vector<1x512xbf16>
    %c19_239 = arith.constant 19 : index
    %c512_240 = arith.constant 512 : index
    %134 = vector.load %arg4[%c19_239, %c512_240] : memref<25x1024xbf16, #tpu.memory_space<vmem>>, vector<1x512xbf16>
    tpu.vector_store %arg4[%c19_239, %c512_240], %133 {strides = array<i32>} : memref<25x1024xbf16, #tpu.memory_space<vmem>>, vector<1x512xbf16>,
    %c1_241 = arith.constant 1 : index
    %c0_242 = arith.constant 0 : index
    %c0_243 = arith.constant 0 : index
    %c64_244 = arith.constant 64 : index
    %135 = vector.load %arg1[%c1_241, %c0_242, %c0_243, %c64_244] : memref<2x5x1x576xbf16, #tpu.memory_space<vmem>>, vector<1x1x1x512xbf16>
    %136 = vector.shape_cast %135 : vector<1x1x1x512xbf16> to vector<1x512xbf16>
    %c20_245 = arith.constant 20 : index
    %c512_246 = arith.constant 512 : index
    %137 = vector.load %arg4[%c20_245, %c512_246] : memref<25x1024xbf16, #tpu.memory_space<vmem>>, vector<1x512xbf16>
    tpu.vector_store %arg4[%c20_245, %c512_246], %136 {strides = array<i32>} : memref<25x1024xbf16, #tpu.memory_space<vmem>>, vector<1x512xbf16>,
    %c1_247 = arith.constant 1 : index
    %c1_248 = arith.constant 1 : index
    %c0_249 = arith.constant 0 : index
    %c64_250 = arith.constant 64 : index
    %138 = vector.load %arg1[%c1_247, %c1_248, %c0_249, %c64_250] : memref<2x5x1x576xbf16, #tpu.memory_space<vmem>>, vector<1x1x1x512xbf16>
    %139 = vector.shape_cast %138 : vector<1x1x1x512xbf16> to vector<1x512xbf16>
    %c21_251 = arith.constant 21 : index
    %c512_252 = arith.constant 512 : index
    %140 = vector.load %arg4[%c21_251, %c512_252] : memref<25x1024xbf16, #tpu.memory_space<vmem>>, vector<1x512xbf16>
    tpu.vector_store %arg4[%c21_251, %c512_252], %139 {strides = array<i32>} : memref<25x1024xbf16, #tpu.memory_space<vmem>>, vector<1x512xbf16>,
    %c1_253 = arith.constant 1 : index
    %c2_254 = arith.constant 2 : index
    %c0_255 = arith.constant 0 : index
    %c64_256 = arith.constant 64 : index
    %141 = vector.load %arg1[%c1_253, %c2_254, %c0_255, %c64_256] : memref<2x5x1x576xbf16, #tpu.memory_space<vmem>>, vector<1x1x1x512xbf16>
    %142 = vector.shape_cast %141 : vector<1x1x1x512xbf16> to vector<1x512xbf16>
    %c22_257 = arith.constant 22 : index
    %c512_258 = arith.constant 512 : index
    %143 = vector.load %arg4[%c22_257, %c512_258] : memref<25x1024xbf16, #tpu.memory_space<vmem>>, vector<1x512xbf16>
    tpu.vector_store %arg4[%c22_257, %c512_258], %142 {strides = array<i32>} : memref<25x1024xbf16, #tpu.memory_space<vmem>>, vector<1x512xbf16>,
    %c1_259 = arith.constant 1 : index
    %c3_260 = arith.constant 3 : index
    %c0_261 = arith.constant 0 : index
    %c64_262 = arith.constant 64 : index
    %144 = vector.load %arg1[%c1_259, %c3_260, %c0_261, %c64_262] : memref<2x5x1x576xbf16, #tpu.memory_space<vmem>>, vector<1x1x1x512xbf16>
    %145 = vector.shape_cast %144 : vector<1x1x1x512xbf16> to vector<1x512xbf16>
    %c23_263 = arith.constant 23 : index
    %c512_264 = arith.constant 512 : index
    %146 = vector.load %arg4[%c23_263, %c512_264] : memref<25x1024xbf16, #tpu.memory_space<vmem>>, vector<1x512xbf16>
    tpu.vector_store %arg4[%c23_263, %c512_264], %145 {strides = array<i32>} : memref<25x1024xbf16, #tpu.memory_space<vmem>>, vector<1x512xbf16>,
    %c1_265 = arith.constant 1 : index
    %c4_266 = arith.constant 4 : index
    %c0_267 = arith.constant 0 : index
    %c64_268 = arith.constant 64 : index
    %147 = vector.load %arg1[%c1_265, %c4_266, %c0_267, %c64_268] : memref<2x5x1x576xbf16, #tpu.memory_space<vmem>>, vector<1x1x1x512xbf16>
    %148 = vector.shape_cast %147 : vector<1x1x1x512xbf16> to vector<1x512xbf16>
    %c24_269 = arith.constant 24 : index
    %c512_270 = arith.constant 512 : index
    %149 = vector.load %arg4[%c24_269, %c512_270] : memref<25x1024xbf16, #tpu.memory_space<vmem>>, vector<1x512xbf16>
    tpu.vector_store %arg4[%c24_269, %c512_270], %148 {strides = array<i32>} : memref<25x1024xbf16, #tpu.memory_space<vmem>>, vector<1x512xbf16>,
    %c0_271 = arith.constant 0 : index
    %c0_272 = arith.constant 0 : index
    %150 = vector.load %arg2[%c0_271, %c0_272] : memref<8x25xbf16, #tpu.memory_space<vmem>>, vector<8x25xbf16>
    %c0_273 = arith.constant 0 : index
    %c0_274 = arith.constant 0 : index
    %151 = vector.load %arg4[%c0_273, %c0_274] : memref<25x1024xbf16, #tpu.memory_space<vmem>>, vector<25x1024xbf16>
    %cst = arith.constant dense<0.000000e+00> : vector<8x1024xf32>
    %152 = tpu.matmul %150, %151, %cst {dimension_numbers = #tpu.dot_dimension_numbers<[1], [0], [0], [1], [0, 0, 1, 1], [], []>} : vector<8x25xbf16>, vector<25x1024xbf16>, vector<8x1024xf32> -> vector<8x1024xf32>
    %cst_275 = arith.constant 0.000000e+00 : f32
    %153 = vector.broadcast %cst_275 : f32 to vector<8x1024xf32>
    %154 = arith.cmpf oge, %152, %153 : vector<8x1024xf32>
    %cst_276 = arith.constant 2.000000e-01 : f32
    %155 = vector.broadcast %cst_276 : f32 to vector<8x1024xf32>
    %156 = arith.mulf %155, %152 : vector<8x1024xf32>
    %157 = arith.select %154, %152, %156 : vector<8x1024xi1>, vector<8x1024xf32>
    %158 = vector.extract_strided_slice %157 {offsets = [0, 0], sizes = [8, 512], strides = [1, 1]} : vector<8x1024xf32> to vector<8x512xf32>
    %159 = arith.truncf %158 : vector<8x512xf32> to vector<8x512xbf16>
    %c0_277 = arith.constant 0 : index
    %c0_278 = arith.constant 0 : index
    %c0_279 = arith.constant 0 : index
    %160 = vector.load %arg3[%c0_277, %c0_278, %c0_279] : memref<2x8x512xbf16, #tpu.memory_space<vmem>>, vector<1x8x512xbf16>
    %161 = vector.shape_cast %160 : vector<1x8x512xbf16> to vector<8x512xbf16>
    %162 = vector.shape_cast %159 : vector<8x512xbf16> to vector<1x8x512xbf16>
    tpu.vector_store %arg3[%c0_277, %c0_278, %c0_279], %162 {strides = array<i32>} : memref<2x8x512xbf16, #tpu.memory_space<vmem>>, vector<1x8x512xbf16>,
    %163 = vector.extract_strided_slice %157 {offsets = [0, 512], sizes = [8, 512], strides = [1, 1]} : vector<8x1024xf32> to vector<8x512xf32>
    %164 = arith.truncf %163 : vector<8x512xf32> to vector<8x512xbf16>
    %c1_280 = arith.constant 1 : index
    %c0_281 = arith.constant 0 : index
    %c0_282 = arith.constant 0 : index
    %165 = vector.load %arg3[%c1_280, %c0_281, %c0_282] : memref<2x8x512xbf16, #tpu.memory_space<vmem>>, vector<1x8x512xbf16>
    %166 = vector.shape_cast %165 : vector<1x8x512xbf16> to vector<8x512xbf16>
    %167 = vector.shape_cast %164 : vector<8x512xbf16> to vector<1x8x512xbf16>
    tpu.vector_store %arg3[%c1_280, %c0_281, %c0_282], %167 {strides = array<i32>} : memref<2x8x512xbf16, #tpu.memory_space<vmem>>, vector<1x8x512xbf16>,
    return
  }
  func.func @transform_0(%arg0: i32) -> (i32, i32, i32, i32) {
    %c0_i32 = arith.constant 0 : i32
    %c0_i32_0 = arith.constant 0 : i32
    %c0_i32_1 = arith.constant 0 : i32
    %c0_i32_2 = arith.constant 0 : i32
    return %arg0, %c0_i32, %c0_i32_0, %c0_i32_1 : i32, i32, i32, i32
  }
  func.func @transform_1(%arg0: i32) -> (i32, i32) {
    %c0_i32 = arith.constant 0 : i32
    %c0_i32_0 = arith.constant 0 : i32
    %c0_i32_1 = arith.constant 0 : i32
    return %c0_i32, %c0_i32_0 : i32, i32
  }
  func.func @transform_2(%arg0: i32) -> (i32, i32, i32) {
    %c0_i32 = arith.constant 0 : i32
    %c0_i32_0 = arith.constant 0 : i32
    %c0_i32_1 = arith.constant 0 : i32
    return %arg0, %c0_i32, %c0_i32_0 : i32, i32, i32
  }
}

module attributes {stable_mosaic.version = 11 : i64} {
  func.func @_conv_kernel(%arg0: i32, %arg1: memref<2x8x8x136xbf16, #tpu.memory_space<vmem>>, %arg2: memref<16x128xbf16, #tpu.memory_space<vmem>>, %arg3: memref<2x16x128xf32, #tpu.memory_space<vmem>>, %arg4: memref<1x2x16xf32, #tpu.memory_space<vmem>>, %arg5: memref<128x256xbf16, #tpu.memory_space<vmem>>) attributes {dimension_semantics = [#tpu.dimension_semantics<parallel>], iteration_bounds = array<i64: 2>, scalar_prefetch = 0 : i64, scratch_operands = 1 : i64, tpu.core_type = #tpu.core_type<tc>, window_params = [{transform_indices = @transform_0, window_bounds = array<i64: 2, 8, 8, 136>}, {pipeline_mode = #tpu.pipeline_mode<synchronous>, transform_indices = @transform_1, window_bounds = array<i64: 16, 128>}, {transform_indices = @transform_2, window_bounds = array<i64: 2, 16, 128>}, {transform_indices = @transform_3, window_bounds = array<i64: 1, 2, 16>}]} {
    %c0 = arith.constant 0 : index
    %c0_0 = arith.constant 0 : index
    %c0_1 = arith.constant 0 : index
    %c0_2 = arith.constant 0 : index
    %0 = vector.load %arg1[%c0, %c0_0, %c0_1, %c0_2] : memref<2x8x8x136xbf16, #tpu.memory_space<vmem>>, vector<1x1x8x128xbf16>
    %1 = vector.shape_cast %0 : vector<1x1x8x128xbf16> to vector<8x128xbf16>
    %c0_3 = arith.constant 0 : index
    %c0_4 = arith.constant 0 : index
    %2 = vector.load %arg5[%c0_3, %c0_4] : memref<128x256xbf16, #tpu.memory_space<vmem>>, vector<8x128xbf16>
    tpu.vector_store %arg5[%c0_3, %c0_4], %1 {strides = array<i32>} : memref<128x256xbf16, #tpu.memory_space<vmem>>, vector<8x128xbf16>,
    %c0_5 = arith.constant 0 : index
    %c2 = arith.constant 2 : index
    %c0_6 = arith.constant 0 : index
    %c0_7 = arith.constant 0 : index
    %3 = vector.load %arg1[%c0_5, %c2, %c0_6, %c0_7] : memref<2x8x8x136xbf16, #tpu.memory_space<vmem>>, vector<1x1x8x128xbf16>
    %4 = vector.shape_cast %3 : vector<1x1x8x128xbf16> to vector<8x128xbf16>
    %c8 = arith.constant 8 : index
    %c0_8 = arith.constant 0 : index
    %5 = vector.load %arg5[%c8, %c0_8] : memref<128x256xbf16, #tpu.memory_space<vmem>>, vector<8x128xbf16>
    tpu.vector_store %arg5[%c8, %c0_8], %4 {strides = array<i32>} : memref<128x256xbf16, #tpu.memory_space<vmem>>, vector<8x128xbf16>,
    %c0_9 = arith.constant 0 : index
    %c4 = arith.constant 4 : index
    %c0_10 = arith.constant 0 : index
    %c0_11 = arith.constant 0 : index
    %6 = vector.load %arg1[%c0_9, %c4, %c0_10, %c0_11] : memref<2x8x8x136xbf16, #tpu.memory_space<vmem>>, vector<1x1x8x128xbf16>
    %7 = vector.shape_cast %6 : vector<1x1x8x128xbf16> to vector<8x128xbf16>
    %c16 = arith.constant 16 : index
    %c0_12 = arith.constant 0 : index
    %8 = vector.load %arg5[%c16, %c0_12] : memref<128x256xbf16, #tpu.memory_space<vmem>>, vector<8x128xbf16>
    tpu.vector_store %arg5[%c16, %c0_12], %7 {strides = array<i32>} : memref<128x256xbf16, #tpu.memory_space<vmem>>, vector<8x128xbf16>,
    %c0_13 = arith.constant 0 : index
    %c6 = arith.constant 6 : index
    %c0_14 = arith.constant 0 : index
    %c0_15 = arith.constant 0 : index
    %9 = vector.load %arg1[%c0_13, %c6, %c0_14, %c0_15] : memref<2x8x8x136xbf16, #tpu.memory_space<vmem>>, vector<1x1x8x128xbf16>
    %10 = vector.shape_cast %9 : vector<1x1x8x128xbf16> to vector<8x128xbf16>
    %c24 = arith.constant 24 : index
    %c0_16 = arith.constant 0 : index
    %11 = vector.load %arg5[%c24, %c0_16] : memref<128x256xbf16, #tpu.memory_space<vmem>>, vector<8x128xbf16>
    tpu.vector_store %arg5[%c24, %c0_16], %10 {strides = array<i32>} : memref<128x256xbf16, #tpu.memory_space<vmem>>, vector<8x128xbf16>,
    %c0_17 = arith.constant 0 : index
    %c1 = arith.constant 1 : index
    %c0_18 = arith.constant 0 : index
    %c0_19 = arith.constant 0 : index
    %12 = vector.load %arg1[%c0_17, %c1, %c0_18, %c0_19] : memref<2x8x8x136xbf16, #tpu.memory_space<vmem>>, vector<1x1x8x128xbf16>
    %13 = vector.shape_cast %12 : vector<1x1x8x128xbf16> to vector<8x128xbf16>
    %c32 = arith.constant 32 : index
    %c0_20 = arith.constant 0 : index
    %14 = vector.load %arg5[%c32, %c0_20] : memref<128x256xbf16, #tpu.memory_space<vmem>>, vector<8x128xbf16>
    tpu.vector_store %arg5[%c32, %c0_20], %13 {strides = array<i32>} : memref<128x256xbf16, #tpu.memory_space<vmem>>, vector<8x128xbf16>,
    %c0_21 = arith.constant 0 : index
    %c3 = arith.constant 3 : index
    %c0_22 = arith.constant 0 : index
    %c0_23 = arith.constant 0 : index
    %15 = vector.load %arg1[%c0_21, %c3, %c0_22, %c0_23] : memref<2x8x8x136xbf16, #tpu.memory_space<vmem>>, vector<1x1x8x128xbf16>
    %16 = vector.shape_cast %15 : vector<1x1x8x128xbf16> to vector<8x128xbf16>
    %c40 = arith.constant 40 : index
    %c0_24 = arith.constant 0 : index
    %17 = vector.load %arg5[%c40, %c0_24] : memref<128x256xbf16, #tpu.memory_space<vmem>>, vector<8x128xbf16>
    tpu.vector_store %arg5[%c40, %c0_24], %16 {strides = array<i32>} : memref<128x256xbf16, #tpu.memory_space<vmem>>, vector<8x128xbf16>,
    %c0_25 = arith.constant 0 : index
    %c5 = arith.constant 5 : index
    %c0_26 = arith.constant 0 : index
    %c0_27 = arith.constant 0 : index
    %18 = vector.load %arg1[%c0_25, %c5, %c0_26, %c0_27] : memref<2x8x8x136xbf16, #tpu.memory_space<vmem>>, vector<1x1x8x128xbf16>
    %19 = vector.shape_cast %18 : vector<1x1x8x128xbf16> to vector<8x128xbf16>
    %c48 = arith.constant 48 : index
    %c0_28 = arith.constant 0 : index
    %20 = vector.load %arg5[%c48, %c0_28] : memref<128x256xbf16, #tpu.memory_space<vmem>>, vector<8x128xbf16>
    tpu.vector_store %arg5[%c48, %c0_28], %19 {strides = array<i32>} : memref<128x256xbf16, #tpu.memory_space<vmem>>, vector<8x128xbf16>,
    %c0_29 = arith.constant 0 : index
    %c7 = arith.constant 7 : index
    %c0_30 = arith.constant 0 : index
    %c0_31 = arith.constant 0 : index
    %21 = vector.load %arg1[%c0_29, %c7, %c0_30, %c0_31] : memref<2x8x8x136xbf16, #tpu.memory_space<vmem>>, vector<1x1x8x128xbf16>
    %22 = vector.shape_cast %21 : vector<1x1x8x128xbf16> to vector<8x128xbf16>
    %c56 = arith.constant 56 : index
    %c0_32 = arith.constant 0 : index
    %23 = vector.load %arg5[%c56, %c0_32] : memref<128x256xbf16, #tpu.memory_space<vmem>>, vector<8x128xbf16>
    tpu.vector_store %arg5[%c56, %c0_32], %22 {strides = array<i32>} : memref<128x256xbf16, #tpu.memory_space<vmem>>, vector<8x128xbf16>,
    %c0_33 = arith.constant 0 : index
    %c0_34 = arith.constant 0 : index
    %c0_35 = arith.constant 0 : index
    %c8_36 = arith.constant 8 : index
    %24 = vector.load %arg1[%c0_33, %c0_34, %c0_35, %c8_36] : memref<2x8x8x136xbf16, #tpu.memory_space<vmem>>, vector<1x1x8x128xbf16>
    %25 = vector.shape_cast %24 : vector<1x1x8x128xbf16> to vector<8x128xbf16>
    %c64 = arith.constant 64 : index
    %c0_37 = arith.constant 0 : index
    %26 = vector.load %arg5[%c64, %c0_37] : memref<128x256xbf16, #tpu.memory_space<vmem>>, vector<8x128xbf16>
    tpu.vector_store %arg5[%c64, %c0_37], %25 {strides = array<i32>} : memref<128x256xbf16, #tpu.memory_space<vmem>>, vector<8x128xbf16>,
    %c0_38 = arith.constant 0 : index
    %c2_39 = arith.constant 2 : index
    %c0_40 = arith.constant 0 : index
    %c8_41 = arith.constant 8 : index
    %27 = vector.load %arg1[%c0_38, %c2_39, %c0_40, %c8_41] : memref<2x8x8x136xbf16, #tpu.memory_space<vmem>>, vector<1x1x8x128xbf16>
    %28 = vector.shape_cast %27 : vector<1x1x8x128xbf16> to vector<8x128xbf16>
    %c72 = arith.constant 72 : index
    %c0_42 = arith.constant 0 : index
    %29 = vector.load %arg5[%c72, %c0_42] : memref<128x256xbf16, #tpu.memory_space<vmem>>, vector<8x128xbf16>
    tpu.vector_store %arg5[%c72, %c0_42], %28 {strides = array<i32>} : memref<128x256xbf16, #tpu.memory_space<vmem>>, vector<8x128xbf16>,
    %c0_43 = arith.constant 0 : index
    %c4_44 = arith.constant 4 : index
    %c0_45 = arith.constant 0 : index
    %c8_46 = arith.constant 8 : index
    %30 = vector.load %arg1[%c0_43, %c4_44, %c0_45, %c8_46] : memref<2x8x8x136xbf16, #tpu.memory_space<vmem>>, vector<1x1x8x128xbf16>
    %31 = vector.shape_cast %30 : vector<1x1x8x128xbf16> to vector<8x128xbf16>
    %c80 = arith.constant 80 : index
    %c0_47 = arith.constant 0 : index
    %32 = vector.load %arg5[%c80, %c0_47] : memref<128x256xbf16, #tpu.memory_space<vmem>>, vector<8x128xbf16>
    tpu.vector_store %arg5[%c80, %c0_47], %31 {strides = array<i32>} : memref<128x256xbf16, #tpu.memory_space<vmem>>, vector<8x128xbf16>,
    %c0_48 = arith.constant 0 : index
    %c6_49 = arith.constant 6 : index
    %c0_50 = arith.constant 0 : index
    %c8_51 = arith.constant 8 : index
    %33 = vector.load %arg1[%c0_48, %c6_49, %c0_50, %c8_51] : memref<2x8x8x136xbf16, #tpu.memory_space<vmem>>, vector<1x1x8x128xbf16>
    %34 = vector.shape_cast %33 : vector<1x1x8x128xbf16> to vector<8x128xbf16>
    %c88 = arith.constant 88 : index
    %c0_52 = arith.constant 0 : index
    %35 = vector.load %arg5[%c88, %c0_52] : memref<128x256xbf16, #tpu.memory_space<vmem>>, vector<8x128xbf16>
    tpu.vector_store %arg5[%c88, %c0_52], %34 {strides = array<i32>} : memref<128x256xbf16, #tpu.memory_space<vmem>>, vector<8x128xbf16>,
    %c0_53 = arith.constant 0 : index
    %c1_54 = arith.constant 1 : index
    %c0_55 = arith.constant 0 : index
    %c8_56 = arith.constant 8 : index
    %36 = vector.load %arg1[%c0_53, %c1_54, %c0_55, %c8_56] : memref<2x8x8x136xbf16, #tpu.memory_space<vmem>>, vector<1x1x8x128xbf16>
    %37 = vector.shape_cast %36 : vector<1x1x8x128xbf16> to vector<8x128xbf16>
    %c96 = arith.constant 96 : index
    %c0_57 = arith.constant 0 : index
    %38 = vector.load %arg5[%c96, %c0_57] : memref<128x256xbf16, #tpu.memory_space<vmem>>, vector<8x128xbf16>
    tpu.vector_store %arg5[%c96, %c0_57], %37 {strides = array<i32>} : memref<128x256xbf16, #tpu.memory_space<vmem>>, vector<8x128xbf16>,
    %c0_58 = arith.constant 0 : index
    %c3_59 = arith.constant 3 : index
    %c0_60 = arith.constant 0 : index
    %c8_61 = arith.constant 8 : index
    %39 = vector.load %arg1[%c0_58, %c3_59, %c0_60, %c8_61] : memref<2x8x8x136xbf16, #tpu.memory_space<vmem>>, vector<1x1x8x128xbf16>
    %40 = vector.shape_cast %39 : vector<1x1x8x128xbf16> to vector<8x128xbf16>
    %c104 = arith.constant 104 : index
    %c0_62 = arith.constant 0 : index
    %41 = vector.load %arg5[%c104, %c0_62] : memref<128x256xbf16, #tpu.memory_space<vmem>>, vector<8x128xbf16>
    tpu.vector_store %arg5[%c104, %c0_62], %40 {strides = array<i32>} : memref<128x256xbf16, #tpu.memory_space<vmem>>, vector<8x128xbf16>,
    %c0_63 = arith.constant 0 : index
    %c5_64 = arith.constant 5 : index
    %c0_65 = arith.constant 0 : index
    %c8_66 = arith.constant 8 : index
    %42 = vector.load %arg1[%c0_63, %c5_64, %c0_65, %c8_66] : memref<2x8x8x136xbf16, #tpu.memory_space<vmem>>, vector<1x1x8x128xbf16>
    %43 = vector.shape_cast %42 : vector<1x1x8x128xbf16> to vector<8x128xbf16>
    %c112 = arith.constant 112 : index
    %c0_67 = arith.constant 0 : index
    %44 = vector.load %arg5[%c112, %c0_67] : memref<128x256xbf16, #tpu.memory_space<vmem>>, vector<8x128xbf16>
    tpu.vector_store %arg5[%c112, %c0_67], %43 {strides = array<i32>} : memref<128x256xbf16, #tpu.memory_space<vmem>>, vector<8x128xbf16>,
    %c0_68 = arith.constant 0 : index
    %c7_69 = arith.constant 7 : index
    %c0_70 = arith.constant 0 : index
    %c8_71 = arith.constant 8 : index
    %45 = vector.load %arg1[%c0_68, %c7_69, %c0_70, %c8_71] : memref<2x8x8x136xbf16, #tpu.memory_space<vmem>>, vector<1x1x8x128xbf16>
    %46 = vector.shape_cast %45 : vector<1x1x8x128xbf16> to vector<8x128xbf16>
    %c120 = arith.constant 120 : index
    %c0_72 = arith.constant 0 : index
    %47 = vector.load %arg5[%c120, %c0_72] : memref<128x256xbf16, #tpu.memory_space<vmem>>, vector<8x128xbf16>
    tpu.vector_store %arg5[%c120, %c0_72], %46 {strides = array<i32>} : memref<128x256xbf16, #tpu.memory_space<vmem>>, vector<8x128xbf16>,
    %c1_73 = arith.constant 1 : index
    %c0_74 = arith.constant 0 : index
    %c0_75 = arith.constant 0 : index
    %c0_76 = arith.constant 0 : index
    %48 = vector.load %arg1[%c1_73, %c0_74, %c0_75, %c0_76] : memref<2x8x8x136xbf16, #tpu.memory_space<vmem>>, vector<1x1x8x128xbf16>
    %49 = vector.shape_cast %48 : vector<1x1x8x128xbf16> to vector<8x128xbf16>
    %c0_77 = arith.constant 0 : index
    %c128 = arith.constant 128 : index
    %50 = vector.load %arg5[%c0_77, %c128] : memref<128x256xbf16, #tpu.memory_space<vmem>>, vector<8x128xbf16>
    tpu.vector_store %arg5[%c0_77, %c128], %49 {strides = array<i32>} : memref<128x256xbf16, #tpu.memory_space<vmem>>, vector<8x128xbf16>,
    %c1_78 = arith.constant 1 : index
    %c2_79 = arith.constant 2 : index
    %c0_80 = arith.constant 0 : index
    %c0_81 = arith.constant 0 : index
    %51 = vector.load %arg1[%c1_78, %c2_79, %c0_80, %c0_81] : memref<2x8x8x136xbf16, #tpu.memory_space<vmem>>, vector<1x1x8x128xbf16>
    %52 = vector.shape_cast %51 : vector<1x1x8x128xbf16> to vector<8x128xbf16>
    %c8_82 = arith.constant 8 : index
    %c128_83 = arith.constant 128 : index
    %53 = vector.load %arg5[%c8_82, %c128_83] : memref<128x256xbf16, #tpu.memory_space<vmem>>, vector<8x128xbf16>
    tpu.vector_store %arg5[%c8_82, %c128_83], %52 {strides = array<i32>} : memref<128x256xbf16, #tpu.memory_space<vmem>>, vector<8x128xbf16>,
    %c1_84 = arith.constant 1 : index
    %c4_85 = arith.constant 4 : index
    %c0_86 = arith.constant 0 : index
    %c0_87 = arith.constant 0 : index
    %54 = vector.load %arg1[%c1_84, %c4_85, %c0_86, %c0_87] : memref<2x8x8x136xbf16, #tpu.memory_space<vmem>>, vector<1x1x8x128xbf16>
    %55 = vector.shape_cast %54 : vector<1x1x8x128xbf16> to vector<8x128xbf16>
    %c16_88 = arith.constant 16 : index
    %c128_89 = arith.constant 128 : index
    %56 = vector.load %arg5[%c16_88, %c128_89] : memref<128x256xbf16, #tpu.memory_space<vmem>>, vector<8x128xbf16>
    tpu.vector_store %arg5[%c16_88, %c128_89], %55 {strides = array<i32>} : memref<128x256xbf16, #tpu.memory_space<vmem>>, vector<8x128xbf16>,
    %c1_90 = arith.constant 1 : index
    %c6_91 = arith.constant 6 : index
    %c0_92 = arith.constant 0 : index
    %c0_93 = arith.constant 0 : index
    %57 = vector.load %arg1[%c1_90, %c6_91, %c0_92, %c0_93] : memref<2x8x8x136xbf16, #tpu.memory_space<vmem>>, vector<1x1x8x128xbf16>
    %58 = vector.shape_cast %57 : vector<1x1x8x128xbf16> to vector<8x128xbf16>
    %c24_94 = arith.constant 24 : index
    %c128_95 = arith.constant 128 : index
    %59 = vector.load %arg5[%c24_94, %c128_95] : memref<128x256xbf16, #tpu.memory_space<vmem>>, vector<8x128xbf16>
    tpu.vector_store %arg5[%c24_94, %c128_95], %58 {strides = array<i32>} : memref<128x256xbf16, #tpu.memory_space<vmem>>, vector<8x128xbf16>,
    %c1_96 = arith.constant 1 : index
    %c1_97 = arith.constant 1 : index
    %c0_98 = arith.constant 0 : index
    %c0_99 = arith.constant 0 : index
    %60 = vector.load %arg1[%c1_96, %c1_97, %c0_98, %c0_99] : memref<2x8x8x136xbf16, #tpu.memory_space<vmem>>, vector<1x1x8x128xbf16>
    %61 = vector.shape_cast %60 : vector<1x1x8x128xbf16> to vector<8x128xbf16>
    %c32_100 = arith.constant 32 : index
    %c128_101 = arith.constant 128 : index
    %62 = vector.load %arg5[%c32_100, %c128_101] : memref<128x256xbf16, #tpu.memory_space<vmem>>, vector<8x128xbf16>
    tpu.vector_store %arg5[%c32_100, %c128_101], %61 {strides = array<i32>} : memref<128x256xbf16, #tpu.memory_space<vmem>>, vector<8x128xbf16>,
    %c1_102 = arith.constant 1 : index
    %c3_103 = arith.constant 3 : index
    %c0_104 = arith.constant 0 : index
    %c0_105 = arith.constant 0 : index
    %63 = vector.load %arg1[%c1_102, %c3_103, %c0_104, %c0_105] : memref<2x8x8x136xbf16, #tpu.memory_space<vmem>>, vector<1x1x8x128xbf16>
    %64 = vector.shape_cast %63 : vector<1x1x8x128xbf16> to vector<8x128xbf16>
    %c40_106 = arith.constant 40 : index
    %c128_107 = arith.constant 128 : index
    %65 = vector.load %arg5[%c40_106, %c128_107] : memref<128x256xbf16, #tpu.memory_space<vmem>>, vector<8x128xbf16>
    tpu.vector_store %arg5[%c40_106, %c128_107], %64 {strides = array<i32>} : memref<128x256xbf16, #tpu.memory_space<vmem>>, vector<8x128xbf16>,
    %c1_108 = arith.constant 1 : index
    %c5_109 = arith.constant 5 : index
    %c0_110 = arith.constant 0 : index
    %c0_111 = arith.constant 0 : index
    %66 = vector.load %arg1[%c1_108, %c5_109, %c0_110, %c0_111] : memref<2x8x8x136xbf16, #tpu.memory_space<vmem>>, vector<1x1x8x128xbf16>
    %67 = vector.shape_cast %66 : vector<1x1x8x128xbf16> to vector<8x128xbf16>
    %c48_112 = arith.constant 48 : index
    %c128_113 = arith.constant 128 : index
    %68 = vector.load %arg5[%c48_112, %c128_113] : memref<128x256xbf16, #tpu.memory_space<vmem>>, vector<8x128xbf16>
    tpu.vector_store %arg5[%c48_112, %c128_113], %67 {strides = array<i32>} : memref<128x256xbf16, #tpu.memory_space<vmem>>, vector<8x128xbf16>,
    %c1_114 = arith.constant 1 : index
    %c7_115 = arith.constant 7 : index
    %c0_116 = arith.constant 0 : index
    %c0_117 = arith.constant 0 : index
    %69 = vector.load %arg1[%c1_114, %c7_115, %c0_116, %c0_117] : memref<2x8x8x136xbf16, #tpu.memory_space<vmem>>, vector<1x1x8x128xbf16>
    %70 = vector.shape_cast %69 : vector<1x1x8x128xbf16> to vector<8x128xbf16>
    %c56_118 = arith.constant 56 : index
    %c128_119 = arith.constant 128 : index
    %71 = vector.load %arg5[%c56_118, %c128_119] : memref<128x256xbf16, #tpu.memory_space<vmem>>, vector<8x128xbf16>
    tpu.vector_store %arg5[%c56_118, %c128_119], %70 {strides = array<i32>} : memref<128x256xbf16, #tpu.memory_space<vmem>>, vector<8x128xbf16>,
    %c1_120 = arith.constant 1 : index
    %c0_121 = arith.constant 0 : index
    %c0_122 = arith.constant 0 : index
    %c8_123 = arith.constant 8 : index
    %72 = vector.load %arg1[%c1_120, %c0_121, %c0_122, %c8_123] : memref<2x8x8x136xbf16, #tpu.memory_space<vmem>>, vector<1x1x8x128xbf16>
    %73 = vector.shape_cast %72 : vector<1x1x8x128xbf16> to vector<8x128xbf16>
    %c64_124 = arith.constant 64 : index
    %c128_125 = arith.constant 128 : index
    %74 = vector.load %arg5[%c64_124, %c128_125] : memref<128x256xbf16, #tpu.memory_space<vmem>>, vector<8x128xbf16>
    tpu.vector_store %arg5[%c64_124, %c128_125], %73 {strides = array<i32>} : memref<128x256xbf16, #tpu.memory_space<vmem>>, vector<8x128xbf16>,
    %c1_126 = arith.constant 1 : index
    %c2_127 = arith.constant 2 : index
    %c0_128 = arith.constant 0 : index
    %c8_129 = arith.constant 8 : index
    %75 = vector.load %arg1[%c1_126, %c2_127, %c0_128, %c8_129] : memref<2x8x8x136xbf16, #tpu.memory_space<vmem>>, vector<1x1x8x128xbf16>
    %76 = vector.shape_cast %75 : vector<1x1x8x128xbf16> to vector<8x128xbf16>
    %c72_130 = arith.constant 72 : index
    %c128_131 = arith.constant 128 : index
    %77 = vector.load %arg5[%c72_130, %c128_131] : memref<128x256xbf16, #tpu.memory_space<vmem>>, vector<8x128xbf16>
    tpu.vector_store %arg5[%c72_130, %c128_131], %76 {strides = array<i32>} : memref<128x256xbf16, #tpu.memory_space<vmem>>, vector<8x128xbf16>,
    %c1_132 = arith.constant 1 : index
    %c4_133 = arith.constant 4 : index
    %c0_134 = arith.constant 0 : index
    %c8_135 = arith.constant 8 : index
    %78 = vector.load %arg1[%c1_132, %c4_133, %c0_134, %c8_135] : memref<2x8x8x136xbf16, #tpu.memory_space<vmem>>, vector<1x1x8x128xbf16>
    %79 = vector.shape_cast %78 : vector<1x1x8x128xbf16> to vector<8x128xbf16>
    %c80_136 = arith.constant 80 : index
    %c128_137 = arith.constant 128 : index
    %80 = vector.load %arg5[%c80_136, %c128_137] : memref<128x256xbf16, #tpu.memory_space<vmem>>, vector<8x128xbf16>
    tpu.vector_store %arg5[%c80_136, %c128_137], %79 {strides = array<i32>} : memref<128x256xbf16, #tpu.memory_space<vmem>>, vector<8x128xbf16>,
    %c1_138 = arith.constant 1 : index
    %c6_139 = arith.constant 6 : index
    %c0_140 = arith.constant 0 : index
    %c8_141 = arith.constant 8 : index
    %81 = vector.load %arg1[%c1_138, %c6_139, %c0_140, %c8_141] : memref<2x8x8x136xbf16, #tpu.memory_space<vmem>>, vector<1x1x8x128xbf16>
    %82 = vector.shape_cast %81 : vector<1x1x8x128xbf16> to vector<8x128xbf16>
    %c88_142 = arith.constant 88 : index
    %c128_143 = arith.constant 128 : index
    %83 = vector.load %arg5[%c88_142, %c128_143] : memref<128x256xbf16, #tpu.memory_space<vmem>>, vector<8x128xbf16>
    tpu.vector_store %arg5[%c88_142, %c128_143], %82 {strides = array<i32>} : memref<128x256xbf16, #tpu.memory_space<vmem>>, vector<8x128xbf16>,
    %c1_144 = arith.constant 1 : index
    %c1_145 = arith.constant 1 : index
    %c0_146 = arith.constant 0 : index
    %c8_147 = arith.constant 8 : index
    %84 = vector.load %arg1[%c1_144, %c1_145, %c0_146, %c8_147] : memref<2x8x8x136xbf16, #tpu.memory_space<vmem>>, vector<1x1x8x128xbf16>
    %85 = vector.shape_cast %84 : vector<1x1x8x128xbf16> to vector<8x128xbf16>
    %c96_148 = arith.constant 96 : index
    %c128_149 = arith.constant 128 : index
    %86 = vector.load %arg5[%c96_148, %c128_149] : memref<128x256xbf16, #tpu.memory_space<vmem>>, vector<8x128xbf16>
    tpu.vector_store %arg5[%c96_148, %c128_149], %85 {strides = array<i32>} : memref<128x256xbf16, #tpu.memory_space<vmem>>, vector<8x128xbf16>,
    %c1_150 = arith.constant 1 : index
    %c3_151 = arith.constant 3 : index
    %c0_152 = arith.constant 0 : index
    %c8_153 = arith.constant 8 : index
    %87 = vector.load %arg1[%c1_150, %c3_151, %c0_152, %c8_153] : memref<2x8x8x136xbf16, #tpu.memory_space<vmem>>, vector<1x1x8x128xbf16>
    %88 = vector.shape_cast %87 : vector<1x1x8x128xbf16> to vector<8x128xbf16>
    %c104_154 = arith.constant 104 : index
    %c128_155 = arith.constant 128 : index
    %89 = vector.load %arg5[%c104_154, %c128_155] : memref<128x256xbf16, #tpu.memory_space<vmem>>, vector<8x128xbf16>
    tpu.vector_store %arg5[%c104_154, %c128_155], %88 {strides = array<i32>} : memref<128x256xbf16, #tpu.memory_space<vmem>>, vector<8x128xbf16>,
    %c1_156 = arith.constant 1 : index
    %c5_157 = arith.constant 5 : index
    %c0_158 = arith.constant 0 : index
    %c8_159 = arith.constant 8 : index
    %90 = vector.load %arg1[%c1_156, %c5_157, %c0_158, %c8_159] : memref<2x8x8x136xbf16, #tpu.memory_space<vmem>>, vector<1x1x8x128xbf16>
    %91 = vector.shape_cast %90 : vector<1x1x8x128xbf16> to vector<8x128xbf16>
    %c112_160 = arith.constant 112 : index
    %c128_161 = arith.constant 128 : index
    %92 = vector.load %arg5[%c112_160, %c128_161] : memref<128x256xbf16, #tpu.memory_space<vmem>>, vector<8x128xbf16>
    tpu.vector_store %arg5[%c112_160, %c128_161], %91 {strides = array<i32>} : memref<128x256xbf16, #tpu.memory_space<vmem>>, vector<8x128xbf16>,
    %c1_162 = arith.constant 1 : index
    %c7_163 = arith.constant 7 : index
    %c0_164 = arith.constant 0 : index
    %c8_165 = arith.constant 8 : index
    %93 = vector.load %arg1[%c1_162, %c7_163, %c0_164, %c8_165] : memref<2x8x8x136xbf16, #tpu.memory_space<vmem>>, vector<1x1x8x128xbf16>
    %94 = vector.shape_cast %93 : vector<1x1x8x128xbf16> to vector<8x128xbf16>
    %c120_166 = arith.constant 120 : index
    %c128_167 = arith.constant 128 : index
    %95 = vector.load %arg5[%c120_166, %c128_167] : memref<128x256xbf16, #tpu.memory_space<vmem>>, vector<8x128xbf16>
    tpu.vector_store %arg5[%c120_166, %c128_167], %94 {strides = array<i32>} : memref<128x256xbf16, #tpu.memory_space<vmem>>, vector<8x128xbf16>,
    %c0_168 = arith.constant 0 : index
    %c0_169 = arith.constant 0 : index
    %96 = vector.load %arg2[%c0_168, %c0_169] : memref<16x128xbf16, #tpu.memory_space<vmem>>, vector<16x128xbf16>
    %c0_170 = arith.constant 0 : index
    %c0_171 = arith.constant 0 : index
    %97 = vector.load %arg5[%c0_170, %c0_171] : memref<128x256xbf16, #tpu.memory_space<vmem>>, vector<128x256xbf16>
    %cst = arith.constant dense<0.000000e+00> : vector<16x256xf32>
    %98 = tpu.matmul %96, %97, %cst {dimension_numbers = #tpu.dot_dimension_numbers<[1], [0], [0], [1], [0, 0, 1, 1], [], []>} : vector<16x128xbf16>, vector<128x256xbf16>, vector<16x256xf32> -> vector<16x256xf32>
    %99 = vector.extract_strided_slice %98 {offsets = [0, 0], sizes = [16, 128], strides = [1, 1]} : vector<16x256xf32> to vector<16x128xf32>
    %c0_172 = arith.constant 0 : index
    %c0_173 = arith.constant 0 : index
    %c0_174 = arith.constant 0 : index
    %100 = vector.load %arg3[%c0_172, %c0_173, %c0_174] : memref<2x16x128xf32, #tpu.memory_space<vmem>>, vector<1x16x128xf32>
    %101 = vector.shape_cast %100 : vector<1x16x128xf32> to vector<16x128xf32>
    %102 = vector.shape_cast %99 : vector<16x128xf32> to vector<1x16x128xf32>
    tpu.vector_store %arg3[%c0_172, %c0_173, %c0_174], %102 {strides = array<i32>} : memref<2x16x128xf32, #tpu.memory_space<vmem>>, vector<1x16x128xf32>,
    %103 = vector.extract_strided_slice %98 {offsets = [0, 128], sizes = [16, 128], strides = [1, 1]} : vector<16x256xf32> to vector<16x128xf32>
    %c1_175 = arith.constant 1 : index
    %c0_176 = arith.constant 0 : index
    %c0_177 = arith.constant 0 : index
    %104 = vector.load %arg3[%c1_175, %c0_176, %c0_177] : memref<2x16x128xf32, #tpu.memory_space<vmem>>, vector<1x16x128xf32>
    %105 = vector.shape_cast %104 : vector<1x16x128xf32> to vector<16x128xf32>
    %106 = vector.shape_cast %103 : vector<16x128xf32> to vector<1x16x128xf32>
    tpu.vector_store %arg3[%c1_175, %c0_176, %c0_177], %106 {strides = array<i32>} : memref<2x16x128xf32, #tpu.memory_space<vmem>>, vector<1x16x128xf32>,
    %cst_178 = arith.constant dense<0.000000e+00> : vector<16xf32>
    %107 = vector.multi_reduction <add>, %98, %cst_178 [1] : vector<16x256xf32> to vector<16xf32>
    %108 = vector.shape_cast %107 : vector<16xf32> to vector<1x16xf32>
    %c0_179 = arith.constant 0 : index
    %c0_180 = arith.constant 0 : index
    %c0_181 = arith.constant 0 : index
    %109 = vector.load %arg4[%c0_179, %c0_180, %c0_181] : memref<1x2x16xf32, #tpu.memory_space<vmem>>, vector<1x1x16xf32>
    %110 = vector.shape_cast %109 : vector<1x1x16xf32> to vector<1x16xf32>
    %111 = vector.shape_cast %108 : vector<1x16xf32> to vector<1x1x16xf32>
    tpu.vector_store %arg4[%c0_179, %c0_180, %c0_181], %111 {strides = array<i32>} : memref<1x2x16xf32, #tpu.memory_space<vmem>>, vector<1x1x16xf32>,
    %112 = arith.mulf %98, %98 : vector<16x256xf32>
    %cst_182 = arith.constant dense<0.000000e+00> : vector<16xf32>
    %113 = vector.multi_reduction <add>, %112, %cst_182 [1] : vector<16x256xf32> to vector<16xf32>
    %114 = vector.shape_cast %113 : vector<16xf32> to vector<1x16xf32>
    %c0_183 = arith.constant 0 : index
    %c1_184 = arith.constant 1 : index
    %c0_185 = arith.constant 0 : index
    %115 = vector.load %arg4[%c0_183, %c1_184, %c0_185] : memref<1x2x16xf32, #tpu.memory_space<vmem>>, vector<1x1x16xf32>
    %116 = vector.shape_cast %115 : vector<1x1x16xf32> to vector<1x16xf32>
    %117 = vector.shape_cast %114 : vector<1x16xf32> to vector<1x1x16xf32>
    tpu.vector_store %arg4[%c0_183, %c1_184, %c0_185], %117 {strides = array<i32>} : memref<1x2x16xf32, #tpu.memory_space<vmem>>, vector<1x1x16xf32>,
    return
  }
  func.func @transform_0(%arg0: i32) -> (i32, i32, i32, i32) {
    %c0_i32 = arith.constant 0 : i32
    %c0_i32_0 = arith.constant 0 : i32
    %c0_i32_1 = arith.constant 0 : i32
    %c0_i32_2 = arith.constant 0 : i32
    return %arg0, %c0_i32, %c0_i32_0, %c0_i32_1 : i32, i32, i32, i32
  }
  func.func @transform_1(%arg0: i32) -> (i32, i32) {
    %c0_i32 = arith.constant 0 : i32
    %c0_i32_0 = arith.constant 0 : i32
    %c0_i32_1 = arith.constant 0 : i32
    return %c0_i32, %c0_i32_0 : i32, i32
  }
  func.func @transform_2(%arg0: i32) -> (i32, i32, i32) {
    %c0_i32 = arith.constant 0 : i32
    %c0_i32_0 = arith.constant 0 : i32
    %c0_i32_1 = arith.constant 0 : i32
    return %arg0, %c0_i32, %c0_i32_0 : i32, i32, i32
  }
  func.func @transform_3(%arg0: i32) -> (i32, i32, i32) {
    %c0_i32 = arith.constant 0 : i32
    %c0_i32_0 = arith.constant 0 : i32
    %c0_i32_1 = arith.constant 0 : i32
    return %arg0, %c0_i32, %c0_i32_0 : i32, i32, i32
  }
}

module attributes {stable_mosaic.version = 11 : i64} {
  func.func @_bn_lrelu_kernel(%arg0: i32, %arg1: memref<2x32x32xf32, #tpu.memory_space<vmem>>, %arg2: memref<1x32x1xf32, #tpu.memory_space<vmem>>, %arg3: memref<1x32x1xf32, #tpu.memory_space<vmem>>, %arg4: memref<2x32x32xf32, #tpu.memory_space<vmem>>) attributes {dimension_semantics = [#tpu.dimension_semantics<parallel>], iteration_bounds = array<i64: 2>, scalar_prefetch = 0 : i64, scratch_operands = 0 : i64, tpu.core_type = #tpu.core_type<tc>, window_params = [{transform_indices = @transform_0, window_bounds = array<i64: 2, 32, 32>}, {pipeline_mode = #tpu.pipeline_mode<synchronous>, transform_indices = @transform_1, window_bounds = array<i64: 1, 32, 1>}, {pipeline_mode = #tpu.pipeline_mode<synchronous>, transform_indices = @transform_2, window_bounds = array<i64: 1, 32, 1>}, {transform_indices = @transform_3, window_bounds = array<i64: 2, 32, 32>}]} {
    %c0 = arith.constant 0 : index
    %c0_0 = arith.constant 0 : index
    %c0_1 = arith.constant 0 : index
    %0 = vector.load %arg1[%c0, %c0_0, %c0_1] : memref<2x32x32xf32, #tpu.memory_space<vmem>>, vector<2x32x32xf32>
    %c0_2 = arith.constant 0 : index
    %c0_3 = arith.constant 0 : index
    %c0_4 = arith.constant 0 : index
    %1 = vector.load %arg2[%c0_2, %c0_3, %c0_4] : memref<1x32x1xf32, #tpu.memory_space<vmem>>, vector<1x32x1xf32>
    %2 = vector.broadcast %1 : vector<1x32x1xf32> to vector<2x32x32xf32>
    %3 = arith.mulf %0, %2 : vector<2x32x32xf32>
    %c0_5 = arith.constant 0 : index
    %c0_6 = arith.constant 0 : index
    %c0_7 = arith.constant 0 : index
    %4 = vector.load %arg3[%c0_5, %c0_6, %c0_7] : memref<1x32x1xf32, #tpu.memory_space<vmem>>, vector<1x32x1xf32>
    %5 = vector.broadcast %4 : vector<1x32x1xf32> to vector<2x32x32xf32>
    %6 = arith.addf %3, %5 : vector<2x32x32xf32>
    %cst = arith.constant 0.000000e+00 : f32
    %7 = vector.broadcast %cst : f32 to vector<2x32x32xf32>
    %8 = arith.cmpf oge, %6, %7 : vector<2x32x32xf32>
    %cst_8 = arith.constant 2.000000e-01 : f32
    %9 = vector.broadcast %cst_8 : f32 to vector<2x32x32xf32>
    %10 = arith.mulf %9, %6 : vector<2x32x32xf32>
    %11 = arith.select %8, %6, %10 : vector<2x32x32xi1>, vector<2x32x32xf32>
    %c0_9 = arith.constant 0 : index
    %c0_10 = arith.constant 0 : index
    %c0_11 = arith.constant 0 : index
    %12 = vector.load %arg4[%c0_9, %c0_10, %c0_11] : memref<2x32x32xf32, #tpu.memory_space<vmem>>, vector<2x32x32xf32>
    tpu.vector_store %arg4[%c0_9, %c0_10, %c0_11], %11 {strides = array<i32>} : memref<2x32x32xf32, #tpu.memory_space<vmem>>, vector<2x32x32xf32>,
    return
  }
  func.func @transform_0(%arg0: i32) -> (i32, i32, i32) {
    %c0_i32 = arith.constant 0 : i32
    %c0_i32_0 = arith.constant 0 : i32
    %c0_i32_1 = arith.constant 0 : i32
    return %arg0, %c0_i32, %c0_i32_0 : i32, i32, i32
  }
  func.func @transform_1(%arg0: i32) -> (i32, i32, i32) {
    %c0_i32 = arith.constant 0 : i32
    %c0_i32_0 = arith.constant 0 : i32
    %c0_i32_1 = arith.constant 0 : i32
    %c0_i32_2 = arith.constant 0 : i32
    return %c0_i32, %c0_i32_0, %c0_i32_1 : i32, i32, i32
  }
  func.func @transform_2(%arg0: i32) -> (i32, i32, i32) {
    %c0_i32 = arith.constant 0 : i32
    %c0_i32_0 = arith.constant 0 : i32
    %c0_i32_1 = arith.constant 0 : i32
    %c0_i32_2 = arith.constant 0 : i32
    return %c0_i32, %c0_i32_0, %c0_i32_1 : i32, i32, i32
  }
  func.func @transform_3(%arg0: i32) -> (i32, i32, i32) {
    %c0_i32 = arith.constant 0 : i32
    %c0_i32_0 = arith.constant 0 : i32
    %c0_i32_1 = arith.constant 0 : i32
    return %arg0, %c0_i32, %c0_i32_0 : i32, i32, i32
  }
}

module attributes {stable_mosaic.version = 11 : i64} {
  func.func @_conv_kernel(%arg0: i32, %arg1: memref<2x8x16x36xbf16, #tpu.memory_space<vmem>>, %arg2: memref<32x256xbf16, #tpu.memory_space<vmem>>, %arg3: memref<2x32x32xf32, #tpu.memory_space<vmem>>, %arg4: memref<1x2x32xf32, #tpu.memory_space<vmem>>, %arg5: memref<256x64xbf16, #tpu.memory_space<vmem>>) attributes {dimension_semantics = [#tpu.dimension_semantics<parallel>], iteration_bounds = array<i64: 2>, scalar_prefetch = 0 : i64, scratch_operands = 1 : i64, tpu.core_type = #tpu.core_type<tc>, window_params = [{transform_indices = @transform_0, window_bounds = array<i64: 2, 8, 16, 36>}, {pipeline_mode = #tpu.pipeline_mode<synchronous>, transform_indices = @transform_1, window_bounds = array<i64: 32, 256>}, {transform_indices = @transform_2, window_bounds = array<i64: 2, 32, 32>}, {transform_indices = @transform_3, window_bounds = array<i64: 1, 2, 32>}]} {
    %c0 = arith.constant 0 : index
    %c0_0 = arith.constant 0 : index
    %c0_1 = arith.constant 0 : index
    %c0_2 = arith.constant 0 : index
    %0 = vector.load %arg1[%c0, %c0_0, %c0_1, %c0_2] : memref<2x8x16x36xbf16, #tpu.memory_space<vmem>>, vector<1x1x16x32xbf16>
    %1 = vector.shape_cast %0 : vector<1x1x16x32xbf16> to vector<16x32xbf16>
    %c0_3 = arith.constant 0 : index
    %c0_4 = arith.constant 0 : index
    %2 = vector.load %arg5[%c0_3, %c0_4] : memref<256x64xbf16, #tpu.memory_space<vmem>>, vector<16x32xbf16>
    tpu.vector_store %arg5[%c0_3, %c0_4], %1 {strides = array<i32>} : memref<256x64xbf16, #tpu.memory_space<vmem>>, vector<16x32xbf16>,
    %c0_5 = arith.constant 0 : index
    %c2 = arith.constant 2 : index
    %c0_6 = arith.constant 0 : index
    %c0_7 = arith.constant 0 : index
    %3 = vector.load %arg1[%c0_5, %c2, %c0_6, %c0_7] : memref<2x8x16x36xbf16, #tpu.memory_space<vmem>>, vector<1x1x16x32xbf16>
    %4 = vector.shape_cast %3 : vector<1x1x16x32xbf16> to vector<16x32xbf16>
    %c16 = arith.constant 16 : index
    %c0_8 = arith.constant 0 : index
    %5 = vector.load %arg5[%c16, %c0_8] : memref<256x64xbf16, #tpu.memory_space<vmem>>, vector<16x32xbf16>
    tpu.vector_store %arg5[%c16, %c0_8], %4 {strides = array<i32>} : memref<256x64xbf16, #tpu.memory_space<vmem>>, vector<16x32xbf16>,
    %c0_9 = arith.constant 0 : index
    %c4 = arith.constant 4 : index
    %c0_10 = arith.constant 0 : index
    %c0_11 = arith.constant 0 : index
    %6 = vector.load %arg1[%c0_9, %c4, %c0_10, %c0_11] : memref<2x8x16x36xbf16, #tpu.memory_space<vmem>>, vector<1x1x16x32xbf16>
    %7 = vector.shape_cast %6 : vector<1x1x16x32xbf16> to vector<16x32xbf16>
    %c32 = arith.constant 32 : index
    %c0_12 = arith.constant 0 : index
    %8 = vector.load %arg5[%c32, %c0_12] : memref<256x64xbf16, #tpu.memory_space<vmem>>, vector<16x32xbf16>
    tpu.vector_store %arg5[%c32, %c0_12], %7 {strides = array<i32>} : memref<256x64xbf16, #tpu.memory_space<vmem>>, vector<16x32xbf16>,
    %c0_13 = arith.constant 0 : index
    %c6 = arith.constant 6 : index
    %c0_14 = arith.constant 0 : index
    %c0_15 = arith.constant 0 : index
    %9 = vector.load %arg1[%c0_13, %c6, %c0_14, %c0_15] : memref<2x8x16x36xbf16, #tpu.memory_space<vmem>>, vector<1x1x16x32xbf16>
    %10 = vector.shape_cast %9 : vector<1x1x16x32xbf16> to vector<16x32xbf16>
    %c48 = arith.constant 48 : index
    %c0_16 = arith.constant 0 : index
    %11 = vector.load %arg5[%c48, %c0_16] : memref<256x64xbf16, #tpu.memory_space<vmem>>, vector<16x32xbf16>
    tpu.vector_store %arg5[%c48, %c0_16], %10 {strides = array<i32>} : memref<256x64xbf16, #tpu.memory_space<vmem>>, vector<16x32xbf16>,
    %c0_17 = arith.constant 0 : index
    %c1 = arith.constant 1 : index
    %c0_18 = arith.constant 0 : index
    %c0_19 = arith.constant 0 : index
    %12 = vector.load %arg1[%c0_17, %c1, %c0_18, %c0_19] : memref<2x8x16x36xbf16, #tpu.memory_space<vmem>>, vector<1x1x16x32xbf16>
    %13 = vector.shape_cast %12 : vector<1x1x16x32xbf16> to vector<16x32xbf16>
    %c64 = arith.constant 64 : index
    %c0_20 = arith.constant 0 : index
    %14 = vector.load %arg5[%c64, %c0_20] : memref<256x64xbf16, #tpu.memory_space<vmem>>, vector<16x32xbf16>
    tpu.vector_store %arg5[%c64, %c0_20], %13 {strides = array<i32>} : memref<256x64xbf16, #tpu.memory_space<vmem>>, vector<16x32xbf16>,
    %c0_21 = arith.constant 0 : index
    %c3 = arith.constant 3 : index
    %c0_22 = arith.constant 0 : index
    %c0_23 = arith.constant 0 : index
    %15 = vector.load %arg1[%c0_21, %c3, %c0_22, %c0_23] : memref<2x8x16x36xbf16, #tpu.memory_space<vmem>>, vector<1x1x16x32xbf16>
    %16 = vector.shape_cast %15 : vector<1x1x16x32xbf16> to vector<16x32xbf16>
    %c80 = arith.constant 80 : index
    %c0_24 = arith.constant 0 : index
    %17 = vector.load %arg5[%c80, %c0_24] : memref<256x64xbf16, #tpu.memory_space<vmem>>, vector<16x32xbf16>
    tpu.vector_store %arg5[%c80, %c0_24], %16 {strides = array<i32>} : memref<256x64xbf16, #tpu.memory_space<vmem>>, vector<16x32xbf16>,
    %c0_25 = arith.constant 0 : index
    %c5 = arith.constant 5 : index
    %c0_26 = arith.constant 0 : index
    %c0_27 = arith.constant 0 : index
    %18 = vector.load %arg1[%c0_25, %c5, %c0_26, %c0_27] : memref<2x8x16x36xbf16, #tpu.memory_space<vmem>>, vector<1x1x16x32xbf16>
    %19 = vector.shape_cast %18 : vector<1x1x16x32xbf16> to vector<16x32xbf16>
    %c96 = arith.constant 96 : index
    %c0_28 = arith.constant 0 : index
    %20 = vector.load %arg5[%c96, %c0_28] : memref<256x64xbf16, #tpu.memory_space<vmem>>, vector<16x32xbf16>
    tpu.vector_store %arg5[%c96, %c0_28], %19 {strides = array<i32>} : memref<256x64xbf16, #tpu.memory_space<vmem>>, vector<16x32xbf16>,
    %c0_29 = arith.constant 0 : index
    %c7 = arith.constant 7 : index
    %c0_30 = arith.constant 0 : index
    %c0_31 = arith.constant 0 : index
    %21 = vector.load %arg1[%c0_29, %c7, %c0_30, %c0_31] : memref<2x8x16x36xbf16, #tpu.memory_space<vmem>>, vector<1x1x16x32xbf16>
    %22 = vector.shape_cast %21 : vector<1x1x16x32xbf16> to vector<16x32xbf16>
    %c112 = arith.constant 112 : index
    %c0_32 = arith.constant 0 : index
    %23 = vector.load %arg5[%c112, %c0_32] : memref<256x64xbf16, #tpu.memory_space<vmem>>, vector<16x32xbf16>
    tpu.vector_store %arg5[%c112, %c0_32], %22 {strides = array<i32>} : memref<256x64xbf16, #tpu.memory_space<vmem>>, vector<16x32xbf16>,
    %c0_33 = arith.constant 0 : index
    %c0_34 = arith.constant 0 : index
    %c0_35 = arith.constant 0 : index
    %c4_36 = arith.constant 4 : index
    %24 = vector.load %arg1[%c0_33, %c0_34, %c0_35, %c4_36] : memref<2x8x16x36xbf16, #tpu.memory_space<vmem>>, vector<1x1x16x32xbf16>
    %25 = vector.shape_cast %24 : vector<1x1x16x32xbf16> to vector<16x32xbf16>
    %c128 = arith.constant 128 : index
    %c0_37 = arith.constant 0 : index
    %26 = vector.load %arg5[%c128, %c0_37] : memref<256x64xbf16, #tpu.memory_space<vmem>>, vector<16x32xbf16>
    tpu.vector_store %arg5[%c128, %c0_37], %25 {strides = array<i32>} : memref<256x64xbf16, #tpu.memory_space<vmem>>, vector<16x32xbf16>,
    %c0_38 = arith.constant 0 : index
    %c2_39 = arith.constant 2 : index
    %c0_40 = arith.constant 0 : index
    %c4_41 = arith.constant 4 : index
    %27 = vector.load %arg1[%c0_38, %c2_39, %c0_40, %c4_41] : memref<2x8x16x36xbf16, #tpu.memory_space<vmem>>, vector<1x1x16x32xbf16>
    %28 = vector.shape_cast %27 : vector<1x1x16x32xbf16> to vector<16x32xbf16>
    %c144 = arith.constant 144 : index
    %c0_42 = arith.constant 0 : index
    %29 = vector.load %arg5[%c144, %c0_42] : memref<256x64xbf16, #tpu.memory_space<vmem>>, vector<16x32xbf16>
    tpu.vector_store %arg5[%c144, %c0_42], %28 {strides = array<i32>} : memref<256x64xbf16, #tpu.memory_space<vmem>>, vector<16x32xbf16>,
    %c0_43 = arith.constant 0 : index
    %c4_44 = arith.constant 4 : index
    %c0_45 = arith.constant 0 : index
    %c4_46 = arith.constant 4 : index
    %30 = vector.load %arg1[%c0_43, %c4_44, %c0_45, %c4_46] : memref<2x8x16x36xbf16, #tpu.memory_space<vmem>>, vector<1x1x16x32xbf16>
    %31 = vector.shape_cast %30 : vector<1x1x16x32xbf16> to vector<16x32xbf16>
    %c160 = arith.constant 160 : index
    %c0_47 = arith.constant 0 : index
    %32 = vector.load %arg5[%c160, %c0_47] : memref<256x64xbf16, #tpu.memory_space<vmem>>, vector<16x32xbf16>
    tpu.vector_store %arg5[%c160, %c0_47], %31 {strides = array<i32>} : memref<256x64xbf16, #tpu.memory_space<vmem>>, vector<16x32xbf16>,
    %c0_48 = arith.constant 0 : index
    %c6_49 = arith.constant 6 : index
    %c0_50 = arith.constant 0 : index
    %c4_51 = arith.constant 4 : index
    %33 = vector.load %arg1[%c0_48, %c6_49, %c0_50, %c4_51] : memref<2x8x16x36xbf16, #tpu.memory_space<vmem>>, vector<1x1x16x32xbf16>
    %34 = vector.shape_cast %33 : vector<1x1x16x32xbf16> to vector<16x32xbf16>
    %c176 = arith.constant 176 : index
    %c0_52 = arith.constant 0 : index
    %35 = vector.load %arg5[%c176, %c0_52] : memref<256x64xbf16, #tpu.memory_space<vmem>>, vector<16x32xbf16>
    tpu.vector_store %arg5[%c176, %c0_52], %34 {strides = array<i32>} : memref<256x64xbf16, #tpu.memory_space<vmem>>, vector<16x32xbf16>,
    %c0_53 = arith.constant 0 : index
    %c1_54 = arith.constant 1 : index
    %c0_55 = arith.constant 0 : index
    %c4_56 = arith.constant 4 : index
    %36 = vector.load %arg1[%c0_53, %c1_54, %c0_55, %c4_56] : memref<2x8x16x36xbf16, #tpu.memory_space<vmem>>, vector<1x1x16x32xbf16>
    %37 = vector.shape_cast %36 : vector<1x1x16x32xbf16> to vector<16x32xbf16>
    %c192 = arith.constant 192 : index
    %c0_57 = arith.constant 0 : index
    %38 = vector.load %arg5[%c192, %c0_57] : memref<256x64xbf16, #tpu.memory_space<vmem>>, vector<16x32xbf16>
    tpu.vector_store %arg5[%c192, %c0_57], %37 {strides = array<i32>} : memref<256x64xbf16, #tpu.memory_space<vmem>>, vector<16x32xbf16>,
    %c0_58 = arith.constant 0 : index
    %c3_59 = arith.constant 3 : index
    %c0_60 = arith.constant 0 : index
    %c4_61 = arith.constant 4 : index
    %39 = vector.load %arg1[%c0_58, %c3_59, %c0_60, %c4_61] : memref<2x8x16x36xbf16, #tpu.memory_space<vmem>>, vector<1x1x16x32xbf16>
    %40 = vector.shape_cast %39 : vector<1x1x16x32xbf16> to vector<16x32xbf16>
    %c208 = arith.constant 208 : index
    %c0_62 = arith.constant 0 : index
    %41 = vector.load %arg5[%c208, %c0_62] : memref<256x64xbf16, #tpu.memory_space<vmem>>, vector<16x32xbf16>
    tpu.vector_store %arg5[%c208, %c0_62], %40 {strides = array<i32>} : memref<256x64xbf16, #tpu.memory_space<vmem>>, vector<16x32xbf16>,
    %c0_63 = arith.constant 0 : index
    %c5_64 = arith.constant 5 : index
    %c0_65 = arith.constant 0 : index
    %c4_66 = arith.constant 4 : index
    %42 = vector.load %arg1[%c0_63, %c5_64, %c0_65, %c4_66] : memref<2x8x16x36xbf16, #tpu.memory_space<vmem>>, vector<1x1x16x32xbf16>
    %43 = vector.shape_cast %42 : vector<1x1x16x32xbf16> to vector<16x32xbf16>
    %c224 = arith.constant 224 : index
    %c0_67 = arith.constant 0 : index
    %44 = vector.load %arg5[%c224, %c0_67] : memref<256x64xbf16, #tpu.memory_space<vmem>>, vector<16x32xbf16>
    tpu.vector_store %arg5[%c224, %c0_67], %43 {strides = array<i32>} : memref<256x64xbf16, #tpu.memory_space<vmem>>, vector<16x32xbf16>,
    %c0_68 = arith.constant 0 : index
    %c7_69 = arith.constant 7 : index
    %c0_70 = arith.constant 0 : index
    %c4_71 = arith.constant 4 : index
    %45 = vector.load %arg1[%c0_68, %c7_69, %c0_70, %c4_71] : memref<2x8x16x36xbf16, #tpu.memory_space<vmem>>, vector<1x1x16x32xbf16>
    %46 = vector.shape_cast %45 : vector<1x1x16x32xbf16> to vector<16x32xbf16>
    %c240 = arith.constant 240 : index
    %c0_72 = arith.constant 0 : index
    %47 = vector.load %arg5[%c240, %c0_72] : memref<256x64xbf16, #tpu.memory_space<vmem>>, vector<16x32xbf16>
    tpu.vector_store %arg5[%c240, %c0_72], %46 {strides = array<i32>} : memref<256x64xbf16, #tpu.memory_space<vmem>>, vector<16x32xbf16>,
    %c1_73 = arith.constant 1 : index
    %c0_74 = arith.constant 0 : index
    %c0_75 = arith.constant 0 : index
    %c0_76 = arith.constant 0 : index
    %48 = vector.load %arg1[%c1_73, %c0_74, %c0_75, %c0_76] : memref<2x8x16x36xbf16, #tpu.memory_space<vmem>>, vector<1x1x16x32xbf16>
    %49 = vector.shape_cast %48 : vector<1x1x16x32xbf16> to vector<16x32xbf16>
    %c0_77 = arith.constant 0 : index
    %c32_78 = arith.constant 32 : index
    %50 = vector.load %arg5[%c0_77, %c32_78] : memref<256x64xbf16, #tpu.memory_space<vmem>>, vector<16x32xbf16>
    tpu.vector_store %arg5[%c0_77, %c32_78], %49 {strides = array<i32>} : memref<256x64xbf16, #tpu.memory_space<vmem>>, vector<16x32xbf16>,
    %c1_79 = arith.constant 1 : index
    %c2_80 = arith.constant 2 : index
    %c0_81 = arith.constant 0 : index
    %c0_82 = arith.constant 0 : index
    %51 = vector.load %arg1[%c1_79, %c2_80, %c0_81, %c0_82] : memref<2x8x16x36xbf16, #tpu.memory_space<vmem>>, vector<1x1x16x32xbf16>
    %52 = vector.shape_cast %51 : vector<1x1x16x32xbf16> to vector<16x32xbf16>
    %c16_83 = arith.constant 16 : index
    %c32_84 = arith.constant 32 : index
    %53 = vector.load %arg5[%c16_83, %c32_84] : memref<256x64xbf16, #tpu.memory_space<vmem>>, vector<16x32xbf16>
    tpu.vector_store %arg5[%c16_83, %c32_84], %52 {strides = array<i32>} : memref<256x64xbf16, #tpu.memory_space<vmem>>, vector<16x32xbf16>,
    %c1_85 = arith.constant 1 : index
    %c4_86 = arith.constant 4 : index
    %c0_87 = arith.constant 0 : index
    %c0_88 = arith.constant 0 : index
    %54 = vector.load %arg1[%c1_85, %c4_86, %c0_87, %c0_88] : memref<2x8x16x36xbf16, #tpu.memory_space<vmem>>, vector<1x1x16x32xbf16>
    %55 = vector.shape_cast %54 : vector<1x1x16x32xbf16> to vector<16x32xbf16>
    %c32_89 = arith.constant 32 : index
    %c32_90 = arith.constant 32 : index
    %56 = vector.load %arg5[%c32_89, %c32_90] : memref<256x64xbf16, #tpu.memory_space<vmem>>, vector<16x32xbf16>
    tpu.vector_store %arg5[%c32_89, %c32_90], %55 {strides = array<i32>} : memref<256x64xbf16, #tpu.memory_space<vmem>>, vector<16x32xbf16>,
    %c1_91 = arith.constant 1 : index
    %c6_92 = arith.constant 6 : index
    %c0_93 = arith.constant 0 : index
    %c0_94 = arith.constant 0 : index
    %57 = vector.load %arg1[%c1_91, %c6_92, %c0_93, %c0_94] : memref<2x8x16x36xbf16, #tpu.memory_space<vmem>>, vector<1x1x16x32xbf16>
    %58 = vector.shape_cast %57 : vector<1x1x16x32xbf16> to vector<16x32xbf16>
    %c48_95 = arith.constant 48 : index
    %c32_96 = arith.constant 32 : index
    %59 = vector.load %arg5[%c48_95, %c32_96] : memref<256x64xbf16, #tpu.memory_space<vmem>>, vector<16x32xbf16>
    tpu.vector_store %arg5[%c48_95, %c32_96], %58 {strides = array<i32>} : memref<256x64xbf16, #tpu.memory_space<vmem>>, vector<16x32xbf16>,
    %c1_97 = arith.constant 1 : index
    %c1_98 = arith.constant 1 : index
    %c0_99 = arith.constant 0 : index
    %c0_100 = arith.constant 0 : index
    %60 = vector.load %arg1[%c1_97, %c1_98, %c0_99, %c0_100] : memref<2x8x16x36xbf16, #tpu.memory_space<vmem>>, vector<1x1x16x32xbf16>
    %61 = vector.shape_cast %60 : vector<1x1x16x32xbf16> to vector<16x32xbf16>
    %c64_101 = arith.constant 64 : index
    %c32_102 = arith.constant 32 : index
    %62 = vector.load %arg5[%c64_101, %c32_102] : memref<256x64xbf16, #tpu.memory_space<vmem>>, vector<16x32xbf16>
    tpu.vector_store %arg5[%c64_101, %c32_102], %61 {strides = array<i32>} : memref<256x64xbf16, #tpu.memory_space<vmem>>, vector<16x32xbf16>,
    %c1_103 = arith.constant 1 : index
    %c3_104 = arith.constant 3 : index
    %c0_105 = arith.constant 0 : index
    %c0_106 = arith.constant 0 : index
    %63 = vector.load %arg1[%c1_103, %c3_104, %c0_105, %c0_106] : memref<2x8x16x36xbf16, #tpu.memory_space<vmem>>, vector<1x1x16x32xbf16>
    %64 = vector.shape_cast %63 : vector<1x1x16x32xbf16> to vector<16x32xbf16>
    %c80_107 = arith.constant 80 : index
    %c32_108 = arith.constant 32 : index
    %65 = vector.load %arg5[%c80_107, %c32_108] : memref<256x64xbf16, #tpu.memory_space<vmem>>, vector<16x32xbf16>
    tpu.vector_store %arg5[%c80_107, %c32_108], %64 {strides = array<i32>} : memref<256x64xbf16, #tpu.memory_space<vmem>>, vector<16x32xbf16>,
    %c1_109 = arith.constant 1 : index
    %c5_110 = arith.constant 5 : index
    %c0_111 = arith.constant 0 : index
    %c0_112 = arith.constant 0 : index
    %66 = vector.load %arg1[%c1_109, %c5_110, %c0_111, %c0_112] : memref<2x8x16x36xbf16, #tpu.memory_space<vmem>>, vector<1x1x16x32xbf16>
    %67 = vector.shape_cast %66 : vector<1x1x16x32xbf16> to vector<16x32xbf16>
    %c96_113 = arith.constant 96 : index
    %c32_114 = arith.constant 32 : index
    %68 = vector.load %arg5[%c96_113, %c32_114] : memref<256x64xbf16, #tpu.memory_space<vmem>>, vector<16x32xbf16>
    tpu.vector_store %arg5[%c96_113, %c32_114], %67 {strides = array<i32>} : memref<256x64xbf16, #tpu.memory_space<vmem>>, vector<16x32xbf16>,
    %c1_115 = arith.constant 1 : index
    %c7_116 = arith.constant 7 : index
    %c0_117 = arith.constant 0 : index
    %c0_118 = arith.constant 0 : index
    %69 = vector.load %arg1[%c1_115, %c7_116, %c0_117, %c0_118] : memref<2x8x16x36xbf16, #tpu.memory_space<vmem>>, vector<1x1x16x32xbf16>
    %70 = vector.shape_cast %69 : vector<1x1x16x32xbf16> to vector<16x32xbf16>
    %c112_119 = arith.constant 112 : index
    %c32_120 = arith.constant 32 : index
    %71 = vector.load %arg5[%c112_119, %c32_120] : memref<256x64xbf16, #tpu.memory_space<vmem>>, vector<16x32xbf16>
    tpu.vector_store %arg5[%c112_119, %c32_120], %70 {strides = array<i32>} : memref<256x64xbf16, #tpu.memory_space<vmem>>, vector<16x32xbf16>,
    %c1_121 = arith.constant 1 : index
    %c0_122 = arith.constant 0 : index
    %c0_123 = arith.constant 0 : index
    %c4_124 = arith.constant 4 : index
    %72 = vector.load %arg1[%c1_121, %c0_122, %c0_123, %c4_124] : memref<2x8x16x36xbf16, #tpu.memory_space<vmem>>, vector<1x1x16x32xbf16>
    %73 = vector.shape_cast %72 : vector<1x1x16x32xbf16> to vector<16x32xbf16>
    %c128_125 = arith.constant 128 : index
    %c32_126 = arith.constant 32 : index
    %74 = vector.load %arg5[%c128_125, %c32_126] : memref<256x64xbf16, #tpu.memory_space<vmem>>, vector<16x32xbf16>
    tpu.vector_store %arg5[%c128_125, %c32_126], %73 {strides = array<i32>} : memref<256x64xbf16, #tpu.memory_space<vmem>>, vector<16x32xbf16>,
    %c1_127 = arith.constant 1 : index
    %c2_128 = arith.constant 2 : index
    %c0_129 = arith.constant 0 : index
    %c4_130 = arith.constant 4 : index
    %75 = vector.load %arg1[%c1_127, %c2_128, %c0_129, %c4_130] : memref<2x8x16x36xbf16, #tpu.memory_space<vmem>>, vector<1x1x16x32xbf16>
    %76 = vector.shape_cast %75 : vector<1x1x16x32xbf16> to vector<16x32xbf16>
    %c144_131 = arith.constant 144 : index
    %c32_132 = arith.constant 32 : index
    %77 = vector.load %arg5[%c144_131, %c32_132] : memref<256x64xbf16, #tpu.memory_space<vmem>>, vector<16x32xbf16>
    tpu.vector_store %arg5[%c144_131, %c32_132], %76 {strides = array<i32>} : memref<256x64xbf16, #tpu.memory_space<vmem>>, vector<16x32xbf16>,
    %c1_133 = arith.constant 1 : index
    %c4_134 = arith.constant 4 : index
    %c0_135 = arith.constant 0 : index
    %c4_136 = arith.constant 4 : index
    %78 = vector.load %arg1[%c1_133, %c4_134, %c0_135, %c4_136] : memref<2x8x16x36xbf16, #tpu.memory_space<vmem>>, vector<1x1x16x32xbf16>
    %79 = vector.shape_cast %78 : vector<1x1x16x32xbf16> to vector<16x32xbf16>
    %c160_137 = arith.constant 160 : index
    %c32_138 = arith.constant 32 : index
    %80 = vector.load %arg5[%c160_137, %c32_138] : memref<256x64xbf16, #tpu.memory_space<vmem>>, vector<16x32xbf16>
    tpu.vector_store %arg5[%c160_137, %c32_138], %79 {strides = array<i32>} : memref<256x64xbf16, #tpu.memory_space<vmem>>, vector<16x32xbf16>,
    %c1_139 = arith.constant 1 : index
    %c6_140 = arith.constant 6 : index
    %c0_141 = arith.constant 0 : index
    %c4_142 = arith.constant 4 : index
    %81 = vector.load %arg1[%c1_139, %c6_140, %c0_141, %c4_142] : memref<2x8x16x36xbf16, #tpu.memory_space<vmem>>, vector<1x1x16x32xbf16>
    %82 = vector.shape_cast %81 : vector<1x1x16x32xbf16> to vector<16x32xbf16>
    %c176_143 = arith.constant 176 : index
    %c32_144 = arith.constant 32 : index
    %83 = vector.load %arg5[%c176_143, %c32_144] : memref<256x64xbf16, #tpu.memory_space<vmem>>, vector<16x32xbf16>
    tpu.vector_store %arg5[%c176_143, %c32_144], %82 {strides = array<i32>} : memref<256x64xbf16, #tpu.memory_space<vmem>>, vector<16x32xbf16>,
    %c1_145 = arith.constant 1 : index
    %c1_146 = arith.constant 1 : index
    %c0_147 = arith.constant 0 : index
    %c4_148 = arith.constant 4 : index
    %84 = vector.load %arg1[%c1_145, %c1_146, %c0_147, %c4_148] : memref<2x8x16x36xbf16, #tpu.memory_space<vmem>>, vector<1x1x16x32xbf16>
    %85 = vector.shape_cast %84 : vector<1x1x16x32xbf16> to vector<16x32xbf16>
    %c192_149 = arith.constant 192 : index
    %c32_150 = arith.constant 32 : index
    %86 = vector.load %arg5[%c192_149, %c32_150] : memref<256x64xbf16, #tpu.memory_space<vmem>>, vector<16x32xbf16>
    tpu.vector_store %arg5[%c192_149, %c32_150], %85 {strides = array<i32>} : memref<256x64xbf16, #tpu.memory_space<vmem>>, vector<16x32xbf16>,
    %c1_151 = arith.constant 1 : index
    %c3_152 = arith.constant 3 : index
    %c0_153 = arith.constant 0 : index
    %c4_154 = arith.constant 4 : index
    %87 = vector.load %arg1[%c1_151, %c3_152, %c0_153, %c4_154] : memref<2x8x16x36xbf16, #tpu.memory_space<vmem>>, vector<1x1x16x32xbf16>
    %88 = vector.shape_cast %87 : vector<1x1x16x32xbf16> to vector<16x32xbf16>
    %c208_155 = arith.constant 208 : index
    %c32_156 = arith.constant 32 : index
    %89 = vector.load %arg5[%c208_155, %c32_156] : memref<256x64xbf16, #tpu.memory_space<vmem>>, vector<16x32xbf16>
    tpu.vector_store %arg5[%c208_155, %c32_156], %88 {strides = array<i32>} : memref<256x64xbf16, #tpu.memory_space<vmem>>, vector<16x32xbf16>,
    %c1_157 = arith.constant 1 : index
    %c5_158 = arith.constant 5 : index
    %c0_159 = arith.constant 0 : index
    %c4_160 = arith.constant 4 : index
    %90 = vector.load %arg1[%c1_157, %c5_158, %c0_159, %c4_160] : memref<2x8x16x36xbf16, #tpu.memory_space<vmem>>, vector<1x1x16x32xbf16>
    %91 = vector.shape_cast %90 : vector<1x1x16x32xbf16> to vector<16x32xbf16>
    %c224_161 = arith.constant 224 : index
    %c32_162 = arith.constant 32 : index
    %92 = vector.load %arg5[%c224_161, %c32_162] : memref<256x64xbf16, #tpu.memory_space<vmem>>, vector<16x32xbf16>
    tpu.vector_store %arg5[%c224_161, %c32_162], %91 {strides = array<i32>} : memref<256x64xbf16, #tpu.memory_space<vmem>>, vector<16x32xbf16>,
    %c1_163 = arith.constant 1 : index
    %c7_164 = arith.constant 7 : index
    %c0_165 = arith.constant 0 : index
    %c4_166 = arith.constant 4 : index
    %93 = vector.load %arg1[%c1_163, %c7_164, %c0_165, %c4_166] : memref<2x8x16x36xbf16, #tpu.memory_space<vmem>>, vector<1x1x16x32xbf16>
    %94 = vector.shape_cast %93 : vector<1x1x16x32xbf16> to vector<16x32xbf16>
    %c240_167 = arith.constant 240 : index
    %c32_168 = arith.constant 32 : index
    %95 = vector.load %arg5[%c240_167, %c32_168] : memref<256x64xbf16, #tpu.memory_space<vmem>>, vector<16x32xbf16>
    tpu.vector_store %arg5[%c240_167, %c32_168], %94 {strides = array<i32>} : memref<256x64xbf16, #tpu.memory_space<vmem>>, vector<16x32xbf16>,
    %c0_169 = arith.constant 0 : index
    %c0_170 = arith.constant 0 : index
    %96 = vector.load %arg2[%c0_169, %c0_170] : memref<32x256xbf16, #tpu.memory_space<vmem>>, vector<32x256xbf16>
    %c0_171 = arith.constant 0 : index
    %c0_172 = arith.constant 0 : index
    %97 = vector.load %arg5[%c0_171, %c0_172] : memref<256x64xbf16, #tpu.memory_space<vmem>>, vector<256x64xbf16>
    %cst = arith.constant dense<0.000000e+00> : vector<32x64xf32>
    %98 = tpu.matmul %96, %97, %cst {dimension_numbers = #tpu.dot_dimension_numbers<[1], [0], [0], [1], [0, 0, 1, 1], [], []>} : vector<32x256xbf16>, vector<256x64xbf16>, vector<32x64xf32> -> vector<32x64xf32>
    %99 = vector.extract_strided_slice %98 {offsets = [0, 0], sizes = [32, 32], strides = [1, 1]} : vector<32x64xf32> to vector<32x32xf32>
    %c0_173 = arith.constant 0 : index
    %c0_174 = arith.constant 0 : index
    %c0_175 = arith.constant 0 : index
    %100 = vector.load %arg3[%c0_173, %c0_174, %c0_175] : memref<2x32x32xf32, #tpu.memory_space<vmem>>, vector<1x32x32xf32>
    %101 = vector.shape_cast %100 : vector<1x32x32xf32> to vector<32x32xf32>
    %102 = vector.shape_cast %99 : vector<32x32xf32> to vector<1x32x32xf32>
    tpu.vector_store %arg3[%c0_173, %c0_174, %c0_175], %102 {strides = array<i32>} : memref<2x32x32xf32, #tpu.memory_space<vmem>>, vector<1x32x32xf32>,
    %103 = vector.extract_strided_slice %98 {offsets = [0, 32], sizes = [32, 32], strides = [1, 1]} : vector<32x64xf32> to vector<32x32xf32>
    %c1_176 = arith.constant 1 : index
    %c0_177 = arith.constant 0 : index
    %c0_178 = arith.constant 0 : index
    %104 = vector.load %arg3[%c1_176, %c0_177, %c0_178] : memref<2x32x32xf32, #tpu.memory_space<vmem>>, vector<1x32x32xf32>
    %105 = vector.shape_cast %104 : vector<1x32x32xf32> to vector<32x32xf32>
    %106 = vector.shape_cast %103 : vector<32x32xf32> to vector<1x32x32xf32>
    tpu.vector_store %arg3[%c1_176, %c0_177, %c0_178], %106 {strides = array<i32>} : memref<2x32x32xf32, #tpu.memory_space<vmem>>, vector<1x32x32xf32>,
    %cst_179 = arith.constant dense<0.000000e+00> : vector<32xf32>
    %107 = vector.multi_reduction <add>, %98, %cst_179 [1] : vector<32x64xf32> to vector<32xf32>
    %108 = vector.shape_cast %107 : vector<32xf32> to vector<1x32xf32>
    %c0_180 = arith.constant 0 : index
    %c0_181 = arith.constant 0 : index
    %c0_182 = arith.constant 0 : index
    %109 = vector.load %arg4[%c0_180, %c0_181, %c0_182] : memref<1x2x32xf32, #tpu.memory_space<vmem>>, vector<1x1x32xf32>
    %110 = vector.shape_cast %109 : vector<1x1x32xf32> to vector<1x32xf32>
    %111 = vector.shape_cast %108 : vector<1x32xf32> to vector<1x1x32xf32>
    tpu.vector_store %arg4[%c0_180, %c0_181, %c0_182], %111 {strides = array<i32>} : memref<1x2x32xf32, #tpu.memory_space<vmem>>, vector<1x1x32xf32>,
    %112 = arith.mulf %98, %98 : vector<32x64xf32>
    %cst_183 = arith.constant dense<0.000000e+00> : vector<32xf32>
    %113 = vector.multi_reduction <add>, %112, %cst_183 [1] : vector<32x64xf32> to vector<32xf32>
    %114 = vector.shape_cast %113 : vector<32xf32> to vector<1x32xf32>
    %c0_184 = arith.constant 0 : index
    %c1_185 = arith.constant 1 : index
    %c0_186 = arith.constant 0 : index
    %115 = vector.load %arg4[%c0_184, %c1_185, %c0_186] : memref<1x2x32xf32, #tpu.memory_space<vmem>>, vector<1x1x32xf32>
    %116 = vector.shape_cast %115 : vector<1x1x32xf32> to vector<1x32xf32>
    %117 = vector.shape_cast %114 : vector<1x32xf32> to vector<1x1x32xf32>
    tpu.vector_store %arg4[%c0_184, %c1_185, %c0_186], %117 {strides = array<i32>} : memref<1x2x32xf32, #tpu.memory_space<vmem>>, vector<1x1x32xf32>,
    return
  }
  func.func @transform_0(%arg0: i32) -> (i32, i32, i32, i32) {
    %c0_i32 = arith.constant 0 : i32
    %c0_i32_0 = arith.constant 0 : i32
    %c0_i32_1 = arith.constant 0 : i32
    %c0_i32_2 = arith.constant 0 : i32
    return %arg0, %c0_i32, %c0_i32_0, %c0_i32_1 : i32, i32, i32, i32
  }
  func.func @transform_1(%arg0: i32) -> (i32, i32) {
    %c0_i32 = arith.constant 0 : i32
    %c0_i32_0 = arith.constant 0 : i32
    %c0_i32_1 = arith.constant 0 : i32
    return %c0_i32, %c0_i32_0 : i32, i32
  }
  func.func @transform_2(%arg0: i32) -> (i32, i32, i32) {
    %c0_i32 = arith.constant 0 : i32
    %c0_i32_0 = arith.constant 0 : i32
    %c0_i32_1 = arith.constant 0 : i32
    return %arg0, %c0_i32, %c0_i32_0 : i32, i32, i32
  }
  func.func @transform_3(%arg0: i32) -> (i32, i32, i32) {
    %c0_i32 = arith.constant 0 : i32
    %c0_i32_0 = arith.constant 0 : i32
    %c0_i32_1 = arith.constant 0 : i32
    return %arg0, %c0_i32, %c0_i32_0 : i32, i32, i32
  }
}

</mosaic_0001>

<bundles_post_ra>
// kernel: discriminator_recon.4
= control target key start
LH: loop header
LB: loop body
LE: loop exit
PB: predicated region body
PF: predicated region fallthrough
CT: control target
= control target key end

     0   :  { %s3953_s9 = smov 0   ;;  %s5244_s0 = inlined_call_operand.vmem [shape: bf16[4,5,1,576], index: 0, kind: input, shape index: {}]   ;;  %s5245_s1 = inlined_call_operand.vmem [shape: bf16[8,25], index: 1, kind: input, shape index: {}]   ;;  %s5246_s2 = inlined_call_operand.vmem [shape: bf16[4,8,512], index: 2, kind: output, shape index: {}]  }
   0x1 LB: > { %s3604_s10 = sadd.s32 4294967295, %s3929_s9   ;;  %p3608_p0 = scmp.ge.s32.totalorder %s3929_s9, 1  ;;  %s3929_s9 = sphi %s3953_s9, %s12_s9  }
   0x2   : > { %p113_p1 = scmp.lt.s32.totalorder %s3929_s9, 3 }
   0x4   : > { %p114_p2 = pnand %p3608_p0, %p113_p1 }
   0x5   : > { %s3609_s11 = sshll.u32 (!%p114_p2), %s3604_s10, 1  ;;  %s3932_s16 = smov (!%p114_p2), 80  }
   0x6   : > { %117 = sbr.rel (%p114_p2) target bundleno = 538 (0x21a), region = 28  ;;  %p137_p3 = scmp.lt.s32.totalorder (!%p114_p2), %s3609_s11, 3 }
   0x7   : > { %s3933_s17 = smov (!%p114_p2), 64   ;;  %s3934_s18 = smov (!%p114_p2), 112  }
   0x8   : > { %s3935_s19 = smov (!%p114_p2), 96  }
   0xb   : > { %v163_v0 = vlaneseq  ;;  %v3931_v1 = vmov 1935823168   ;;  %s5323_s11 = smov (!%p137_p3, %s3609_s11), 3  ;;  %vm347_vm0 = vcmask 1042434   ;;  %vm348_vm1 = vsmask.f32 2304 }
   0xc   : > { %v161_v2 = vunpack.c.l.s4 %v3931_v1  ;;  %s3699_s12 = smul.u32 25, %s5323_s11  ;;  %vm350_vm2 = vcmask 1046534   ;;  %vm351_vm3 = vsmask.f32 6400  ;;  %vm5247_vm4 = vcmask 1040384   ;;  %vm4366_vm13 = vmand %vm347_vm0, %vm348_vm1  ;;  %s3694_s22 = sshll.u32 %s5323_s11, 4 }
   0xd   : > { %v164_v3 = vshrl.u32 %v163_v0, 7  ;;  %vm177_vm5 = vsmask.f32 256  ;;  %vm5248_vm6 = vcmask 1041409   ;;  %vm261_vm7 = vsmask.f32 1280  ;;  %vm4379_vm15 = vmand %vm350_vm2, %vm351_vm3  ;;  %s5235_s25 = scalar_lea.vmem %s5246_s2, %s3694_s22 }
   0xe   : > { %v162_v4 = vunpack.c.0.s8 %v161_v2  ;;  %s3969_s15 = scalar_lea.vmem %s5244_s0, %s3699_s12  ;;  %vm179_vm8 = vcmask 1044484   ;;  %vm180_vm9 = vsmask.f32 4352  ;;  %vm5249_vm10 = vcmask 1043459   ;;  %vm4388_vm1 = vmand %vm5247_vm4, %vm177_vm5 }
   0xf   : > { %v3629_v6 = vld [vmem:[%s3969_s15 + $0x5] sm:$0x1f]  ;;  %v3631_v7 = vld [vmem:[%s3969_s15 + $0xf] sm:$0x1f]  ;;  %v1375_v8 = vld [vmem:[%s3969_s15] sm:$0x1f] }
  0x10   : > { %v3964_v5 = vsub.s32 %v162_v4, %v164_v3  ;;  %v1115_v10 = vcombine.high %v3629_v6, %v3629_v6  ;;  %v1244_v11 = vcombine.high %v3631_v7, %v3631_v7  ;;  %v1377_v15 = vcombine.low %v1375_v8, %v1375_v8  ;;  %v3634_v18 = vld [vmem:[%s3969_s15 + $0xa] sm:$0x1f]  ;;  %v3621_v27 = vld [vmem:[%s3969_s15 + $0x5] sm:$0x1f]  ;;  %v3623_v44 = vld [vmem:[%s3969_s15 + $0xf] sm:$0x1f] }
  0x11   : > { %v1510_v25 = vcombine.low %v3634_v18, %v3634_v18  ;;  %v441_v33 = vcombine.low %v3621_v27, %v3621_v27  ;;  %v713_v49 = vld [vmem:[%s3969_s15] sm:$0x1f]  ;;  %v586_v51 = vcombine.high %v3623_v44, %v3623_v44  ;;  %v3626_v56 = vld [vmem:[%s3969_s15 + $0xa] sm:$0x1f]  ;;  %v3628_v63 = vld [vmem:[%s3969_s15 + $0x14] sm:$0x1f] }
  0x12   : > { %v1122_v9 = vrot.slane %v3629_v6, %v3964_v5  ;;  %v1251_v12 = vrot.slane %v3631_v7, %v3964_v5  ;;  %v1129_v14 = vrot.slane %v1115_v10, %v3964_v5  ;;  %v1258_v17 = vrot.slane %v1244_v11, %v3964_v5  ;;  %v3657_v10 = vld [vmem:[%s3969_s15 + $0x1e] sm:$0x1f]  ;;  %vm4400_vm3 = vmand %vm5248_vm6, %vm261_vm7 }
  0x13   : > { %v1384_v24 = vrot.slane %v1377_v15, %v3964_v5  ;;  %v1517_v30 = vrot.slane %v1510_v25, %v3964_v5  ;;  %v1391_v32 = vrot.slane %v1375_v8, %v3964_v5  ;;  %v1524_v36 = vrot.slane %v3634_v18, %v3964_v5  ;;  %v3659_v15 = vld [vmem:[%s3969_s15 + $0x28] sm:$0x1f]  ;;  %vm4406_vm5 = vmand %vm179_vm8, %vm180_vm9 }
  0x14   : > { %v1137_v13 = vrot.slane %v1122_v9, %v3964_v5  ;;  %v1259_v16 = vcombine.low %v1251_v12, %v1251_v12  ;;  %v1130_v19 = vcombine.high %v1122_v9, %v1122_v9  ;;  %v1151_v20 = vrot.slane %v1129_v14, %v3964_v5  ;;  %v3633_v25 = vld [vmem:[%s3969_s15 + $0x5] sm:$0x1f]  ;;  %vm4418_vm7 = vmor %vm4379_vm15, %vm4366_vm13 }
  0x15   : > { %v1274_v21 = vrot.slane %v1251_v12, %v3964_v5  ;;  %v1260_v23 = vcombine.low %v1258_v17, %v1258_v17  ;;  %v1392_v29 = vcombine.high %v1384_v24, %v1384_v24  ;;  %v1399_v31 = vrot.slane %v1384_v24, %v3964_v5  ;;  %v3661_v24 = vld [vmem:[%s3969_s15 + $0x19] sm:$0x1f] }
  0x16   : > { %1152 = vrot.lane.b32.xlu0 %v1137_v13, %s3932_s16  ;;  %1156 = vrot.lane.b32.xlu1 %v1151_v20, %s3932_s16  ;;  %v1267_v22 = vrot.slane %v1259_v16, %v3964_v5  ;;  %v1144_v26 = vrot.slane %v1130_v19, %v3964_v5  ;;  %v1525_v35 = vcombine.low %v1517_v30, %v1517_v30  ;;  %vm264_vm12 = vsmask.f32 5376 }
  0x17   : > { %v1281_v28 = vrot.slane %v1260_v23, %v3964_v5  ;;  %v1406_v34 = vrot.slane %v1392_v29, %v3964_v5  ;;  %v1413_v37 = vrot.slane %v1391_v32, %v3964_v5  ;;  %v448_v38 = vrot.slane %v441_v33, %v3964_v5 }
  0x18   : > { %v1533_v39 = vrot.slane %v1525_v35, %v3964_v5  ;;  %v1526_v40 = vcombine.low %v1524_v36, %v1524_v36  ;;  %v1540_v41 = vrot.slane %v1517_v30, %v3964_v5  ;;  %v455_v43 = vrot.slane %v3621_v27, %v3964_v5 }
  0x19   : > { %v456_v42 = vcombine.low %v448_v38, %v448_v38  ;;  %v593_v48 = vrot.slane %v3623_v44, %v3964_v5  ;;  %v471_v50 = vrot.slane %v448_v38, %v3964_v5  ;;  %v722_v54 = vrot.slane %v713_v49, %v3964_v5 }
  0x1a   : > { %1284 = vrot.lane.b32.xlu0 %v1274_v21, %s3932_s16  ;;  %1282 = vrot.lane.b32.xlu1 %v1267_v22, %s3932_s16  ;;  %v1547_v45 = vrot.slane %v1526_v40, %v3964_v5  ;;  %v457_v47 = vcombine.low %v455_v43, %v455_v43  ;;  %v715_v55 = vcombine.high %v713_v49, %v713_v49  ;;  %v3632_v21 = vld [vmem:[%s3969_s15 + $0x14] sm:$0x1f]  ;;  %vm5250_vm14 = vcmask 1047559  }
  0x1b   : > { %v464_v46 = vrot.slane %v456_v42, %v3964_v5  ;;  %v601_v53 = vcombine.high %v593_v48, %v593_v48  ;;  %v608_v57 = vrot.slane %v593_v48, %v3964_v5  ;;  %v600_v58 = vrot.slane %v586_v51, %v3964_v5 }
  0x1c   : > { %v478_v52 = vrot.slane %v457_v47, %v3964_v5  ;;  %v730_v60 = vcombine.low %v722_v54, %v722_v54  ;;  %v729_v61 = vrot.slane %v715_v55, %v3964_v5  ;;  %v849_v62 = vcombine.low %v3626_v56, %v3626_v56 }
  0x1d   : > { %v615_v59 = vrot.slane %v601_v53, %v3964_v5  ;;  %v622_v0 = vrot.slane %v600_v58, %v3964_v5  ;;  %v981_v4 = vcombine.low %v3628_v63, %v3628_v63  ;;  %v745_v6 = vrot.slane %v722_v54, %v3964_v5 }
  0x1e   : > { %1154 = vrot.lane.b32.xlu0 %v1144_v26, %s3932_s16  ;;  %1286 = vrot.lane.b32.xlu1 %v1281_v28, %s3932_s16  ;;  %v738_v1 = vrot.slane %v730_v60, %v3964_v5  ;;  %v731_v2 = vcombine.low %v729_v61, %v729_v61  ;;  %v856_v3 = vrot.slane %v849_v62, %v3964_v5  ;;  %v3630_v28 = vld [vmem:[%s3969_s15 + $0xa] sm:$0x1f]  ;;  %vm428_vm4 = vsmask.f32 7946 }
  0x1f   : > { %v988_v9 = vrot.slane %v981_v4, %v3964_v5  ;;  %v863_v12 = vrot.slane %v3626_v56, %v3964_v5  ;;  %v995_v13 = vrot.slane %v3628_v63, %v3964_v5  ;;  %v2622_v14 = vrot.slane %v3657_v10, %v3964_v5  ;;  %vm429_vm9 = vmand %vm347_vm0, %vm428_vm4 }
  0x20   : > { %v752_v7 = vrot.slane %v731_v2, %v3964_v5  ;;  %v864_v8 = vcombine.high %v856_v3, %v856_v3  ;;  %v871_v11 = vrot.slane %v856_v3, %v3964_v5  ;;  %v2615_v19 = vcombine.high %v3657_v10, %v3657_v10 }
  0x21   : > { %v996_v17 = vcombine.low %v988_v9, %v988_v9  ;;  %v885_v18 = vrot.slane %v863_v12, %v3964_v5  ;;  %v4048_v20 = vrot.slane %v3659_v15, %v3964_v5  ;;  %v997_v22 = vcombine.low %v995_v13, %v995_v13 }
  0x22   : > { %1414 = vrot.lane.b32.xlu0 %v1399_v31, %s3933_s17  ;;  %1416 = vrot.lane.b32.xlu1 %v1406_v34, %s3933_s17  ;;  %v878_v16 = vrot.slane %v864_v8, %v3964_v5  ;;  %v2630_v23 = vcombine.high %v2622_v14, %v2622_v14  ;;  %v2637_v27 = vrot.slane %v2622_v14, %v3964_v5  ;;  %v3663_v31 = vld [vmem:[%s3969_s15 + $0x23] sm:$0x1f]  ;;  %vm430_vm11 = vsmask.f32 7962 }
  0x23   : > { %v1004_v26 = vrot.slane %v996_v17, %v3964_v5  ;;  %v1011_v29 = vrot.slane %v988_v9, %v3964_v5  ;;  %v2744_v30 = vcombine.high %v3659_v15, %v3659_v15  ;;  %v1312_v32 = vrot.slane %v3632_v21, %v3964_v5  ;;  %vm431_vm15 = vmand %vm350_vm2, %vm430_vm11 }
  0x24   : > { %v1305_v33 = vcombine.high %v3632_v21, %v3632_v21  ;;  %v2629_v34 = vrot.slane %v2615_v19, %v3964_v5  ;;  %v2759_v35 = vcombine.low %v4048_v20, %v4048_v20  ;;  %v2877_v36 = vcombine.low %v3661_v24, %v3661_v24  ;;  %vm4452_vm0 = vmor %vm431_vm15, %vm429_vm9 }
  0x25   : > { %v1018_v38 = vrot.slane %v997_v22, %v3964_v5  ;;  %v2891_v40 = vrot.slane %v3661_v24, %v3964_v5  ;;  %v2774_v42 = vrot.slane %v4048_v20, %v3964_v5  ;;  %v3009_v43 = vcombine.low %v3663_v31, %v3663_v31 }
  0x26   : > { %1418 = vrot.lane.b32.xlu0 %v1413_v37, %s3933_s17  ;;  %1548 = vrot.lane.b32.xlu1 %v1533_v39, %s3933_s17  ;;  %v1445_v37 = vrot.slane %v3633_v25, %v3964_v5  ;;  %v2644_v39 = vrot.slane %v2630_v23, %v3964_v5  ;;  %v1175_v44 = vcombine.high %v3630_v28, %v3630_v28  ;;  %vm573_vm13 = vsmask.f32 7950 }
  0x27   : > { %v2758_v47 = vrot.slane %v2744_v30, %v3964_v5  ;;  %v3023_v48 = vrot.slane %v3663_v31, %v3964_v5  ;;  %v1319_v49 = vrot.slane %v1305_v33, %v3964_v5  ;;  %v2651_v51 = vrot.slane %v2629_v34, %v3964_v5  ;;  %v3647_v30 = vld [vmem:[%s3969_s15 + $0x1e] sm:$0x1f]  ;;  %vm4463_vm2 = vmand %vm5249_vm10, %vm573_vm13 }
  0x28   : > { %v4080_v53 = vrot.slane %v2877_v36, %v3964_v5  ;;  %v1453_v54 = vcombine.high %v1445_v37, %v1445_v37  ;;  %v4083_v55 = vrot.slane %v2891_v40, %v3964_v5  ;;  %v1189_v60 = vrot.slane %v1175_v44, %v3964_v5  ;;  %v3649_v44 = vld [vmem:[%s3969_s15 + $0x28] sm:$0x1f] }
  0x29   : > { %v1327_v61 = vrot.slane %v1312_v32, %v3964_v5  ;;  %v2760_v63 = vcombine.low %v2758_v47, %v2758_v47  ;;  %v1341_v2 = vrot.slane %v1319_v49, %v3964_v5  ;;  %v4136_v49 = vld [vmem:[%s3969_s15 + $0x23] sm:$0x1f]  ;;  %vm575_vm6 = vsmask.f32 7966 }
  0x2a   : > { %1550 = vrot.lane.b32.xlu0 %v1540_v41, %s3933_s17  ;;  %1552 = vrot.lane.b32.xlu1 %v1547_v45, %s3933_s17  ;;  %v1182_v41 = vrot.slane %v3630_v28, %v3964_v5  ;;  %v1438_v45 = vcombine.high %v3633_v25, %v3633_v25  ;;  %v2899_v3 = vrot.slane %v4080_v53, %v3964_v5  ;;  %v3636_v25 = vld [vmem:[%s3969_s15 + $0x14] sm:$0x1f]  ;;  %vm308_vm4 = vsmask.f32 7942  ;;  %vm576_vm9 = vmand %vm5250_vm14, %vm575_vm6 }
  0x2b   : > { %v2892_v4 = vcombine.high %v4080_v53, %v4080_v53  ;;  %v1211_v12 = vrot.slane %v1189_v60, %v3964_v5  ;;  %v1343_v13 = vshll.u32 %v1327_v61, 16  ;;  %v1351_v19 = vshll.u32 %v1341_v2, 16  ;;  %vm4484_vm10 = vmor %vm576_vm9, %vm4463_vm2 }
  0x2c   : > { %v1190_v56 = vcombine.high %v1182_v41, %v1182_v41  ;;  %v1452_v62 = vrot.slane %v1438_v45, %v3964_v5  ;;  %v1197_v8 = vrot.slane %v1182_v41, %v3964_v5  ;;  %v2781_v21 = vrot.slane %v2760_v63, %v3964_v5  ;;  %vm4510_vm2 = vmor %vm4406_vm5, %vm4388_vm1 }
  0x2d   : > { %v1219_v31 = vshll.u32 %v1211_v12, 16  ;;  %v1353_v36 = vrot.slane %v1351_v19, 7  ;;  %v2350_v63 = vcombine.low %v4136_v49, %v4136_v49  ;;  %vm420_vm11 = vcmask 1043456  }
  0x2e   : > { %479 = vrot.lane.b32.xlu0 %v464_v46, %s3934_s18  ;;  %481 = vrot.lane.b32.xlu1 %v471_v50, %s3934_s18  ;;  %v3635_v46 = vld [vmem:[%s3969_s15 + $0xf] sm:$0x1f]  ;;  %v1320_v50 = vcombine.high %v1312_v32, %v1312_v32  ;;  %v1204_v9 = vrot.slane %v1190_v56, %v3964_v5  ;;  %v1474_v14 = vrot.slane %v1452_v62, %v3964_v5  ;;  %v1345_v32 = vrot.slane %v1343_v13, 7 }
  0x2f   : > { %v1571_v58 = vcombine.high %v3635_v46, %v3635_v46  ;;  %vm310_vm13 = vsmask.f32 7958  ;;  %vm1101_vm15 = vcmask 654336   ;;  %vm5269_vm6 = vcmask 1045509  }
  0x30   : > { %v1484_v33 = vshll.u32 %v1474_v14, 16  ;;  %v4139_v20 = vpack.i.bf16 %v1345_v32, %v1219_v31  ;;  %vm4497_vm14 = vmand %vm5269_vm6, %vm264_vm12  ;;  %vm224_vm1 = vsmask.f32 7954  ;;  %vm5276_vm9 = vcmask 1040384  }
  0x31   : > { %v1585_v10 = vrot.slane %v1571_v58, %v3964_v5  ;;  %v3655_v58 = vld [vmem:[%s3969_s15 + $0x2d] sm:$0x1f]  ;;  %vm4538_vm12 = vmor %vm4497_vm14, %vm4400_vm3  ;;  %vm222_vm14 = vsmask.f32 7938  ;;  %vm498_vm5 = vsmask.f32 7424 }
  0x32   : > { %483 = vrot.lane.b32.xlu0 %v478_v52, %s3934_s18  ;;  %623 = vrot.lane.b32.xlu1 %v608_v57, %s3934_s18  ;;  %v2767_v52 = vrot.slane %v2759_v35, %v3964_v5  ;;  %v1578_v57 = vrot.slane %v3635_v46, %v3964_v5  ;;  %v2496_v32 = vrot.slane %v3655_v58, %v3964_v5  ;;  %vm4590_vm6 = vmand %vm5276_vm9, %vm222_vm14  ;;  %vm5281_vm14 = vcmask 1041409  }
  0x33   : > { %vm4601_vm3 = vmand %vm179_vm8, %vm224_vm1  ;;  %vm5284_vm8 = vcmask 1045509  }
  0x34   : > { %v1593_v15 = vrot.slane %v1578_v57, %v3964_v5  ;;  %vm4610_vm9 = vmand %vm5281_vm14, %vm308_vm4  ;;  %vm5294_vm14 = vcmask 1043459  }
  0x35   : > { %vm4618_vm1 = vmand %vm5284_vm8, %vm310_vm13  ;;  %vm5299_vm8 = vcmask 1047559  }
  0x36   : > { %625 = vrot.lane.b32.xlu0 %v615_v59, %s3934_s18  ;;  %627 = vrot.lane.b32.xlu1 %v622_v0, %s3934_s18  ;;  %v4088_v59 = vrot.slane %v3009_v43, %v3964_v5  ;;  %v3025_v0 = vcombine.low %v3023_v48, %v3023_v48  ;;  %v1609_v34 = vshll.u32 %v1593_v15, 16  ;;  %v1955_v43 = vcombine.low %v3647_v30, %v3647_v30  ;;  %vm4633_vm4 = vmor %vm4601_vm3, %vm4590_vm6 }
  0x37   : > { %vm4650_vm13 = vmor %vm4618_vm1, %vm4610_vm9  ;;  %vm5292_vm3 = vcmask 523264   ;;  %vm5293_vm6 = vsmask.f32 3328 }
  0x38   : > { %v3039_v17 = vrot.slane %v4088_v59, %v3964_v5  ;;  %v4116_v22 = vrot.slane %v3025_v0, %v3964_v5  ;;  %v4158_v61 = vrot.slane %v1955_v43, %v3964_v5  ;;  %v360_v0 = vld [vmem:[%s3969_s15] sm:$0x1f]  ;;  %vm4697_vm9 = vmand %vm5294_vm14, %vm5293_vm6  ;;  %vm5302_vm6 = vcmask 523264  }
  0x39   : > { %v369_v13 = vrot.slane %v360_v0, %v3964_v5  ;;  %vm4716_vm1 = vmand %vm5299_vm8, %vm498_vm5  ;;  %vm763_vm8 = vcmask 785408  }
  0x3a   : > { %753 = vrot.lane.b32.xlu0 %v738_v1, %s3935_s19  ;;  %755 = vrot.lane.b32.xlu1 %v745_v6, %s3935_s19  ;;  %v1334_v1 = vrot.slane %v1320_v50, %v3964_v5  ;;  %v1460_v6 = vrot.slane %v1445_v37, %v3964_v5  ;;  %v4124_v37 = vrot.slane %v3636_v25, %v3964_v5  ;;  %v1611_v50 = vrot.slane %v1609_v34, 5  ;;  %vm4736_vm5 = vmor %vm4716_vm1, %vm4697_vm9 }
  0x3b   : > { %v1970_v14 = vcombine.low %v4158_v61, %v4158_v61  ;;  %vm5305_vm14 = vmmov %vm5302_vm6 }
  0x3c   : > { %v1476_v23 = vshll.u32 %v1460_v6, 16  ;;  %vm5306_vm9 = vmmov %vm5302_vm6 }
  0x3d   : > { %v4220_v34 = vrot.slane %v1970_v14, %v3964_v5  ;;  %vm5309_vm1 = vmmov %vm5302_vm6 }
  0x3e   : > { %757 = vrot.lane.b32.xlu0 %v752_v7, %s3935_s19  ;;  %886 = vrot.lane.b32.xlu1 %v871_v11, %s3935_s19  ;;  %v1467_v7 = vrot.slane %v1453_v54, %v3964_v5  ;;  %v1586_v11 = vcombine.high %v1578_v57, %v1578_v57  ;;  %v1478_v40 = vrot.slane %v1476_v23, 6  ;;  %v1658_v54 = vcombine.high %v4124_v37, %v4124_v37 }
  0x3f   : > { %v4151_v57 = vrot.slane %v3649_v44, %v3964_v5 }
  0x40   : > { %v1480_v24 = vshll.u32 %v1467_v7, 16  ;;  %v1600_v28 = vrot.slane %v1586_v11, %v3964_v5 }
  0x41   : > { %v2103_v12 = vcombine.high %v4151_v57, %v4151_v57  ;;  %v2110_v15 = vrot.slane %v4151_v57, %v3964_v5 }
  0x42   : > { %888 = vrot.lane.b32.xlu0 %v878_v16, %s3935_s19  ;;  %890 = vrot.lane.b32.xlu1 %v885_v18, %s3935_s19  ;;  %v3024_v16 = vcombine.low %v4088_v59, %v4088_v59  ;;  %v1347_v18 = vshll.u32 %v1334_v1, 16  ;;  %v1482_v41 = vrot.slane %v1480_v24, 6  ;;  %v1613_v47 = vshll.u32 %v1600_v28, 16  ;;  %v3622_v24 = vld [vmem:[%s3969_s15 + $0xa] sm:$0x1f] }
  0x43   : > { %v362_v28 = vcombine.high %v360_v0, %v360_v0  ;;  %v509_v43 = vcombine.high %v3622_v24, %v3622_v24 }
  0x44   : > { %v1349_v35 = vrot.slane %v1347_v18, 7  ;;  %v3032_v45 = vrot.slane %v3024_v16, %v3964_v5  ;;  %v4155_v60 = vpack.i.bf16 %v1482_v41, %v1478_v40  ;;  %v1615_v1 = vrot.slane %v1613_v47, 5 }
  0x45   : > { %v4187_v18 = vrot.slane %v2350_v63, %v3964_v5  ;;  %v376_v47 = vrot.slane %v362_v28, %v3964_v5  ;;  %v1040_v28 = vld [vmem:[%s3969_s15] sm:$0x1f] }
  0x46   : > { %1019 = vrot.lane.b32.xlu0 %v1004_v26, %s3935_s19  ;;  %1021 = vrot.lane.b32.xlu1 %v1011_v29, %s3935_s19  ;;  %v1213_v26 = vshll.u32 %v1197_v8, 16  ;;  %v1607_v29 = vrot.slane %v1585_v10, %v3964_v5  ;;  %v4143_v53 = vpack.i.bf16 %v1353_v36, %v1349_v35  ;;  %v4172_v10 = vrot.slane %v1658_v54, %v3964_v5 }
  0x47   : > { %v2365_v36 = vcombine.high %v4187_v18, %v4187_v18 }
  0x48   : > { %v1617_v48 = vshll.u32 %v1607_v29, 16  ;;  %v3624_v29 = vld [vmem:[%s3969_s15 + $0x14] sm:$0x1f] }
  0x49   : > { %v653_v59 = vrot.slane %v3624_v29, %v3964_v5  ;;  %v646_v0 = vcombine.high %v3624_v29, %v3624_v29 }
  0x4a   : > { %1023 = vrot.lane.b32.xlu0 %v1018_v38, %s3935_s19  ;;  %2652 = vrot.lane.b32.xlu1 %v2637_v27, %s3932_s16  ;;  %v1216_v27 = vshll.u32 %v1204_v9, 16  ;;  %v1643_v38 = vcombine.high %v3636_v25, %v3636_v25  ;;  %v1619_v2 = vrot.slane %v1617_v48, 5  ;;  %v2482_v9 = vcombine.low %v3655_v58, %v3655_v58  ;;  %v4243_v48 = vld [vmem:[%s3969_s15 + $0x19] sm:$0x1f] }
  0x4b   : > { %v661_v63 = vcombine.high %v653_v59, %v653_v59 }
  0x4c   : > { %v4133_v46 = vpack.i.bf16 %v1216_v27, %v1213_v26  ;;  %v4148_v56 = vrot.slane %v1643_v38, %v3964_v5  ;;  %v4189_v19 = vpack.i.bf16 %v1619_v2, %v1615_v1  ;;  %v2364_v26 = vrot.slane %v4136_v49, %v3964_v5 }
  0x4d   : > { %v4206_v27 = vrot.slane %v2482_v9, %v3964_v5  ;;  %v516_v38 = vrot.slane %v3622_v24, %v3964_v5  ;;  %v2498_v49 = vcombine.low %v2496_v32, %v2496_v32  ;;  %v4261_v1 = vrot.slane %v4243_v48, %v3964_v5 }
  0x4e   : > { %2654 = vrot.lane.b32.xlu0 %v2644_v39, %s3932_s16  ;;  %2656 = vrot.lane.b32.xlu1 %v2651_v51, %s3932_s16  ;;  %v2906_v39 = vrot.slane %v2892_v4, %v3964_v5  ;;  %v1969_v51 = vrot.slane %v3647_v30, %v3964_v5  ;;  %v2088_v4 = vcombine.high %v3649_v44, %v3649_v44 }
  0x4f   : > { %v1679_v11 = vrot.slane %v4148_v56, %v3964_v5  ;;  %v4210_v30 = vrot.slane %v2103_v12, %v3964_v5  ;;  %v4237_v44 = vrot.slane %v2364_v26, %v3964_v5  ;;  %v2512_v54 = vrot.slane %v4206_v27, %v3964_v5 }
  0x50   : > { %v1971_v8 = vcombine.low %v1969_v51, %v1969_v51  ;;  %v4194_v23 = vrot.slane %v2088_v4, %v3964_v5  ;;  %v524_v58 = vcombine.high %v516_v38, %v516_v38  ;;  %v398_v4 = vrot.slane %v376_v47, %v3964_v5 }
  0x51   : > { %v4272_v12 = vrot.slane %v2498_v49, %v3964_v5  ;;  %v675_v32 = vrot.slane %v661_v63, %v3964_v5  ;;  %v1049_v47 = vrot.slane %v1040_v28, %v3964_v5 }
  0x52   : > { %2782 = vrot.lane.b32.xlu0 %v2767_v52, %s3932_s16  ;;  %2784 = vrot.lane.b32.xlu1 %v2774_v42, %s3932_s16  ;;  %v1486_v42 = vrot.slane %v1484_v33, 6  ;;  %v3651_v52 = vld [vmem:[%s3969_s15 + $0x19] sm:$0x1f]  ;;  %v4201_v25 = vrot.slane %v1971_v8, %v3964_v5  ;;  %v377_v33 = vcombine.high %v369_v13, %v369_v13  ;;  %v2124_v40 = vrot.slane %v4194_v23, %v3964_v5 }
  0x53   : > { %v2217_v62 = vcombine.high %v3651_v52, %v3651_v52  ;;  %v4164_v6 = vrot.slane %v3651_v52, %v3964_v5  ;;  %v4254_v52 = vrot.slane %v2365_v36, %v3964_v5  ;;  %v531_v8 = vrot.slane %v516_v38, %v3964_v5 }
  0x54   : > { %v4167_v7 = vpack.i.bf16 %v1611_v50, %v1486_v42  ;;  %v384_v42 = vrot.slane %v369_v13, %v3964_v5  ;;  %v391_v50 = vrot.slane %v377_v33, %v3964_v5  ;;  %v660_v33 = vrot.slane %v646_v0, %v3964_v5 }
  0x55   : > { %v2231_v16 = vrot.slane %v2217_v62, %v3964_v5  ;;  %v2247_v31 = vrot.slane %v4164_v6, %v3964_v5  ;;  %v523_v62 = vrot.slane %v509_v43, %v3964_v5  ;;  %v547_v36 = vshll.u32 %v531_v8, 16 }
  0x56   : > { %2786 = vrot.lane.b32.xlu0 %v2781_v21, %s3932_s16  ;;  %2914 = vrot.lane.b32.xlu1 %v2899_v3, %s3933_s17  ;;  %v1665_v3 = vrot.slane %v4124_v37, %v3964_v5  ;;  %v1985_v21 = vrot.slane %v4158_v61, %v3964_v5  ;;  %v400_v13 = vshll.u32 %v384_v42, 16  ;;  %v404_v14 = vshll.u32 %v391_v50, 16 }
  0x57   : > { %v2233_v35 = vcombine.low %v2231_v16, %v2231_v16  ;;  %v545_v29 = vrot.slane %v523_v62, %v3964_v5  ;;  %v687_v62 = vshll.u32 %v675_v32, 16 }
  0x58   : > { %v402_v43 = vrot.slane %v400_v13, 6  ;;  %v1057_v13 = vcombine.high %v1049_v47, %v1049_v47 }
  0x59   : > { %v4251_v51 = vrot.slane %v2233_v35, %v3964_v5  ;;  %v1905_v35 = vrot.slane %v4261_v1, %v3964_v5 }
  0x5a   : > { %2916 = vrot.lane.b32.xlu0 %v2906_v39, %s3933_s17  ;;  %2918 = vrot.lane.b32.xlu1 %v4083_v55, %s3933_s17  ;;  %v2232_v55 = vcombine.low %v4164_v6, %v4164_v6  ;;  %v3625_v39 = vld [vmem:[%s3969_s15 + $0x5] sm:$0x1f] }
  0x5b   : > { %v777_v9 = vcombine.high %v3625_v39, %v3625_v39  ;;  %v1921_v63 = vshll.u32 %v1905_v35, 16  ;;  %v1064_v35 = vrot.slane %v1049_v47, %v3964_v5 }
  0x5c   : > { %v4229_v41 = vrot.slane %v2232_v55, %v3964_v5  ;;  %v538_v55 = vrot.slane %v524_v58, %v3964_v5  ;;  %v555_v58 = vshll.u32 %v545_v29, 16 }
  0x5e   : > { %3047 = vrot.lane.b32.xlu0 %v3032_v45, %s3933_s17  ;;  %3049 = vrot.lane.b32.xlu1 %v3039_v17, %s3933_s17  ;;  %v2372_v17 = vrot.slane %v4187_v18, %v3964_v5  ;;  %v2497_v45 = vcombine.low %v4206_v27, %v4206_v27  ;;  %v551_v49 = vshll.u32 %v538_v55, 16  ;;  %v557_v29 = vrot.slane %v555_v58, 5 }
  0x5f   : > { %v1080_v58 = vshll.u32 %v1064_v35, 16 }
  0x60   : > { %v4267_v2 = vrot.slane %v2497_v45, %v3964_v5 }
  0x62   : > { %3051 = vrot.lane.b32.xlu0 %v4116_v22, %s3933_s17  ;;  %v784_v22 = vrot.slane %v3625_v39, %v3964_v5  ;;  %3716 = vrot.lane.b32.xlu1 %v4133_v46, %s3932_s16  ;;  %v3627_v46 = vld [vmem:[%s3969_s15 + $0xf] sm:$0x1f]  ;;  %v791_v39 = vrot.slane %v777_v9, %v3964_v5 }
  0x63   : > { %v916_v24 = vrot.slane %v3627_v46, %v3964_v5  ;;  %v909_v26 = vcombine.high %v3627_v46, %v3627_v46  ;;  %v549_v46 = vrot.slane %v547_v36, 5  ;;  %v3662_v36 = vld [vmem:[%s3969_s15 + $0x1e] sm:$0x1f] }
  0x64   : > { %v792_v16 = vcombine.high %v784_v22, %v784_v22  ;;  %v799_v38 = vrot.slane %v784_v22, %v3964_v5  ;;  %v682_v22 = vrot.slane %v660_v33, %v3964_v5  ;;  %v813_v8 = vrot.slane %v791_v39, %v3964_v5 }
  0x65   : > { %v923_v50 = vrot.slane %v909_v26, %v3964_v5  ;;  %v931_v55 = vrot.slane %v916_v24, %v3964_v5  ;;  %v3660_v26 = vld [vmem:[%s3969_s15 + $0x2d] sm:$0x1f]  ;;  %v1071_v39 = vrot.slane %v1057_v13, %v3964_v5  ;;  %v2944_v56 = vrot.slane %v3662_v36, %v3964_v5 }
  0x66   : > { %3721 = vrot.lane.b32.xlu0 %v4139_v20, %s3932_s16  ;;  %3726 = vrot.lane.b32.xlu1 %v4143_v53, %s3932_s16  ;;  %v668_v20 = vrot.slane %v653_v59, %v3964_v5  ;;  %v408_v53 = vshll.u32 %v398_v4, 16  ;;  %v406_v59 = vrot.slane %v404_v14, 6  ;;  %v806_v45 = vrot.slane %v792_v16, %v3964_v5 }
  0x67   : > { %v815_v4 = vshll.u32 %v799_v38, 16  ;;  %v1042_v14 = vcombine.high %v1040_v28, %v1040_v28  ;;  %v553_v16 = vrot.slane %v551_v49, 5  ;;  %v690_v33 = vshll.u32 %v682_v22, 16 }
  0x68   : > { %v684_v42 = vshll.u32 %v668_v20, 16  ;;  %v410_v0 = vrot.slane %v408_v53, 6  ;;  %v819_v9 = vshll.u32 %v806_v45, 16  ;;  %v945_v20 = vrot.slane %v923_v50, %v3964_v5  ;;  %v3658_v53 = vld [vmem:[%s3969_s15 + $0x23] sm:$0x1f] }
  0x69   : > { %v1923_v28 = vrot.slane %v1921_v63, 6  ;;  %v2805_v49 = vcombine.high %v3660_v26, %v3660_v26  ;;  %v2937_v22 = vcombine.high %v3662_v36, %v3662_v36  ;;  %v3664_v63 = vld [vmem:[%s3969_s15 + $0x28] sm:$0x1f]  ;;  %v2959_v36 = vrot.slane %v2944_v56, %v3964_v5 }
  0x6a   : > { %3731 = vrot.lane.b32.xlu0 %v4155_v60, %s3933_s17  ;;  %3736 = vrot.lane.b32.xlu1 %v4167_v7, %s3933_s17  ;;  %v924_v60 = vcombine.high %v916_v24, %v916_v24  ;;  %v4298_v7 = vpack.i.bf16 %v406_v59, %v402_v43  ;;  %v4308_v32 = vpack.i.bf16 %v687_v62, %v684_v42  ;;  %v823_v24 = vshll.u32 %v813_v8, 16 }
  0x6b   : > { %v4312_v37 = vpack.i.bf16 %v549_v46, %v410_v0  ;;  %v821_v38 = vrot.slane %v819_v9, 7  ;;  %v1056_v43 = vrot.slane %v1042_v14, %v3964_v5  ;;  %v4320_v59 = vrot.slane %v3660_v26, %v3964_v5 }
  0x6c   : > { %v955_v47 = vshll.u32 %v945_v20, 16  ;;  %v4326_v42 = vpack.i.bf16 %v557_v29, %v553_v16  ;;  %v4328_v50 = vpack.i.bf16 %v1923_v28, %v690_v33  ;;  %v2675_v62 = vcombine.high %v3658_v53, %v3658_v53 }
  0x6d   : > { %v1084_v46 = vshll.u32 %v1071_v39, 16  ;;  %v2820_v8 = vcombine.high %v4320_v59, %v4320_v59  ;;  %v2819_v14 = vrot.slane %v2805_v49, %v3964_v5  ;;  %v3077_v20 = vrot.slane %v3664_v63, %v3964_v5 }
  0x6e   : > { %3741 = vrot.lane.b32.xlu0 %v4189_v19, %s3933_s17  ;;  %1680 = vrot.lane.b32.xlu1 %v1665_v3, %s3933_s17  ;;  %v938_v19 = vrot.slane %v924_v60, %v3964_v5  ;;  %v817_v3 = vrot.slane %v815_v4, 7  ;;  %v2682_v60 = vrot.slane %v3658_v53, %v3964_v5  ;;  %v1078_v4 = vrot.slane %v1056_v43, %v3964_v5 }
  0x6f   : > { %v957_v13 = vrot.slane %v955_v47, 6  ;;  %v1082_v26 = vrot.slane %v1080_v58, 5  ;;  %v2689_v29 = vrot.slane %v2675_v62, %v3964_v5  ;;  %v2951_v61 = vrot.slane %v2937_v22, %v3964_v5 }
  0x70   : > { %v951_v45 = vshll.u32 %v938_v19, 16  ;;  %v4335_v0 = vpack.i.bf16 %v821_v38, %v817_v3  ;;  %v2697_v16 = vrot.slane %v2682_v60, %v3964_v5  ;;  %v2952_v19 = vcombine.high %v2944_v56, %v2944_v56 }
  0x71   : > { %v1086_v33 = vrot.slane %v1084_v46, 5  ;;  %v1088_v28 = vshll.u32 %v1078_v4, 16  ;;  %v2827_v3 = vrot.slane %v4320_v59, %v3964_v5  ;;  %v2841_v53 = vrot.slane %v2819_v14, %v3964_v5 }
  0x72   : > { %1682 = vrot.lane.b32.xlu0 %v4172_v10, %s3933_s17  ;;  %1684 = vrot.lane.b32.xlu1 %v1679_v11, %s3933_s17  ;;  %v947_v10 = vshll.u32 %v931_v55, 16  ;;  %v825_v11 = vrot.slane %v823_v24, 7  ;;  %v2690_v55 = vcombine.high %v2682_v60, %v2682_v60  ;;  %v2834_v24 = vrot.slane %v2820_v8, %v3964_v5 }
  0x73   : > { %v3092_v39 = vrot.slane %v3077_v20, %v3964_v5  ;;  %v3085_v43 = vcombine.high %v3077_v20, %v3077_v20  ;;  %v2973_v47 = vrot.slane %v2951_v61, %v3964_v5  ;;  %v1090_v56 = vrot.slane %v1088_v28, 5 }
  0x74   : > { %v949_v9 = vrot.slane %v947_v10, 6  ;;  %v4371_v57 = vrot.slane %v2690_v55, %v3964_v5  ;;  %v2713_v10 = vshll.u32 %v2697_v16, 16  ;;  %v2847_v58 = vshll.u32 %v2834_v24, 16  ;;  %v3903_v55 = vld [vmem:[%s3969_s15 + $0x14] ss:$0 sps:$4 sm:$0xff]  }
  0x75   : > { %v4412_v46 = vshll.u32 %v2959_v36, 16  ;;  %v4423_v8 = vshll.u32 %v3092_v39, 16  ;;  %v4433_v14 = vshll.u32 %v2973_v47, 16 }
  0x76   : > { %1993 = vrot.lane.b32.xlu0 %v4220_v34, %s3934_s18  ;;  %1995 = vrot.lane.b32.xlu1 %v1985_v21, %s3934_s18  ;;  %v953_v34 = vrot.slane %v951_v45, 6  ;;  %v3070_v21 = vcombine.high %v3664_v63, %v3664_v63  ;;  %v2711_v45 = vrot.slane %v2689_v29, %v3964_v5  ;;  %v4410_v63 = vshll.u32 %v2841_v53, 16  ;;  %v354_v53 = vld [vmem:[#allocation2 + $0x60] sm:$0x44] }
  0x77   : > { %v2977_v29 = vrot.slane %v4412_v46, 6  ;;  %v2985_v36 = vrot.slane %v4433_v14, 6 }
  0x78   : > { %v4360_v35 = vpack.i.bf16 %v957_v13, %v953_v34  ;;  %v3084_v49 = vrot.slane %v3070_v21, %v3964_v5  ;;  %v4429_v34 = vld [vmem:[%s3969_s15 + $0x2d] sm:$0x1f]  ;;  %v2719_v13 = vshll.u32 %v2711_v45, 16 }
  0x79   : > { %v4450_v61 = vrot.slane %v4429_v34, %v3964_v5  ;;  %v3617_v45 = vld.sshfl [vmem:[%s3969_s15 + $0xa] sm:$0x55 pattern:$0x73625140] }
  0x7a   : > { %1997 = vrot.lane.b32.xlu0 %v4201_v25, %s3934_s18  ;;  %2125 = vrot.lane.b32.xlu1 %v2110_v15, %s3934_s18  ;;  %v4358_v25 = vpack.i.bf16 %v949_v9, %v825_v11  ;;  %v2966_v15 = vrot.slane %v2952_v19, %v3964_v5  ;;  %v2843_v11 = vshll.u32 %v2827_v3, 16  ;;  %v4426_v9 = vrot.slane %v3085_v43, %v3964_v5 }
  0x7b   : > { %v3106_v16 = vrot.slane %v3084_v49, %v3964_v5  ;;  %v4438_v19 = vpack.i.bf16 %v2713_v10, %v1090_v56  ;;  %v3142_v43 = vcombine.high %v4429_v34, %v4429_v34  ;;  %v357_v10 = vld [vmem:[#allocation2] sm:$0x44] }
  0x7c   : > { %v2979_v4 = vshll.u32 %v2966_v15, 16  ;;  %v2845_v20 = vrot.slane %v2843_v11, 7  ;;  %v3112_v6 = vshll.u32 %v4426_v9, 16 }
  0x7d   : > { %v4470_v38 = vshll.u32 %v3106_v16, 16  ;;  %v3613_v15 = vld.sshfl [vmem:[%s3969_s15] sm:$0x55 pattern:$0x73625140] }
  0x7e   : > { %2127 = vrot.lane.b32.xlu0 %v4210_v30, %s3934_s18  ;;  %v4392_v30 = vpack.i.bf16 %v1086_v33, %v1082_v26  ;;  %2129 = vrot.lane.b32.xlu1 %v2124_v40, %s3934_s18  ;;  %v2716_v40 = vshll.u32 %v4371_v57, 16  ;;  %v2849_v26 = vrot.slane %v2847_v58, 7  ;;  %v329_v33 = vrot.slane %v3903_v55, %v3964_v5 }
  0x7f   : > { %v2981_v28 = vrot.slane %v2979_v4, 6  ;;  %v159_v47 = vcombine.high %v3613_v15, %v3613_v15  ;;  %v4518_v4 = vld [vmem:[%s3969_s15 + $0x23] sm:$0x1f]  ;;  %v166_v9 = vrot.slane %v3613_v15, %v3964_v5 }
  0x80   : > { %v337_v57 = vrot.slane %v329_v33, %v3964_v5  ;;  %v4476_v39 = vpack.i.bf16 %v2719_v13, %v2716_v40  ;;  %v243_v40 = vcombine.low %v3617_v45, %v3617_v45  ;;  %v257_v13 = vrot.slane %v3617_v45, %v3964_v5  ;;  %v270_v15 = vld [vmem:[#allocation2] sm:$0x22] }
  0x81   : > { %v173_v34 = vrot.slane %v159_v47, %v3964_v5  ;;  %v4527_v22 = vpack.i.bf16 %v2981_v28, %v2977_v29  ;;  %v4542_v29 = vrot.slane %v3112_v6, 5  ;;  %v1898_v28 = vcombine.high %v4261_v1, %v4261_v1 }
  0x82   : > { %2255 = vrot.lane.b32.xlu0 %v4229_v41, %s3935_s19  ;;  %2257 = vrot.lane.b32.xlu1 %v2247_v31, %s3935_s19  ;;  %v1883_v31 = vcombine.high %v4243_v48, %v4243_v48  ;;  %v330_v48 = vcombine.high %v329_v33, %v329_v33  ;;  %v355_v58 = vsel %vm4418_vm7, %v337_v57, %v354_v53  ;;  %v267_v33 = vld [vmem:[#allocation2 + $0x60] sm:$0x22]  ;;  %v3619_v53 = vld.sshfl [vmem:[%s3969_s15 + $0xf] sm:$0x55 pattern:$0x73625140] }
  0x83   : > { %356 = vst [vmem:[#allocation2 + $0x60] sm:$0x44] %v355_v58  ;;  %v4556_v6 = vrot.slane %v3142_v43, %v3964_v5  ;;  %v4559_v57 = vld [vmem:[%s3969_s15 + $0x2d] sm:$0x1f]  ;;  %v4567_v47 = vrot.slane %v4518_v4, %v3964_v5  ;;  %v271_v43 = vsel %vm4538_vm12, %v257_v13, %v270_v15  ;;  %v2016_v58 = vcombine.high %v4518_v4, %v4518_v4 }
  0x84   : > { %v344_v46 = vrot.slane %v330_v48, %v3964_v5  ;;  %272 = vst [vmem:[#allocation2] sm:$0x22] %v271_v43  ;;  %v4582_v13 = vrot.slane %v1898_v28, %v3964_v5 }
  0x86   : > { %2259 = vrot.lane.b32.xlu0 %v4251_v51, %s3935_s19  ;;  %v4478_v51 = vpack.i.bf16 %v2849_v26, %v2845_v20  ;;  %2387 = vrot.lane.b32.xlu1 %v2372_v17, %s3935_s19  ;;  %v4515_v17 = vrot.slane %v1883_v31, %v3964_v5  ;;  %v358_v55 = vsel %vm4418_vm7, %v344_v46, %v357_v10  ;;  %v183_v20 = vld [vmem:[#allocation2 + $0x60] sm:$0x11] }
  0x87   : > { %v250_v26 = vrot.slane %v243_v40, %v3964_v5  ;;  %v186_v31 = vld [vmem:[#allocation2] sm:$0x11]  ;;  %359 = vst [vmem:[#allocation2] sm:$0x44] %v358_v55  ;;  %v184_v24 = vsel %vm4510_vm2, %v166_v9, %v183_v20  ;;  %v283_v10 = vcombine.high %v3619_v53, %v3619_v53  ;;  %v290_v46 = vrot.slane %v3619_v53, %v3964_v5 }
  0x88   : > { %v4489_v49 = vpop.permute.xlu0 %1152  ;;  %v4523_v60 = vpop.permute.xlu1 %1156  ;;  %v187_v62 = vsel %vm4510_vm2, %v173_v34, %v186_v31  ;;  %185 = vst [vmem:[#allocation2 + $0x60] sm:$0x11] %v184_v24 }
  0x89   : > { %v268_v1 = vsel %vm4538_vm12, %v250_v26, %v267_v33  ;;  %188 = vst [vmem:[#allocation2] sm:$0x11] %v187_v62  ;;  %v4578_v9 = vrot.slane %v283_v10, %v3964_v5  ;;  %v1158_v26 = vrot.slane %v4489_v49, 4  ;;  %v1297_v33 = vld [vmem:[#allocation2 + $0x30] sm:$0x22]  ;;  %v299_v53 = vshll.u32 %v290_v46, 16 }
  0x8a   : > { %2389 = vrot.lane.b32.xlu0 %v4254_v52, %s3935_s19  ;;  %2391 = vrot.lane.b32.xlu1 %v4237_v44, %s3935_s19  ;;  %v3615_v44 = vld.sshfl [vmem:[%s3969_s15 + $0x5] sm:$0x55 pattern:$0x73625140]  ;;  %269 = vst [vmem:[#allocation2 + $0x60] sm:$0x22] %v268_v1 }
  0x8b   : > { %v199_v40 = vcombine.high %v3615_v44, %v3615_v44  ;;  %v206_v24 = vrot.slane %v3615_v44, %v3964_v5  ;;  %v1160_v1 = vrot.slane %v4523_v60, 4  ;;  %v303_v43 = vshll.u32 %v4578_v9, 16  ;;  %v1170_v46 = vld [vmem:[#allocation2 + $0x58] sm:$0x11] }
  0x8c   : > { %v4551_v48 = vpop.permute.xlu0 %1284  ;;  %v1283_v56 = vpop.permute.xlu1 %1282  ;;  %v301_v41 = vrot.slane %v299_v53, 7 }
  0x8d   : > { %v1289_v34 = vrot.slane %v4551_v48, 4  ;;  %v1288_v55 = vrot.slane %v1283_v56, 4  ;;  %v213_v62 = vrot.slane %v199_v40, %v3964_v5  ;;  %v215_v11 = vshll.u32 %v206_v24, 16 }
  0x8e   : > { %2520 = vrot.lane.b32.xlu0 %v4267_v2, %s3935_s19  ;;  %v4586_v2 = vrot.slane %v4559_v57, %v3964_v5  ;;  %2522 = vrot.lane.b32.xlu1 %v2512_v54, %s3935_s19  ;;  %v1167_v54 = vld [vmem:[#allocation2 + $0x30] sm:$0x11] }
  0x8f   : > { %v1291_v27 = vsel %vm420_vm11, %v1288_v55, %v1289_v34  ;;  %v218_v55 = vshll.u32 %v213_v62, 16 }
  0x90   : > { %v1155_v31 = vpop.permute.xlu0 %1154  ;;  %v1292_v60 = vsel %vm1101_vm15, %v1283_v56, %v1291_v27  ;;  %v1287_v40 = vpop.permute.xlu1 %1286  ;;  %v230_v24 = vld [vmem:[#allocation2] sm:$0x11]  ;;  %v2163_v4 = vcombine.high %v4586_v2, %v4586_v2 }
  0x91   : > { %v1159_v10 = vrot.slane %v1155_v31, 4  ;;  %v1298_v45 = vsel %vm4538_vm12, %v1292_v60, %v1297_v33  ;;  %v1290_v3 = vrot.slane %v1287_v40, 4  ;;  %v313_v28 = vld [vmem:[#allocation2 + $0x60] sm:$0x22] }
  0x92   : > { %2524 = vrot.lane.b32.xlu0 %v4272_v12, %s3935_s19  ;;  %v227_v12 = vld [vmem:[#allocation2 + $0x60] sm:$0x11]  ;;  %1299 = vst [vmem:[#allocation2 + $0x30] sm:$0x22] %v1298_v45  ;;  %3746 = vrot.lane.b32.xlu1 %v4298_v7, %s3934_s18  ;;  %v2148_v45 = vcombine.high %v4559_v57, %v4559_v57 }
  0x93   : > { %v1161_v9 = vsel %vm420_vm11, %v1158_v26, %v1159_v10  ;;  %v1163_v16 = vsel %vm420_vm11, %v1159_v10, %v1160_v1  ;;  %v1300_v26 = vld [vmem:[#allocation2 + $0x58] sm:$0x22]  ;;  %v228_v20 = vsel %vm4633_vm4, %v215_v11, %v227_v12  ;;  %v231_v1 = vsel %vm4633_vm4, %v218_v55, %v230_v24 }
  0x94   : > { %v1162_v53 = vsel %vm1101_vm15, %v4489_v49, %v1161_v9  ;;  %v1164_v33 = vsel %vm1101_vm15, %v1155_v31, %v1163_v16  ;;  %v1415_v62 = vpop.permute.xlu0 %1414  ;;  %v1293_v11 = vsel %vm420_vm11, %v1289_v34, %v1290_v3  ;;  %229 = vst [vmem:[#allocation2 + $0x60] sm:$0x11] %v228_v20  ;;  %232 = vst [vmem:[#allocation2] sm:$0x11] %v231_v1  ;;  %v316_v31 = vld [vmem:[#allocation2] sm:$0x22]  ;;  %v1417_v27 = vpop.permute.xlu1 %1416 }
  0x95   : > { %v1168_v16 = vsel %vm4510_vm2, %v1162_v53, %v1167_v54  ;;  %v1171_v7 = vsel %vm4510_vm2, %v1164_v33, %v1170_v46  ;;  %v1294_v15 = vsel %vm1101_vm15, %v4551_v48, %v1293_v11  ;;  %v2031_v54 = vcombine.high %v4567_v47, %v4567_v47 }
  0x96   : > { %1169 = vst [vmem:[#allocation2 + $0x30] sm:$0x11] %v1168_v16  ;;  %1172 = vst [vmem:[#allocation2 + $0x58] sm:$0x11] %v1171_v7  ;;  %3751 = vrot.lane.b32.xlu0 %v4312_v37, %s3934_s18  ;;  %v314_v3 = vsel %vm4650_vm13, %v301_v41, %v313_v28  ;;  %v305_v34 = vrot.slane %v303_v43, 7  ;;  %v1301_v57 = vsel %vm4538_vm12, %v1294_v15, %v1300_v26  ;;  %v1420_v10 = vrot.slane %v1415_v62, 4 }
  0x97   : > { %v1421_v44 = vrot.slane %v1417_v27, 4  ;;  %v2030_v48 = vrot.slane %v2016_v58, %v3964_v5  ;;  %315 = vst [vmem:[#allocation2 + $0x60] sm:$0x22] %v314_v3  ;;  %1302 = vst [vmem:[#allocation2 + $0x58] sm:$0x22] %v1301_v57  ;;  %3756 = vrot.lane.b32.xlu1 %v4326_v42, %s3934_s18  ;;  %v5291_v41 = vrot.slane %v4423_v8, 5  ;;  %v2038_v46 = vrot.slane %v4567_v47, %v3964_v5 }
  0x98   : > { %v1430_v37 = vld [vmem:[#allocation2 + $0x30] sm:$0x44]  ;;  %v1419_v60 = vpop.permute.xlu0 %1418  ;;  %v317_v58 = vsel %vm4650_vm13, %v305_v34, %v316_v31  ;;  %v3118_v42 = vrot.slane %v4470_v38, 5  ;;  %v2162_v14 = vrot.slane %v2148_v45, %v3964_v5  ;;  %v1549_v9 = vpop.permute.xlu1 %1548  ;;  %v5297_v12 = vcombine.high %v4450_v61, %v4450_v61 }
  0x99   : > { %v4681_v43 = vpack.i.bf16 %v5291_v41, %v2985_v36  ;;  %v1423_v40 = vsel %vm420_vm11, %v1420_v10, %v1421_v44  ;;  %v1422_v55 = vrot.slane %v1419_v60, 4  ;;  %318 = vst [vmem:[#allocation2] sm:$0x22] %v317_v58  ;;  %v1433_v36 = vld [vmem:[#allocation2 + $0x58] sm:$0x44]  ;;  %v5298_v53 = vrot.slane %v4515_v17, %v3964_v5 }
  0x9a   : > { %v1425_v8 = vsel %vm5292_vm3, %v1415_v62, %v1423_v40  ;;  %3761 = vrot.lane.b32.xlu0 %v4308_v32, %s3934_s18  ;;  %v4705_v24 = vrot.slane %v5297_v12, %v3964_v5  ;;  %v2045_v26 = vrot.slane %v2031_v54, %v3964_v5  ;;  %vm422_vm3 = vcmask 916480   ;;  %v3652_v17 = vld [vmem:[%s3969_s15 + $0x1e] sm:$0x1f]  ;;  %v3654_v12 = vld [vmem:[%s3969_s15 + $0x28] sm:$0x1f] }
  0x9b   : > { %v1929_v33 = vshll.u32 %v5298_v53, 16  ;;  %v1431_v32 = vsel %vm4418_vm7, %v1425_v8, %v1430_v37  ;;  %v1426_v62 = vsel %vm420_vm11, %v1421_v44, %v1422_v55  ;;  %v1925_v28 = vshll.u32 %v4582_v13, 16  ;;  %3766 = vrot.lane.b32.xlu1 %v4328_v50, %s3934_s18 }
  0x9c   : > { %v2052_v1 = vrot.slane %v2030_v48, %v3964_v5  ;;  %1432 = vst [vmem:[#allocation2 + $0x30] sm:$0x44] %v1431_v32  ;;  %v1427_v16 = vsel %vm5302_vm6, %v1417_v27, %v1426_v62  ;;  %v1551_v7 = vpop.permute.xlu0 %1550  ;;  %v2054_v11 = vshll.u32 %v2038_v46, 16  ;;  %v2170_v45 = vrot.slane %v4586_v2, %v3964_v5  ;;  %v1563_v27 = vld [vmem:[#allocation2 + $0x30] sm:$0x88]  ;;  %v1553_v2 = vpop.permute.xlu1 %1552  ;;  %vm5310_vm6 = vmmov %vm5309_vm1 }
  0x9d   : > { %v2177_v31 = vrot.slane %v2163_v4, %v3964_v5  ;;  %v1434_v15 = vsel %vm4418_vm7, %v1427_v16, %v1433_v36  ;;  %v1554_v13 = vrot.slane %v1549_v9, 4  ;;  %v1555_v54 = vrot.slane %v1551_v7, 4  ;;  %v1566_v4 = vld [vmem:[#allocation2 + $0x58] sm:$0x88] }
  0x9e   : > { %v2184_v3 = vrot.slane %v2162_v14, %v3964_v5  ;;  %1435 = vst [vmem:[#allocation2 + $0x58] sm:$0x44] %v1434_v15  ;;  %3771 = vrot.lane.b32.xlu0 %v4335_v0, %s3935_s19  ;;  %v3178_v34 = vrot.slane %v4556_v6, %v3964_v5  ;;  %v1931_v57 = vrot.slane %v1929_v33, 6  ;;  %v2058_v10 = vshll.u32 %v2045_v26, 16 }
  0x9f   : > { %v2285_v44 = vrot.slane %v3652_v17, %v3964_v5  ;;  %v1557_v48 = vsel %vm420_vm11, %v1554_v13, %v1555_v54  ;;  %v1556_v37 = vrot.slane %v1553_v2, 4  ;;  %v1927_v60 = vrot.slane %v1925_v28, 6  ;;  %3776 = vrot.lane.b32.xlu1 %v4358_v25, %s3935_s19 }
  0xa0   : > { %v2062_v41 = vshll.u32 %v2052_v1, 16  ;;  %v1558_v46 = vsel %vm5305_vm14, %v1549_v9, %v1557_v48  ;;  %v480_v58 = vpop.permute.xlu0 %479  ;;  %v2056_v0 = vrot.slane %v2054_v11, 5  ;;  %v2186_v40 = vshll.u32 %v2170_v45, 16  ;;  %v482_v9 = vpop.permute.xlu1 %481  ;;  %v501_v1 = vld [vmem:[#allocation2 + $0x60] sm:$0x88]  ;;  %vm5311_vm14 = vmmov %vm5309_vm1 }
  0xa1   : > { %v2278_v55 = vcombine.high %v3652_v17, %v3652_v17  ;;  %v1564_v14 = vsel %vm4736_vm5, %v1558_v46, %v1563_v27  ;;  %v1559_v8 = vsel %vm420_vm11, %v1555_v54, %v1556_v37  ;;  %v2189_v36 = vshll.u32 %v2177_v31, 16  ;;  %v3910_v54 = vld [vmem:[%s3969_s15 + $0x2d] ss:$0 sps:$4 sm:$0xff]  }
  0xa2   : > { %v2192_v47 = vshll.u32 %v2184_v3, 16  ;;  %1565 = vst [vmem:[#allocation2 + $0x30] sm:$0x88] %v1564_v14  ;;  %v1560_v53 = vsel %vm5306_vm9, %v1551_v7, %v1559_v8  ;;  %3781 = vrot.lane.b32.xlu0 %v4360_v35, %s3935_s19  ;;  %v2060_v33 = vrot.slane %v2058_v10, 5  ;;  %v2293_v25 = vcombine.high %v2285_v44, %v2285_v44  ;;  %v504_v3 = vld [vmem:[#allocation2] sm:$0x88]  ;;  %vm5312_vm9 = vmmov %vm5309_vm1 }
  0xa3   : > { %v2300_v26 = vrot.slane %v2285_v44, %v3964_v5  ;;  %v1567_v32 = vsel %vm4736_vm5, %v1560_v53, %v1566_v4  ;;  %v485_v62 = vrot.slane %v480_v58, 4  ;;  %v486_v20 = vrot.slane %v482_v9, 4  ;;  %3786 = vrot.lane.b32.xlu1 %v4392_v30, %s3932_s16  ;;  %v4788_v44 = vld [vmem:[%s3969_s15 + $0x19] sm:$0x1f]  ;;  %v641_v53 = vld [vmem:[#allocation2 + $0x28] sm:$0x11] }
  0xa4   : > { %v2064_v28 = vrot.slane %v2062_v41, 5  ;;  %1568 = vst [vmem:[#allocation2 + $0x58] sm:$0x88] %v1567_v32  ;;  %v484_v17 = vpop.permute.xlu0 %483  ;;  %v4764_v35 = vpack.i.bf16 %v3118_v42, %v4542_v29  ;;  %v4766_v16 = vpack.i.bf16 %v1931_v57, %v1927_v60  ;;  %v2292_v7 = vrot.slane %v2278_v55, %v3964_v5  ;;  %v624_v38 = vpop.permute.xlu1 %623  ;;  %v638_v55 = vld [vmem:[#allocation2 + $0x38] sm:$0x11] }
  0xa5   : > { %v2417_v11 = vrot.slane %v3654_v12, %v3964_v5  ;;  %v488_v45 = vsel %vm420_vm11, %v485_v62, %v486_v20  ;;  %v487_v31 = vrot.slane %v484_v17, 4  ;;  %v4771_v15 = vpack.i.bf16 %v2192_v47, %v2189_v36  ;;  %v1878_v17 = vld [vmem:[#allocation2 + $0x40] sm:$0x44] }
  0xa6   : > { %v2410_v13 = vcombine.high %v3654_v12, %v3654_v12  ;;  %v489_v30 = vsel %vm422_vm3, %v480_v58, %v488_v45  ;;  %3791 = vrot.lane.b32.xlu0 %v4438_v19, %s3932_s16  ;;  %v4777_v29 = vpack.i.bf16 %v2060_v33, %v2056_v0  ;;  %v2307_v42 = vrot.slane %v2293_v25, %v3964_v5 }
  0xa7   : > { %v4780_v27 = vshll.u32 %v2300_v26, 16  ;;  %v502_v2 = vsel %vm4736_vm5, %v489_v30, %v501_v1  ;;  %v490_v57 = vsel %vm420_vm11, %v486_v20, %v487_v31  ;;  %v4785_v10 = vpack.i.bf16 %v2186_v40, %v2064_v28  ;;  %3796 = vrot.lane.b32.xlu1 %v4476_v39, %s3932_s16  ;;  %v1875_v1 = vld [vmem:[#allocation2 + $0x10] sm:$0x44] }
  0xa8   : > { %v1857_v48 = vrot.slane %v3910_v54, %v3964_v5  ;;  %503 = vst [vmem:[#allocation2 + $0x60] sm:$0x88] %v502_v2  ;;  %v491_v19 = vsel %vm422_vm3, %v482_v9, %v490_v57  ;;  %v626_v37 = vpop.permute.xlu0 %625  ;;  %v2314_v60 = vrot.slane %v2292_v7, %v3964_v5  ;;  %v2432_v41 = vrot.slane %v2417_v11, %v3964_v5  ;;  %v628_v14 = vpop.permute.xlu1 %627  ;;  %v769_v57 = vld [vmem:[#allocation2 + $0x38] sm:$0x22] }
  0xa9   : > { %v2425_v46 = vcombine.high %v2417_v11, %v2417_v11  ;;  %v505_v4 = vsel %vm4736_vm5, %v491_v19, %v504_v3  ;;  %v629_v58 = vrot.slane %v624_v38, 4  ;;  %v630_v0 = vrot.slane %v626_v37, 4 }
  0xaa   : > { %v1858_v40 = vcombine.high %v1857_v48, %v1857_v48  ;;  %506 = vst [vmem:[#allocation2] sm:$0x88] %v505_v4  ;;  %3801 = vrot.lane.b32.xlu0 %v4478_v51, %s3932_s16  ;;  %v2318_v8 = vrot.slane %v4780_v27, 7  ;;  %v2320_v39 = vshll.u32 %v2307_v42, 16  ;;  %v4802_v36 = vrot.slane %v2410_v13, %v3964_v5 }
  0xab   : > { %v4806_v47 = vrot.slane %v4788_v44, %v3964_v5  ;;  %v632_v12 = vsel %vm420_vm11, %v629_v58, %v630_v0  ;;  %v631_v9 = vrot.slane %v628_v14, 4  ;;  %v1865_v33 = vrot.slane %v1857_v48, %v3964_v5  ;;  %v3638_v4 = vld.sshfl [vmem:[%s3969_s15 + $0x19] sm:$0x55 pattern:$0x73625140] }
  0xac   : > { %v1872_v25 = vrot.slane %v1858_v40, %v3964_v5  ;;  %v633_v51 = vsel %vm422_vm3, %v624_v38, %v632_v12  ;;  %v754_v26 = vpop.permute.xlu0 %753  ;;  %v5307_v32 = vrot.slane %v4410_v63, 7  ;;  %v4815_v62 = vshll.u32 %v2314_v60, 16  ;;  %v756_v13 = vpop.permute.xlu1 %755  ;;  %v3642_v38 = vld.sshfl [vmem:[%s3969_s15 + $0x23] sm:$0x55 pattern:$0x73625140] }
  0xad   : > { %v4817_v20 = vshll.u32 %v2432_v41, 16  ;;  %v2543_v28 = vcombine.high %v4788_v44, %v4788_v44  ;;  %v639_v7 = vsel %vm4510_vm2, %v633_v51, %v638_v55  ;;  %v634_v11 = vsel %vm420_vm11, %v630_v0, %v631_v9  ;;  %v1728_v55 = vld [vmem:[#allocation2 + $0x10] sm:$0x11] }
  0xae   : > { %2858 = vrot.lane.b32.xlu1 %v5307_v32, %s3932_s16  ;;  %v4825_v45 = vrot.slane %v2425_v46, %v3964_v5  ;;  %v1876_v63 = vsel %vm4418_vm7, %v1865_v33, %v1875_v1  ;;  %640 = vst [vmem:[#allocation2 + $0x38] sm:$0x11] %v639_v7  ;;  %v635_v31 = vsel %vm422_vm3, %v626_v37, %v634_v11  ;;  %v4832_v54 = vrot.slane %v2320_v39, 7  ;;  %v772_v39 = vld [vmem:[#allocation2 + $0x28] sm:$0x22] }
  0xaf   : > { %3806 = vrot.lane.b32.xlu0 %v4527_v22, %s3933_s17  ;;  %v2558_v30 = vcombine.high %v4806_v47, %v4806_v47  ;;  %1877 = vst [vmem:[#allocation2 + $0x10] sm:$0x44] %v1876_v63  ;;  %v1879_v3 = vsel %vm4418_vm7, %v1872_v25, %v1878_v17  ;;  %v642_v42 = vsel %vm4510_vm2, %v635_v31, %v641_v53  ;;  %v759_v2 = vrot.slane %v754_v26, 4  ;;  %v1731_v32 = vld [vmem:[#allocation2 + $0x40] sm:$0x11] }
  0xb0   : > { %v760_v48 = vrot.slane %v756_v13, 4  ;;  %1880 = vst [vmem:[#allocation2 + $0x40] sm:$0x44] %v1879_v3  ;;  %v1783_v19 = vcombine.low %v3642_v38, %v3642_v38  ;;  %643 = vst [vmem:[#allocation2 + $0x28] sm:$0x11] %v642_v42  ;;  %v758_v22 = vpop.permute.xlu0 %757  ;;  %v2326_v37 = vrot.slane %v4815_v62, 7  ;;  %v2446_v41 = vrot.slane %v4802_v36, %v3964_v5  ;;  %v887_v12 = vpop.permute.xlu1 %886 }
  0xb1   : > { %v2450_v60 = vrot.slane %v4817_v20, 6  ;;  %v2565_v46 = vrot.slane %v4806_v47, %v3964_v5  ;;  %v761_v0 = vrot.slane %v758_v22, 4  ;;  %v1718_v40 = vrot.slane %v3638_v4, %v3964_v5  ;;  %v1800_v47 = vld [vmem:[#allocation2 + $0x10] sm:$0x22]  ;;  %v1803_v1 = vld [vmem:[#allocation2 + $0x40] sm:$0x22] }
  0xb2   : > { %3811 = vrot.lane.b32.xlu1 %v4681_v43, %s3933_s17  ;;  %v762_v58 = vsel %vm420_vm11, %v759_v2, %v760_v48  ;;  %v1790_v14 = vrot.slane %v1783_v19, %v3964_v5  ;;  %v4857_v36 = vrot.slane %v2558_v30, %v3964_v5  ;;  %v1711_v53 = vcombine.high %v3638_v4, %v3638_v4  ;;  %v3644_v63 = vld.sshfl [vmem:[%s3969_s15 + $0x28] sm:$0x55 pattern:$0x73625140]  ;;  %v901_v3 = vld [vmem:[#allocation2 + $0x38] sm:$0x44] }
  0xb3   : > { %v764_v43 = vsel %vm763_vm8, %v754_v26, %v762_v58  ;;  %3816 = vrot.lane.b32.xlu0 %v4764_v35, %s3933_s17  ;;  %v1797_v9 = vrot.slane %v3642_v38, %v3964_v5  ;;  %v765_v25 = vsel %vm420_vm11, %v760_v48, %v761_v0  ;;  %v892_v51 = vrot.slane %v887_v12, 4  ;;  %v3640_v22 = vld.sshfl [vmem:[%s3969_s15 + $0x1e] sm:$0x55 pattern:$0x73625140] }
  0xb4   : > { %v770_v33 = vsel %vm4538_vm12, %v764_v43, %v769_v57  ;;  %v1729_v26 = vsel %vm4510_vm2, %v1718_v40, %v1728_v55  ;;  %v766_v35 = vsel %vm763_vm8, %v756_v13, %v765_v25  ;;  %v889_v17 = vpop.permute.xlu0 %888  ;;  %v5308_v7 = vrot.slane %v4450_v61, %v3964_v5  ;;  %v891_v2 = vpop.permute.xlu1 %890 }
  0xb5   : > { %771 = vst [vmem:[#allocation2 + $0x38] sm:$0x22] %v770_v33  ;;  %1730 = vst [vmem:[#allocation2 + $0x10] sm:$0x11] %v1729_v26  ;;  %v1801_v11 = vsel %vm4538_vm12, %v1790_v14, %v1800_v47  ;;  %v1725_v31 = vrot.slane %v1711_v53, %v3964_v5  ;;  %v1804_v30 = vsel %vm4538_vm12, %v1797_v9, %v1803_v1  ;;  %v893_v38 = vrot.slane %v889_v17, 4 }
  0xb6   : > { %3179 = vrot.lane.b32.xlu1 %v5308_v7, %s3933_s17  ;;  %v773_v13 = vsel %vm4538_vm12, %v766_v35, %v772_v39  ;;  %1802 = vst [vmem:[#allocation2 + $0x10] sm:$0x22] %v1801_v11  ;;  %v1823_v61 = vrot.slane %v3644_v63, %v3964_v5  ;;  %1805 = vst [vmem:[#allocation2 + $0x40] sm:$0x22] %v1804_v30  ;;  %v1816_v42 = vcombine.high %v3644_v63, %v3644_v63  ;;  %v1034_v9 = vld [vmem:[#allocation2 + $0x38] sm:$0x88] }
  0xb7   : > { %774 = vst [vmem:[#allocation2 + $0x28] sm:$0x22] %v773_v13  ;;  %3181 = vrot.lane.b32.xlu0 %v4705_v24, %s3933_s17  ;;  %v2452_v57 = vshll.u32 %v4825_v45, 16  ;;  %v4882_v48 = vshll.u32 %v2446_v41, 16  ;;  %v4888_v19 = vrot.slane %v2543_v28, %v3964_v5  ;;  %v1732_v4 = vsel %vm4510_vm2, %v1725_v31, %v1731_v32  ;;  %v904_v41 = vld [vmem:[#allocation2 + $0x28] sm:$0x44] }
  0xb8   : > { %v895_v58 = vsel %vm420_vm11, %v892_v51, %v893_v38  ;;  %v894_v0 = vrot.slane %v891_v2, 4  ;;  %v1751_v40 = vrot.slane %v3640_v22, %v3964_v5  ;;  %v1832_v24 = vshll.u32 %v1823_v61, 16  ;;  %1733 = vst [vmem:[#allocation2 + $0x40] sm:$0x11] %v1732_v4  ;;  %v1020_v55 = vpop.permute.xlu0 %1019  ;;  %v1022_v33 = vpop.permute.xlu1 %1021 }
  0xb9   : > { %v896_v45 = vsel %vm763_vm8, %v887_v12, %v895_v58  ;;  %v4900_v44 = vshll.u32 %v2565_v46, 16  ;;  %v1744_v28 = vcombine.high %v3640_v22, %v3640_v22  ;;  %v1830_v14 = vrot.slane %v1816_v42, %v3964_v5 }
  0xba   : > { %3183 = vrot.lane.b32.xlu1 %v3178_v34, %s3933_s17  ;;  %v902_v43 = vsel %vm4418_vm7, %v896_v45, %v901_v3  ;;  %v897_v39 = vsel %vm420_vm11, %v893_v38, %v894_v0  ;;  %v2585_v47 = vshll.u32 %v4857_v36, 16  ;;  %v1760_v12 = vshll.u32 %v1751_v40, 16 }
  0xbb   : > { %903 = vst [vmem:[#allocation2 + $0x38] sm:$0x44] %v902_v43  ;;  %v898_v53 = vsel %vm763_vm8, %v889_v17, %v897_v39  ;;  %3821 = vrot.lane.b32.xlu0 %v4766_v16, %s3934_s18  ;;  %v1834_v6 = vrot.slane %v1832_v24, 7  ;;  %v1758_v34 = vrot.slane %v1744_v28, %v3964_v5  ;;  %v1836_v46 = vshll.u32 %v1830_v14, 16  ;;  %v2667_v24 = vld [vmem:[#allocation2 + $0x50] sm:$0x11] }
  0xbc   : > { %v905_v25 = vsel %vm4418_vm7, %v898_v53, %v904_v41  ;;  %v1025_v51 = vrot.slane %v1020_v55, 4  ;;  %v1026_v26 = vrot.slane %v1022_v33, 4  ;;  %v1767_v32 = vld [vmem:[#allocation2 + $0x10] sm:$0x11]  ;;  %v1024_v36 = vpop.permute.xlu0 %1023  ;;  %v3840_v1 = vpack.i.bf16 %v4832_v54, %v2318_v8  ;;  %v1037_v54 = vld [vmem:[#allocation2 + $0x28] sm:$0x88]  ;;  %v2653_v13 = vpop.permute.xlu1 %2652 }
  0xbd   : > { %906 = vst [vmem:[#allocation2 + $0x28] sm:$0x44] %v905_v25  ;;  %v3936_v16 = vmov 0   ;;  %v1768_v35 = vsel %vm4633_vm4, %v1760_v12, %v1767_v32  ;;  %v1841_v17 = vld [vmem:[#allocation2 + $0x10] sm:$0x22]  ;;  %v1763_v7 = vshll.u32 %v1758_v34, 16 }
  0xbe   : > { %3826 = vrot.lane.b32.xlu1 %v4777_v29, %s3934_s18  ;;  %3353 = vmatprep.mubr.bf16.mxu0 %v3936_v16  ;;  %v1838_v11 = vrot.slane %v1836_v46, 7  ;;  %v1844_v63 = vld [vmem:[#allocation2 + $0x40] sm:$0x22]  ;;  %v1028_v31 = vsel %vm420_vm11, %v1025_v51, %v1026_v26  ;;  %v1027_v30 = vrot.slane %v1024_v36, 4  ;;  %v2579_v29 = vrot.slane %v4888_v19, %v3964_v5  ;;  %1769 = vst [vmem:[#allocation2 + $0x10] sm:$0x11] %v1768_v35 }
  0xbf   : > { %3394 = vmatprep.mubr.bf16.mxu1 %v3936_v16  ;;  %v1842_v27 = vsel %vm4650_vm13, %v1834_v6, %v1841_v17  ;;  %v1029_v8 = vsel %vm763_vm8, %v1020_v55, %v1028_v31  ;;  %3831 = vrot.lane.b32.xlu0 %v4785_v10, %s3934_s18  ;;  %v2454_v3 = vrot.slane %v2452_v57, 6  ;;  %v2458_v38 = vrot.slane %v4882_v48, 6  ;;  %v1770_v61 = vld [vmem:[#allocation2 + $0x40] sm:$0x11]  ;;  %v2800_v51 = vld [vmem:[#allocation2 + $0x70] sm:$0x22] }
  0xc0   : > { %1843 = vst [vmem:[#allocation2 + $0x10] sm:$0x22] %v1842_v27  ;;  %v1845_v5 = vsel %vm4650_vm13, %v1838_v11, %v1844_v63  ;;  %v1035_v42 = vsel %vm4736_vm5, %v1029_v8, %v1034_v9  ;;  %v1030_v2 = vsel %vm420_vm11, %v1026_v26, %v1027_v30  ;;  %v1771_v19 = vsel %vm4633_vm4, %v1763_v7, %v1770_v61  ;;  %v2655_v57 = vpop.permute.xlu0 %2654  ;;  %v2657_v45 = vpop.permute.xlu1 %2656  ;;  %v2929_v63 = vld [vmem:[#allocation2 + $0x50] sm:$0x44] }
  0xc1   : > { %1846 = vst [vmem:[#allocation2 + $0x40] sm:$0x22] %v1845_v5  ;;  %1036 = vst [vmem:[#allocation2 + $0x38] sm:$0x88] %v1035_v42  ;;  %v1031_v10 = vsel %vm763_vm8, %v1022_v33, %v1030_v2  ;;  %v3845_v48 = vpack.i.bf16 %v2450_v60, %v2326_v37  ;;  %v2583_v22 = vrot.slane %v4900_v44, 5  ;;  %v2587_v4 = vrot.slane %v2585_v47, 5 }
  0xc2   : > { %3836 = vrot.lane.b32.xlu1 %v4771_v15, %s3934_s18  ;;  %1772 = vst [vmem:[#allocation2 + $0x40] sm:$0x11] %v1771_v19  ;;  %v1038_v58 = vsel %vm4736_vm5, %v1031_v10, %v1037_v54  ;;  %v2658_v0 = vrot.slane %v2653_v13, 4  ;;  %v2659_v40 = vrot.slane %v2655_v57, 4  ;;  %v3850_v15 = vpack.i.bf16 %v2458_v38, %v2454_v3  ;;  %v2670_v60 = vld [vmem:[#allocation2 + $0x70] sm:$0x11] }
  0xc3   : > { %1039 = vst [vmem:[#allocation2 + $0x28] sm:$0x88] %v1038_v58  ;;  %3841 = vrot.lane.b32.xlu0 %v3840_v1, %s3935_s19  ;;  %v2589_v41 = vshll.u32 %v2579_v29, 16  ;;  %v2660_v20 = vrot.slane %v2657_v45, 4  ;;  %v3855_v44 = vpack.i.bf16 %v2587_v4, %v2583_v22  ;;  %v2797_v33 = vld [vmem:[#allocation2 + $0x50] sm:$0x22] }
  0xc4   : > { %v2661_v62 = vsel %vm420_vm11, %v2658_v0, %v2659_v40  ;;  %v2783_v55 = vpop.permute.xlu0 %2782  ;;  %v2785_v39 = vpop.permute.xlu1 %2784  ;;  %v2932_v8 = vld [vmem:[#allocation2 + $0x70] sm:$0x44]  ;;  %v3062_v19 = vld [vmem:[#allocation2 + $0x50] sm:$0x88] }
  0xc5   : > { %v2662_v37 = vsel %vm1101_vm15, %v2653_v13, %v2661_v62  ;;  %v2663_v14 = vsel %vm420_vm11, %v2659_v40, %v2660_v20  ;;  %v2591_v47 = vrot.slane %v2589_v41, 5  ;;  %v2788_v53 = vrot.slane %v2783_v55, 4  ;;  %v3065_v4 = vld [vmem:[#allocation2 + $0x70] sm:$0x88] }
  0xc6   : > { %3846 = vrot.lane.b32.xlu1 %v3845_v48, %s3935_s19  ;;  %v2668_v28 = vsel %vm4510_vm2, %v2662_v37, %v2667_v24  ;;  %v2664_v43 = vsel %vm1101_vm15, %v2655_v57, %v2663_v14  ;;  %v2789_v9 = vrot.slane %v2785_v39, 4 }
  0xc7   : > { %2669 = vst [vmem:[#allocation2 + $0x50] sm:$0x11] %v2668_v28  ;;  %3851 = vrot.lane.b32.xlu0 %v3850_v15, %s3935_s19  ;;  %v2671_v12 = vsel %vm4510_vm2, %v2664_v43, %v2670_v60 }
  0xc8   : > { %2672 = vst [vmem:[#allocation2 + $0x70] sm:$0x11] %v2671_v12  ;;  %v2787_v6 = vpop.permute.xlu0 %2786  ;;  %v2791_v34 = vsel %vm420_vm11, %v2788_v53, %v2789_v9  ;;  %v2915_v26 = vpop.permute.xlu1 %2914 }
  0xc9   : > { %v2790_v46 = vrot.slane %v2787_v6, 4  ;;  %v2792_v25 = vsel %vm1101_vm15, %v2783_v55, %v2791_v34  ;;  %v2920_v7 = vrot.slane %v2915_v26, 4 }
  0xca   : > { %3856 = vrot.lane.b32.xlu1 %v3855_v44, %s3932_s16  ;;  %v2798_v32 = vsel %vm4538_vm12, %v2792_v25, %v2797_v33 }
  0xcb   : > { %2596 = vrot.lane.b32.xlu0 %v2591_v47, %s3932_s16  ;;  %v2793_v36 = vsel %vm420_vm11, %v2789_v9, %v2790_v46  ;;  %2799 = vst [vmem:[#allocation2 + $0x50] sm:$0x22] %v2798_v32  ;;  %v1239_v32 = vld [vmem:[#allocation2 + $0x58] sm:$0x11] }
  0xcc   : > { %v2794_v1 = vsel %vm1101_vm15, %v2785_v39, %v2793_v36  ;;  %v2917_v35 = vpop.permute.xlu0 %2916  ;;  %v2919_v31 = vpop.permute.xlu1 %2918  ;;  %v1236_v39 = vld [vmem:[#allocation2 + $0x30] sm:$0x11] }
  0xcd   : > { %v2801_v17 = vsel %vm4538_vm12, %v2794_v1, %v2800_v51  ;;  %v2921_v11 = vrot.slane %v2917_v35, 4  ;;  %v2922_v29 = vrot.slane %v2919_v31, 4 }
  0xce   : > { %2802 = vst [vmem:[#allocation2 + $0x70] sm:$0x22] %v2801_v17 }
  0xcf   : > { %v2923_v30 = vsel %vm420_vm11, %v2920_v7, %v2921_v11  ;;  %v2925_v3 = vsel %vm420_vm11, %v2921_v11, %v2922_v29  ;;  %v1369_v11 = vld [vmem:[#allocation2 + $0x30] sm:$0x22] }
  0xd0   : > { %v2924_v27 = vsel %vm5309_vm1, %v2915_v26, %v2923_v30  ;;  %v3048_v54 = vpop.permute.xlu0 %3047  ;;  %v2926_v38 = vsel %vm5310_vm6, %v2917_v35, %v2925_v3  ;;  %v3050_v61 = vpop.permute.xlu1 %3049  ;;  %vm5313_vm6 = vmmov %vm5309_vm1 }
  0xd1   : > { %v2930_v13 = vsel %vm4418_vm7, %v2924_v27, %v2929_v63  ;;  %v2933_v5 = vsel %vm4418_vm7, %v2926_v38, %v2932_v8  ;;  %v3053_v42 = vrot.slane %v3048_v54, 4  ;;  %v3054_v2 = vrot.slane %v3050_v61, 4  ;;  %v1372_v63 = vld [vmem:[#allocation2 + $0x58] sm:$0x22] }
  0xd2   : > { %2931 = vst [vmem:[#allocation2 + $0x50] sm:$0x44] %v2930_v13  ;;  %2934 = vst [vmem:[#allocation2 + $0x70] sm:$0x44] %v2933_v5 }
  0xd3   : > { %v3056_v57 = vsel %vm420_vm11, %v3053_v42, %v3054_v2 }
  0xd4   : > { %v3052_v10 = vpop.permute.xlu0 %3051  ;;  %v3057_v22 = vsel %vm5311_vm14, %v3048_v54, %v3056_v57  ;;  %v3717_v58 = vpop.permute.xlu1 %3716  ;;  %vm5314_vm14 = vmmov %vm5309_vm1 }
  0xd5   : > { %v3055_v48 = vrot.slane %v3052_v10, 4  ;;  %v3063_v0 = vsel %vm4736_vm5, %v3057_v22, %v3062_v19  ;;  %v3719_v24 = vunpack.i.h.bf16 %v3717_v58  ;;  %v3718_v45 = vunpack.i.l.bf16 %v3717_v58 }
  0xd6   : > { %3064 = vst [vmem:[#allocation2 + $0x50] sm:$0x88] %v3063_v0 }
  0xd7   : > { %v3058_v40 = vsel %vm420_vm11, %v3054_v2, %v3055_v48  ;;  %v1228_v20 = vrot.slane %v3719_v24, 4  ;;  %v1227_v37 = vrot.slane %v3718_v45, 4  ;;  %v1502_v2 = vld [vmem:[#allocation2 + $0x30] sm:$0x44] }
  0xd8   : > { %v3059_v15 = vsel %vm5312_vm9, %v3050_v61, %v3058_v40  ;;  %v3722_v41 = vpop.permute.xlu0 %3721  ;;  %v3727_v44 = vpop.permute.xlu1 %3726  ;;  %vm5315_vm9 = vmmov %vm5309_vm1 }
  0xd9   : > { %v3066_v62 = vsel %vm4736_vm5, %v3059_v15, %v3065_v4  ;;  %v3724_v60 = vunpack.i.h.bf16 %v3722_v41  ;;  %v3723_v55 = vunpack.i.l.bf16 %v3722_v41  ;;  %v1230_v28 = vsel %vm420_vm11, %v1227_v37, %v1228_v20 }
  0xda   : > { %3067 = vst [vmem:[#allocation2 + $0x70] sm:$0x88] %v3066_v62  ;;  %v3729_v14 = vunpack.i.h.bf16 %v3727_v44  ;;  %v3728_v43 = vunpack.i.l.bf16 %v3727_v44  ;;  %v1231_v47 = vsel %vm1101_vm15, %v3718_v45, %v1230_v28  ;;  %v1505_v45 = vld [vmem:[#allocation2 + $0x58] sm:$0x44]  ;;  %v1638_v44 = vld [vmem:[#allocation2 + $0x58] sm:$0x88] }
  0xdb   : > { %v1360_v12 = vrot.slane %v3724_v60, 4  ;;  %v1229_v53 = vrot.slane %v3723_v55, 4  ;;  %v1237_v33 = vsel %vm4633_vm4, %v1231_v47, %v1236_v39  ;;  %v1635_v55 = vld [vmem:[#allocation2 + $0x30] sm:$0x88] }
  0xdc   : > { %v3732_v9 = vpop.permute.xlu0 %3731  ;;  %v1362_v6 = vrot.slane %v3729_v14, 4  ;;  %v1361_v34 = vrot.slane %v3728_v43, 4  ;;  %1238 = vst [vmem:[#allocation2 + $0x30] sm:$0x11] %v1237_v33  ;;  %v3737_v26 = vpop.permute.xlu1 %3736 }
  0xdd   : > { %v3734_v46 = vunpack.i.h.bf16 %v3732_v9  ;;  %v1232_v25 = vsel %vm420_vm11, %v1228_v20, %v1229_v53  ;;  %v3733_v51 = vunpack.i.l.bf16 %v3732_v9  ;;  %v3739_v13 = vunpack.i.h.bf16 %v3737_v26  ;;  %v1695_v20 = vld [vmem:[#allocation2 + $0x8] sm:$0x11] }
  0xde   : > { %v1233_v36 = vsel %vm1101_vm15, %v3719_v24, %v1232_v25  ;;  %v1363_v1 = vsel %vm420_vm11, %v1360_v12, %v1361_v34  ;;  %v1365_v35 = vsel %vm420_vm11, %v1361_v34, %v1362_v6  ;;  %v3738_v3 = vunpack.i.l.bf16 %v3737_v26  ;;  %v1698_v6 = vld [vmem:[#allocation2 + $0x18] sm:$0x11] }
  0xdf   : > { %v1494_v17 = vrot.slane %v3734_v46, 4  ;;  %v1240_v7 = vsel %vm4633_vm4, %v1233_v36, %v1239_v32  ;;  %v1364_v31 = vsel %vm1101_vm15, %v3724_v60, %v1363_v1  ;;  %v1366_v30 = vsel %vm1101_vm15, %v3728_v43, %v1365_v35  ;;  %v2008_v36 = vld [vmem:[#allocation2 + $0x10] sm:$0x88] }
  0xe0   : > { %v1493_v29 = vrot.slane %v3733_v51, 4  ;;  %v3742_v27 = vpop.permute.xlu0 %3741  ;;  %1241 = vst [vmem:[#allocation2 + $0x58] sm:$0x11] %v1240_v7  ;;  %v1370_v8 = vsel %vm4650_vm13, %v1364_v31, %v1369_v11  ;;  %v1373_v54 = vsel %vm4650_vm13, %v1366_v30, %v1372_v63  ;;  %v1681_v42 = vpop.permute.xlu1 %1680  ;;  %v1495_v10 = vrot.slane %v3738_v3, 4  ;;  %v2011_v31 = vld [vmem:[#allocation2 + $0x40] sm:$0x88] }
  0xe1   : > { %1371 = vst [vmem:[#allocation2 + $0x30] sm:$0x22] %v1370_v8  ;;  %1374 = vst [vmem:[#allocation2 + $0x58] sm:$0x22] %v1373_v54  ;;  %v3744_v61 = vunpack.i.h.bf16 %v3742_v27  ;;  %v3743_v5 = vunpack.i.l.bf16 %v3742_v27  ;;  %v1626_v48 = vrot.slane %v3739_v13, 4  ;;  %v1686_v40 = vrot.slane %v1681_v42, 4 }
  0xe2   : > { %v1496_v38 = vsel %vm420_vm11, %v1493_v29, %v1494_v17  ;;  %v1498_v0 = vsel %vm420_vm11, %v1494_v17, %v1495_v10  ;;  %v3937_v7 = vmov 65535  }
  0xe3   : > { %v1497_v19 = vsel %vm5309_vm1, %v3733_v51, %v1496_v38  ;;  %v1628_v22 = vrot.slane %v3744_v61, 4  ;;  %v1627_v4 = vrot.slane %v3743_v5, 4  ;;  %v1499_v15 = vsel %vm5313_vm6, %v3734_v46, %v1498_v0  ;;  %vm5316_vm6 = vmmov %vm5309_vm1 }
  0xe4   : > { %v1503_v57 = vsel %vm4452_vm0, %v1497_v19, %v1502_v2  ;;  %v1683_v58 = vpop.permute.xlu0 %1682  ;;  %v1685_v37 = vpop.permute.xlu1 %1684  ;;  %v1506_v60 = vsel %vm4452_vm0, %v1499_v15, %v1505_v45  ;;  %v3295_v11 = vsel %vm420_vm11, 4294967295, %v3937_v7 }
  0xe5   : > { %1504 = vst [vmem:[#allocation2 + $0x30] sm:$0x44] %v1503_v57  ;;  %v1687_v24 = vrot.slane %v1683_v58, 4  ;;  %v1629_v41 = vsel %vm420_vm11, %v1626_v48, %v1627_v4  ;;  %v1631_v62 = vsel %vm420_vm11, %v1627_v4, %v1628_v22  ;;  %1507 = vst [vmem:[#allocation2 + $0x58] sm:$0x44] %v1506_v60  ;;  %v1688_v53 = vrot.slane %v1685_v37, 4 }
  0xe6   : > { %v1630_v28 = vsel %vm5314_vm14, %v3739_v13, %v1629_v41  ;;  %v1632_v14 = vsel %vm5315_vm9, %v3743_v5, %v1631_v62  ;;  %vm3294_vm14 = vcmask 1044480   ;;  %v2143_v4 = vld [vmem:[#allocation2 + $0x68] sm:$0x11]  ;;  %vm5319_vm9 = vmmov %vm5309_vm1 }
  0xe7   : > { %v1689_v43 = vsel %vm420_vm11, %v1686_v40, %v1687_v24  ;;  %v1636_v39 = vsel %vm4484_vm10, %v1630_v28, %v1635_v55  ;;  %v1639_v47 = vsel %vm4484_vm10, %v1632_v14, %v1638_v44  ;;  %v1691_v34 = vsel %vm420_vm11, %v1687_v24, %v1688_v53  ;;  %v2270_v14 = vld [vmem:[#allocation2 + $0x20] sm:$0x22] }
  0xe8   : > { %v1690_v12 = vsel %vm5309_vm1, %v1681_v42, %v1689_v43  ;;  %v1994_v9 = vpop.permute.xlu0 %1993  ;;  %1637 = vst [vmem:[#allocation2 + $0x30] sm:$0x88] %v1636_v39  ;;  %1640 = vst [vmem:[#allocation2 + $0x58] sm:$0x88] %v1639_v47  ;;  %v1996_v46 = vpop.permute.xlu1 %1995  ;;  %v1692_v25 = vsel %vm5316_vm6, %v1683_v58, %v1691_v34  ;;  %v5032_v3 = vsel %vm3294_vm14, %v3295_v11, 0 }
  0xe9   : > { %v1696_v33 = vsel %vm4510_vm2, %v1690_v12, %v1695_v20  ;;  %v1999_v51 = vrot.slane %v1994_v9, 4  ;;  %v2000_v26 = vrot.slane %v1996_v46, 4  ;;  %v1699_v32 = vsel %vm4510_vm2, %v1692_v25, %v1698_v6  ;;  %v2140_v42 = vld [vmem:[#allocation2 + $0x20] sm:$0x11]  ;;  %v2405_v11 = vld [vmem:[#allocation2 + $0x68] sm:$0x44]  ;;  %vm5320_vm6 = vmmov %vm5309_vm1 }
  0xea   : > { %1697 = vst [vmem:[#allocation2 + $0x8] sm:$0x11] %v1696_v33  ;;  %1700 = vst [vmem:[#allocation2 + $0x18] sm:$0x11] %v1699_v32 }
  0xeb   : > { %v2002_v35 = vsel %vm420_vm11, %v1999_v51, %v2000_v26  ;;  %vm5321_vm14 = vmmov %vm5309_vm1 }
  0xec   : > { %v1998_v1 = vpop.permute.xlu0 %1997  ;;  %v2003_v63 = vsel %vm422_vm3, %v1994_v9, %v2002_v35  ;;  %v2126_v30 = vpop.permute.xlu1 %2125  ;;  %v2273_v9 = vld [vmem:[#allocation2 + $0x68] sm:$0x22] }
  0xed   : > { %v2001_v17 = vrot.slane %v1998_v1, 4  ;;  %v2009_v29 = vsel %vm4736_vm5, %v2003_v63, %v2008_v36  ;;  %v2131_v54 = vrot.slane %v2126_v30, 4  ;;  %v2402_v36 = vld [vmem:[#allocation2 + $0x20] sm:$0x44] }
  0xee   : > { %2010 = vst [vmem:[#allocation2 + $0x10] sm:$0x88] %v2009_v29 }
  0xef   : > { %v2004_v27 = vsel %vm420_vm11, %v2000_v26, %v2001_v17  ;;  %v3210_v40 = vld [vmem:[#allocation2 + $0x58] sm:$0xff] }
  0xf0   : > { %v2005_v8 = vsel %vm422_vm3, %v1996_v46, %v2004_v27  ;;  %v2128_v13 = vpop.permute.xlu0 %2127  ;;  %v2130_v2 = vpop.permute.xlu1 %2129 }
  0xf1   : > { %v2012_v38 = vsel %vm4736_vm5, %v2005_v8, %v2011_v31  ;;  %v2132_v61 = vrot.slane %v2128_v13, 4  ;;  %v3900_v5 = vld [vmem:[#allocation2 + $0x34] ss:$-40 sps:$4 sm:$0x1f]   ;;  %v2133_v57 = vrot.slane %v2130_v2, 4 }
  0xf2   : > { %2013 = vst [vmem:[#allocation2 + $0x40] sm:$0x88] %v2012_v38  ;;  %v3902_v19 = vld [vmem:[#allocation2 + $0x30] ss:$-40 sps:$4 sm:$0x1f]   ;;  %v3301_v48 = vand.u32 %v3900_v5, %v5032_v3 }
  0xf3   : > { %v2134_v10 = vsel %vm420_vm11, %v2131_v54, %v2132_v61  ;;  %v3298_v0 = vand.u32 %v3902_v19, %v5032_v3  ;;  %v3214_v24 = vld [vmem:[#allocation2 + $0x18] sm:$0x11]  ;;  %v2136_v15 = vsel %vm420_vm11, %v2132_v61, %v2133_v57  ;;  %v2538_v2 = vld [vmem:[#allocation2 + $0x68] sm:$0x88] }
  0xf4   : > { %v2135_v22 = vsel %vm422_vm3, %v2126_v30, %v2134_v10  ;;  %v2256_v58 = vpop.permute.xlu0 %2255  ;;  %3333 = vmatprep.subr.bf16.mxu0 %v3301_v48  ;;  %v3677_v41 = vcombine.high %v3210_v40, %v3214_v24  ;;  %v2137_v62 = vsel %vm422_vm3, %v2128_v13, %v2136_v15  ;;  %v2258_v20 = vpop.permute.xlu1 %2257  ;;  %v3676_v37 = vcombine.low %v3210_v40, %v3214_v24  ;;  %v2535_v13 = vld [vmem:[#allocation2 + $0x20] sm:$0x88] }
  0xf5   : > { %v2141_v45 = vsel %vm4510_vm2, %v2135_v22, %v2140_v42  ;;  %3334 = vmatpush1.bf16.msra.mxu0 %v3298_v0  ;;  %v2144_v60 = vsel %vm4510_vm2, %v2137_v62, %v2143_v4  ;;  %v2261_v55 = vrot.slane %v2256_v58, 4  ;;  %v2262_v44 = vrot.slane %v2258_v20, 4 }
  0xf6   : > { %2142 = vst [vmem:[#allocation2 + $0x20] sm:$0x11] %v2141_v45  ;;  %v3307_v28 = vand.u32 %v3677_v41, %v5032_v3  ;;  %2145 = vst [vmem:[#allocation2 + $0x68] sm:$0x11] %v2144_v60  ;;  %v3304_v39 = vand.u32 %v3676_v37, %v5032_v3  ;;  %v433_v45 = vld [vmem:[#allocation2 + $0x60] sm:$0x44] }
  0xf7   : > { %v2264_v47 = vsel %vm420_vm11, %v2261_v55, %v2262_v44 }
  0xf8   : > { %v2260_v43 = vpop.permute.xlu0 %2259  ;;  %3374 = vmatprep.subr.bf16.mxu1 %v3307_v28  ;;  %v2265_v53 = vsel %vm763_vm8, %v2256_v58, %v2264_v47  ;;  %v2388_v33 = vpop.permute.xlu1 %2387 }
  0xf9   : > { %v2263_v12 = vrot.slane %v2260_v43, 4  ;;  %3375 = vmatpush1.bf16.msra.mxu1 %v3304_v39  ;;  %v2271_v6 = vsel %vm4538_vm12, %v2265_v53, %v2270_v14  ;;  %v2393_v26 = vrot.slane %v2388_v33, 4  ;;  %v436_v14 = vld [vmem:[#allocation2] sm:$0x44] }
  0xfa   : > { %2272 = vst [vmem:[#allocation2 + $0x20] sm:$0x22] %v2271_v6 }
  0xfb   : > { %v2266_v34 = vsel %vm420_vm11, %v2262_v44, %v2263_v12 }
  0xfc   : > { %v2267_v46 = vsel %vm763_vm8, %v2258_v20, %v2266_v34  ;;  %v2390_v25 = vpop.permute.xlu0 %2389  ;;  %v2392_v1 = vpop.permute.xlu1 %2391 }
  0xfd   : > { %v2274_v51 = vsel %vm4538_vm12, %v2267_v46, %v2273_v9  ;;  %v2394_v32 = vrot.slane %v2390_v25, 4  ;;  %v2395_v17 = vrot.slane %v2392_v1, 4  ;;  %vm5317_vm12 = vmmov %vm5309_vm1 }
  0xfe   : > { %2275 = vst [vmem:[#allocation2 + $0x68] sm:$0x22] %v2274_v51  ;;  %v578_v51 = vld [vmem:[#allocation2 + $0x60] sm:$0x88] }
  0xff   : > { %v2396_v35 = vsel %vm420_vm11, %v2393_v26, %v2394_v32  ;;  %v2398_v30 = vsel %vm420_vm11, %v2394_v32, %v2395_v17  ;;  %v581_v26 = vld [vmem:[#allocation2] sm:$0x88] }
 0x100   : > { %v2397_v7 = vsel %vm763_vm8, %v2388_v33, %v2396_v35  ;;  %v2521_v63 = vpop.permute.xlu0 %2520  ;;  %v2399_v52 = vsel %vm763_vm8, %v2390_v25, %v2398_v30  ;;  %v2523_v29 = vpop.permute.xlu1 %2522 }
 0x101   : > { %v2403_v31 = vsel %vm4418_vm7, %v2397_v7, %v2402_v36  ;;  %v2406_v27 = vsel %vm4418_vm7, %v2399_v52, %v2405_v11  ;;  %v2526_v8 = vrot.slane %v2521_v63, 4  ;;  %v2527_v54 = vrot.slane %v2523_v29, 4 }
 0x102   : > { %2404 = vst [vmem:[#allocation2 + $0x20] sm:$0x44] %v2403_v31  ;;  %2407 = vst [vmem:[#allocation2 + $0x68] sm:$0x44] %v2406_v27  ;;  %vm3289_vm7 = vcmask 203776  }
 0x103   : > { %v2529_v61 = vsel %vm420_vm11, %v2526_v8, %v2527_v54 }
 0x104   : > { %v2525_v38 = vpop.permute.xlu0 %2524  ;;  %v2530_v42 = vsel %vm763_vm8, %v2521_v63, %v2529_v61  ;;  %v3747_v19 = vpop.permute.xlu1 %3746 }
 0x105   : > { %v2528_v5 = vrot.slane %v2525_v38, 4  ;;  %v2536_v10 = vsel %vm4736_vm5, %v2530_v42, %v2535_v13  ;;  %v3749_v48 = vunpack.i.h.bf16 %v3747_v19  ;;  %v3748_v23 = vunpack.i.l.bf16 %v3747_v19 }
 0x106   : > { %2537 = vst [vmem:[#allocation2 + $0x20] sm:$0x88] %v2536_v10 }
 0x107   : > { %v2531_v57 = vsel %vm420_vm11, %v2527_v54, %v2528_v5  ;;  %v418_v0 = vrot.slane %v3749_v48, 4  ;;  %v417_v40 = vrot.slane %v3748_v23, 4 }
 0x108   : > { %v2532_v22 = vsel %vm763_vm8, %v2523_v29, %v2531_v57  ;;  %v3752_v4 = vpop.permute.xlu0 %3751  ;;  %v707_v29 = vld [vmem:[#allocation2 + $0x38] sm:$0x11]  ;;  %v710_v57 = vld [vmem:[#allocation2 + $0x28] sm:$0x11] }
 0x109   : > { %v2539_v58 = vsel %vm4736_vm5, %v2532_v22, %v2538_v2  ;;  %v3754_v24 = vunpack.i.h.bf16 %v3752_v4  ;;  %v3753_v15 = vunpack.i.l.bf16 %v3752_v4  ;;  %v3757_v41 = vpop.permute.xlu1 %3756  ;;  %v421_v62 = vsel %vm420_vm11, %v417_v40, %v418_v0  ;;  %v841_v40 = vld [vmem:[#allocation2 + $0x38] sm:$0x22]  ;;  %vm5318_vm5 = vmmov %vm5309_vm1 }
 0x10a   : > { %2540 = vst [vmem:[#allocation2 + $0x68] sm:$0x88] %v2539_v58  ;;  %v3759_v20 = vunpack.i.h.bf16 %v3757_v41  ;;  %v3758_v37 = vunpack.i.l.bf16 %v3757_v41  ;;  %v423_v60 = vsel %vm422_vm3, %v3748_v23, %v421_v62 }
 0x10b   : > { %v564_v55 = vrot.slane %v3754_v24, 4  ;;  %v419_v44 = vrot.slane %v3753_v15, 4  ;;  %v434_v50 = vsel %vm4452_vm0, %v423_v60, %v433_v45 }
 0x10c   : > { %v3762_v28 = vpop.permute.xlu0 %3761  ;;  %v566_v43 = vrot.slane %v3759_v20, 4  ;;  %v565_v39 = vrot.slane %v3758_v37, 4  ;;  %435 = vst [vmem:[#allocation2 + $0x60] sm:$0x44] %v434_v50 }
 0x10d   : > { %v3764_v47 = vunpack.i.h.bf16 %v3762_v28  ;;  %v424_v12 = vsel %vm420_vm11, %v418_v0, %v419_v44  ;;  %v3763_v53 = vunpack.i.l.bf16 %v3762_v28  ;;  %v5077_v9 = vpop.permute.xlu1 %3766 }
 0x10e   : > { %v425_v33 = vsel %vm422_vm3, %v3749_v48, %v424_v12  ;;  %v567_v6 = vsel %vm420_vm11, %v564_v55, %v565_v39  ;;  %v569_v34 = vsel %vm420_vm11, %v565_v39, %v566_v43  ;;  %v3768_v11 = vunpack.i.l.bf16 %v5077_v9  ;;  %v844_v55 = vld [vmem:[#allocation2 + $0x28] sm:$0x22]  ;;  %v973_v39 = vld [vmem:[#allocation2 + $0x38] sm:$0x44] }
 0x10f   : > { %v699_v46 = vrot.slane %v3764_v47, 4  ;;  %v437_v25 = vsel %vm4452_vm0, %v425_v33, %v436_v14  ;;  %v568_v32 = vsel %vm422_vm3, %v3754_v24, %v567_v6  ;;  %v570_v36 = vsel %vm422_vm3, %v3758_v37, %v569_v34 }
 0x110   : > { %v698_v1 = vrot.slane %v3763_v53, 4  ;;  %v3772_v35 = vpop.permute.xlu0 %3771  ;;  %438 = vst [vmem:[#allocation2] sm:$0x44] %v437_v25  ;;  %v579_v17 = vsel %vm4484_vm10, %v568_v32, %v578_v51  ;;  %v582_v7 = vsel %vm4484_vm10, %v570_v36, %v581_v26  ;;  %v700_v8 = vrot.slane %v3768_v11, 4  ;;  %v1107_v11 = vld [vmem:[#allocation2 + $0x38] sm:$0x88] }
 0x111   : > { %580 = vst [vmem:[#allocation2 + $0x60] sm:$0x88] %v579_v17  ;;  %583 = vst [vmem:[#allocation2] sm:$0x88] %v582_v7  ;;  %v3774_v31 = vunpack.i.h.bf16 %v3772_v35  ;;  %v3773_v30 = vunpack.i.l.bf16 %v3772_v35  ;;  %v3777_v52 = vpop.permute.xlu1 %3776 }
 0x112   : > { %v701_v63 = vsel %vm420_vm11, %v698_v1, %v699_v46  ;;  %v3779_v54 = vunpack.i.h.bf16 %v3777_v52  ;;  %v3778_v5 = vunpack.i.l.bf16 %v3777_v52  ;;  %v703_v2 = vsel %vm420_vm11, %v699_v46, %v700_v8 }
 0x113   : > { %v702_v27 = vsel %vm422_vm3, %v3763_v53, %v701_v63  ;;  %v833_v38 = vrot.slane %v3774_v31, 4  ;;  %v832_v61 = vrot.slane %v3773_v30, 4  ;;  %v704_v48 = vsel %vm422_vm3, %v3764_v47, %v703_v2  ;;  %v976_v47 = vld [vmem:[#allocation2 + $0x28] sm:$0x44]  ;;  %v1110_v2 = vld [vmem:[#allocation2 + $0x28] sm:$0x88] }
 0x114   : > { %v708_v13 = vsel %vm4633_vm4, %v702_v27, %v707_v29  ;;  %v3782_v42 = vpop.permute.xlu0 %3781  ;;  %v964_v22 = vrot.slane %v3779_v54, 4  ;;  %v834_v4 = vrot.slane %v3778_v5, 4  ;;  %v711_v0 = vsel %vm4633_vm4, %v704_v48, %v710_v57  ;;  %v2739_v57 = vld [vmem:[#allocation2 + $0x70] sm:$0x11] }
 0x115   : > { %709 = vst [vmem:[#allocation2 + $0x38] sm:$0x11] %v708_v13  ;;  %v3784_v19 = vunpack.i.h.bf16 %v3782_v42  ;;  %v3783_v10 = vunpack.i.l.bf16 %v3782_v42  ;;  %v835_v23 = vsel %vm420_vm11, %v832_v61, %v833_v38  ;;  %v3787_v58 = vpop.permute.xlu1 %3786  ;;  %712 = vst [vmem:[#allocation2 + $0x28] sm:$0x11] %v711_v0 }
 0x116   : > { %v836_v24 = vsel %vm763_vm8, %v3773_v30, %v835_v23  ;;  %v837_v62 = vsel %vm420_vm11, %v833_v38, %v834_v4  ;;  %v3789_v20 = vunpack.i.h.bf16 %v3787_v58  ;;  %v3788_v37 = vunpack.i.l.bf16 %v3787_v58 }
 0x117   : > { %v966_v45 = vrot.slane %v3784_v19, 4  ;;  %v965_v15 = vrot.slane %v3783_v10, 4  ;;  %v842_v41 = vsel %vm4650_vm13, %v836_v24, %v841_v40  ;;  %v838_v44 = vsel %vm763_vm8, %v3774_v31, %v837_v62  ;;  %v2869_v40 = vld [vmem:[#allocation2 + $0x50] sm:$0x22] }
 0x118   : > { %v3792_v60 = vpop.permute.xlu0 %3791  ;;  %843 = vst [vmem:[#allocation2 + $0x38] sm:$0x22] %v842_v41  ;;  %v845_v43 = vsel %vm4650_vm13, %v838_v44, %v844_v55  ;;  %v1098_v33 = vrot.slane %v3789_v20, 4  ;;  %v1097_v25 = vrot.slane %v3788_v37, 4 }
 0x119   : > { %v967_v28 = vsel %vm420_vm11, %v964_v22, %v965_v15  ;;  %v969_v50 = vsel %vm420_vm11, %v965_v15, %v966_v45  ;;  %v3794_v14 = vunpack.i.h.bf16 %v3792_v60  ;;  %v3797_v6 = vpop.permute.xlu1 %3796  ;;  %846 = vst [vmem:[#allocation2 + $0x28] sm:$0x22] %v845_v43  ;;  %v3793_v51 = vunpack.i.l.bf16 %v3792_v60 }
 0x11a   : > { %v968_v12 = vsel %vm763_vm8, %v3779_v54, %v967_v28  ;;  %v970_v53 = vsel %vm763_vm8, %v3783_v10, %v969_v50  ;;  %v3799_v26 = vunpack.i.h.bf16 %v3797_v6  ;;  %v3798_v32 = vunpack.i.l.bf16 %v3797_v6  ;;  %v2736_v10 = vld [vmem:[#allocation2 + $0x50] sm:$0x11] }
 0x11b   : > { %v974_v34 = vsel %vm4452_vm0, %v968_v12, %v973_v39  ;;  %v977_v46 = vsel %vm4452_vm0, %v970_v53, %v976_v47  ;;  %v1100_v1 = vsel %vm420_vm11, %v1097_v25, %v1098_v33  ;;  %v2727_v35 = vrot.slane %v3794_v14, 4 }
 0x11c   : > { %975 = vst [vmem:[#allocation2 + $0x38] sm:$0x44] %v974_v34  ;;  %978 = vst [vmem:[#allocation2 + $0x28] sm:$0x44] %v977_v46  ;;  %v3802_v36 = vpop.permute.xlu0 %3801  ;;  %v1102_v63 = vsel %vm1101_vm15, %v3788_v37, %v1100_v1  ;;  %v1099_v31 = vrot.slane %v3793_v51, 4  ;;  %v2729_v30 = vrot.slane %v3799_v26, 4 }
 0x11d   : > { %v3804_v17 = vunpack.i.h.bf16 %v3802_v36  ;;  %v3803_v7 = vunpack.i.l.bf16 %v3802_v36  ;;  %v2728_v52 = vrot.slane %v3798_v32, 4  ;;  %v1108_v27 = vsel %vm4484_vm10, %v1102_v63, %v1107_v11  ;;  %v2872_v37 = vld [vmem:[#allocation2 + $0x70] sm:$0x22]  ;;  %v3001_v46 = vld [vmem:[#allocation2 + $0x50] sm:$0x44] }
 0x11e   : > { %1109 = vst [vmem:[#allocation2 + $0x38] sm:$0x88] %v1108_v27  ;;  %v1103_v38 = vsel %vm420_vm11, %v1098_v33, %v1099_v31  ;;  %v3194_v36 = vld [vmem:[#allocation2 + $0x78] sm:$0x11] }
 0x11f   : > { %v2861_v8 = vrot.slane %v3804_v17, 4  ;;  %v2860_v54 = vrot.slane %v3803_v7, 4  ;;  %v2730_v61 = vsel %vm420_vm11, %v2727_v35, %v2728_v52  ;;  %v2732_v5 = vsel %vm420_vm11, %v2728_v52, %v2729_v30  ;;  %v5148_v30 = vld [vmem:[%s5245_s1] sm:$0xf] }
 0x120   : > { %v2859_v29 = vpop.permute.xlu1 %2858  ;;  %v1104_v19 = vsel %vm1101_vm15, %v3789_v20, %v1103_v38  ;;  %v2731_v48 = vsel %vm1101_vm15, %v3794_v14, %v2730_v61  ;;  %v2733_v23 = vsel %vm1101_vm15, %v3798_v32, %v2732_v5  ;;  %v3769_v52 = vunpack.i.h.bf16 %v5077_v9  ;;  %v3134_v61 = vld [vmem:[#allocation2 + $0x50] sm:$0x88] }
 0x121   : > { %v2862_v13 = vrot.slane %v2859_v29, 4  ;;  %v3807_v42 = vpop.permute.xlu0 %3806  ;;  %v2863_v22 = vsel %vm420_vm11, %v2860_v54, %v2861_v8  ;;  %v1111_v4 = vsel %vm4484_vm10, %v1104_v19, %v1110_v2  ;;  %v2737_v58 = vsel %vm4633_vm4, %v2731_v48, %v2736_v10  ;;  %v3137_v5 = vld [vmem:[#allocation2 + $0x70] sm:$0x88] }
 0x122   : > { %v2740_v0 = vsel %vm4633_vm4, %v2733_v23, %v2739_v57  ;;  %v2864_v24 = vsel %vm1101_vm15, %v3803_v7, %v2863_v22  ;;  %1112 = vst [vmem:[#allocation2 + $0x28] sm:$0x88] %v1111_v4  ;;  %2738 = vst [vmem:[#allocation2 + $0x50] sm:$0x11] %v2737_v58  ;;  %v3809_v62 = vunpack.i.h.bf16 %v3807_v42  ;;  %v3808_v20 = vunpack.i.l.bf16 %v3807_v42  ;;  %v3004_v7 = vld [vmem:[#allocation2 + $0x70] sm:$0x44] }
 0x123   : > { %2741 = vst [vmem:[#allocation2 + $0x70] sm:$0x11] %v2740_v0  ;;  %v2870_v15 = vsel %vm4650_vm13, %v2864_v24, %v2869_v40  ;;  %v2865_v41 = vsel %vm420_vm11, %v2861_v8, %v2862_v13  ;;  %v3197_v23 = vld [vmem:[#allocation2 + $0x48] sm:$0x11]  ;;  %v1938_v24 = vrot.slane %v3769_v52, 4 }
 0x124   : > { %v3812_v45 = vpop.permute.xlu1 %3811  ;;  %2871 = vst [vmem:[#allocation2 + $0x50] sm:$0x22] %v2870_v15  ;;  %v2866_v60 = vsel %vm1101_vm15, %v3804_v17, %v2865_v41  ;;  %v2993_v14 = vrot.slane %v3809_v62, 4  ;;  %v2992_v43 = vrot.slane %v3808_v20, 4 }
 0x125   : > { %v3814_v55 = vunpack.i.h.bf16 %v3812_v45  ;;  %v3813_v44 = vunpack.i.l.bf16 %v3812_v45  ;;  %v3817_v28 = vpop.permute.xlu0 %3816  ;;  %v2873_v50 = vsel %vm4650_vm13, %v2866_v60, %v2872_v37  ;;  %v3904_v34 = vld [vmem:[#allocation2 + $0x64] ss:$-40 sps:$4 sm:$0xff]   ;;  %v3906_v35 = vld [vmem:[#allocation2 + $0x60] ss:$-40 sps:$4 sm:$0xff]   ;;  %v1947_v60 = vld [vmem:[#allocation2 + $0x10] sm:$0x44] }
 0x126   : > { %v3819_v39 = vunpack.i.h.bf16 %v3817_v28  ;;  %2874 = vst [vmem:[#allocation2 + $0x70] sm:$0x22] %v2873_v50  ;;  %v3818_v12 = vunpack.i.l.bf16 %v3817_v28  ;;  %v2995_v33 = vsel %vm420_vm11, %v2992_v43, %v2993_v14  ;;  %3335 = vmatprep.subr.bf16.mxu0 %v3904_v34 }
 0x127   : > { %v2994_v47 = vrot.slane %v3813_v44, 4  ;;  %v2996_v25 = vsel %vm5317_vm12, %v3808_v20, %v2995_v33  ;;  %v3125_v51 = vrot.slane %v3814_v55, 4  ;;  %3336 = vmatpush1.bf16.msra.mxu0 %v3906_v35 }
 0x128   : > { %v3180_v53 = vpop.permute.xlu1 %3179  ;;  %v3127_v6 = vrot.slane %v3819_v39, 4  ;;  %v3126_v32 = vrot.slane %v3818_v12, 4  ;;  %v3002_v17 = vsel %vm4452_vm0, %v2996_v25, %v3001_v46 }
 0x129   : > { %v2997_v26 = vsel %vm420_vm11, %v2993_v14, %v2994_v47  ;;  %v3182_v1 = vpop.permute.xlu0 %3181  ;;  %v3185_v63 = vrot.slane %v3180_v53, 4  ;;  %3003 = vst [vmem:[#allocation2 + $0x50] sm:$0x44] %v3002_v17  ;;  %v3907_v13 = vld [vmem:[#allocation2 + $0x4] ss:$40 sps:$4 sm:$0xff]  }
 0x12a   : > { %v2998_v11 = vsel %vm5318_vm5, %v3809_v62, %v2997_v26  ;;  %v3186_v31 = vrot.slane %v3182_v1, 4  ;;  %v3128_v27 = vsel %vm420_vm11, %v3125_v51, %v3126_v32  ;;  %v3130_v8 = vsel %vm420_vm11, %v3126_v32, %v3127_v6  ;;  %v3909_v38 = vld [vmem:[#allocation2] ss:$40 sps:$4 sm:$0xff]   ;;  %3376 = vmatprep.subr.bf16.mxu1 %v3907_v13  ;;  %3682 = vmatmul.mubr.msk.bf16.vlgmr.msra.gmra.mxu0 %vm3289_vm7, %v5148_v30  ;;  %v2080_v32 = vld [vmem:[#allocation2 + $0x10] sm:$0x88] }
 0x12b   : > { %v3005_v29 = vsel %vm4452_vm0, %v2998_v11, %v3004_v7  ;;  %v3129_v42 = vsel %vm5319_vm9, %v3814_v55, %v3128_v27  ;;  %v3131_v2 = vsel %vm5309_vm1, %v3818_v12, %v3130_v8  ;;  %3377 = vmatpush1.bf16.msra.mxu1 %v3909_v38  ;;  %3435 = vmatprep.mubr.bf16.mxu0 %v3936_v16  ;;  %v1950_v55 = vld [vmem:[#allocation2 + $0x40] sm:$0x44] }
 0x12c   : > { %v3184_v54 = vpop.permute.xlu1 %3183  ;;  %3006 = vst [vmem:[#allocation2 + $0x70] sm:$0x44] %v3005_v29  ;;  %v3188_v9 = vsel %vm420_vm11, %v3185_v63, %v3186_v31  ;;  %v3135_v10 = vsel %vm4484_vm10, %v3129_v42, %v3134_v61  ;;  %v3138_v57 = vsel %vm4484_vm10, %v3131_v2, %v3137_v5  ;;  %v2083_v29 = vld [vmem:[#allocation2 + $0x40] sm:$0x88] }
 0x12d   : > { %v3187_v19 = vrot.slane %v3184_v54, 4  ;;  %v3189_v48 = vsel %vm5320_vm6, %v3180_v53, %v3188_v9  ;;  %v3822_v22 = vpop.permute.xlu0 %3821  ;;  %3136 = vst [vmem:[#allocation2 + $0x50] sm:$0x88] %v3135_v10  ;;  %3139 = vst [vmem:[#allocation2 + $0x70] sm:$0x88] %v3138_v57 }
 0x12e   : > { %v3195_v4 = vsel %vm4510_vm2, %v3189_v48, %v3194_v36  ;;  %v3824_v0 = vunpack.i.h.bf16 %v3822_v22  ;;  %v3823_v40 = vunpack.i.l.bf16 %v3822_v22  ;;  %3683 = vmatmul.mubr.msk.bf16.vlgmr.msra.gmra.mxu1 %vm3289_vm7, %v5148_v30  ;;  %v2209_v10 = vld [vmem:[#allocation2 + $0x20] sm:$0x11]  ;;  %v2212_v57 = vld [vmem:[#allocation2 + $0x68] sm:$0x11] }
 0x12f   : > { %v3190_v58 = vsel %vm420_vm11, %v3186_v31, %v3187_v19  ;;  %3196 = vst [vmem:[#allocation2 + $0x78] sm:$0x11] %v3195_v4  ;;  %3476 = vmatprep.mubr.bf16.mxu1 %v3936_v16 }
 0x130   : > { %v3191_v45 = vsel %vm5321_vm14, %v3182_v1, %v3190_v58  ;;  %v3827_v15 = vpop.permute.xlu1 %3826  ;;  %v1940_v62 = vrot.slane %v3824_v0, 4  ;;  %v1939_v20 = vrot.slane %v3823_v40, 4 }
 0x131   : > { %v3198_v41 = vsel %vm4510_vm2, %v3191_v45, %v3197_v23  ;;  %v3829_v37 = vunpack.i.h.bf16 %v3827_v15  ;;  %v3828_v44 = vunpack.i.l.bf16 %v3827_v15  ;;  %v3832_v28 = vpop.permute.xlu0 %3831 }
 0x132   : > { %3199 = vst [vmem:[#allocation2 + $0x48] sm:$0x11] %v3198_v41  ;;  %v1941_v50 = vsel %vm420_vm11, %v1938_v24, %v1939_v20  ;;  %v1943_v14 = vsel %vm420_vm11, %v1939_v20, %v1940_v62  ;;  %v3834_v39 = vunpack.i.h.bf16 %v3832_v28  ;;  %v3833_v53 = vunpack.i.l.bf16 %v3832_v28 }
 0x133   : > { %v2072_v43 = vrot.slane %v3829_v37, 4  ;;  %v1942_v18 = vsel %vm422_vm3, %v3769_v52, %v1941_v50  ;;  %v1944_v47 = vsel %vm422_vm3, %v3823_v40, %v1943_v14  ;;  %v2071_v12 = vrot.slane %v3828_v44, 4  ;;  %v2342_v40 = vld [vmem:[#allocation2 + $0x20] sm:$0x22] }
 0x134   : > { %v3837_v33 = vpop.permute.xlu1 %3836  ;;  %v1948_v6 = vsel %vm4452_vm0, %v1942_v18, %v1947_v60  ;;  %v1951_v34 = vsel %vm4452_vm0, %v1944_v47, %v1950_v55  ;;  %v2073_v51 = vrot.slane %v3833_v53, 4  ;;  %v2200_v11 = vrot.slane %v3834_v39, 4 }
 0x135   : > { %v3839_v46 = vunpack.i.h.bf16 %v3837_v33  ;;  %1949 = vst [vmem:[#allocation2 + $0x10] sm:$0x44] %v1948_v6  ;;  %1952 = vst [vmem:[#allocation2 + $0x40] sm:$0x44] %v1951_v34  ;;  %v2074_v25 = vsel %vm420_vm11, %v2071_v12, %v2072_v43  ;;  %v3838_v16 = vunpack.i.l.bf16 %v3837_v33  ;;  %v3842_v26 = vpop.permute.xlu0 %3841 }
 0x136   : > { %v2075_v36 = vsel %vm422_vm3, %v3828_v44, %v2074_v25  ;;  %v3844_v35 = vunpack.i.h.bf16 %v3842_v26  ;;  %v3843_v17 = vunpack.i.l.bf16 %v3842_v26  ;;  %v2076_v63 = vsel %vm420_vm11, %v2072_v43, %v2073_v51  ;;  %v3911_v9 = vld [vmem:[#allocation2 + $0x50] ss:$40 sps:$4 sm:$0x1f]   ;;  %v3913_v19 = vld [vmem:[#allocation2 + $0x54] ss:$40 sps:$4 sm:$0x1f]  }
 0x137   : > { %v2202_v1 = vrot.slane %v3839_v46, 4  ;;  %v2081_v7 = vsel %vm4484_vm10, %v2075_v36, %v2080_v32  ;;  %v2201_v31 = vrot.slane %v3838_v16, 4  ;;  %v2077_v27 = vsel %vm422_vm3, %v3829_v37, %v2076_v63  ;;  %v2345_v43 = vld [vmem:[#allocation2 + $0x68] sm:$0x22]  ;;  %v2477_v26 = vld [vmem:[#allocation2 + $0x68] sm:$0x44] }
 0x138   : > { %v3847_v52 = vpop.permute.xlu1 %3846  ;;  %2082 = vst [vmem:[#allocation2 + $0x10] sm:$0x88] %v2081_v7  ;;  %v2334_v8 = vrot.slane %v3844_v35, 4  ;;  %v2333_v54 = vrot.slane %v3843_v17, 4  ;;  %v2084_v38 = vsel %vm4484_vm10, %v2077_v27, %v2083_v29  ;;  %v3313_v28 = vand.u32 %v3913_v19, %v5032_v3  ;;  %v2607_v7 = vld [vmem:[#allocation2 + $0x20] sm:$0x88] }
 0x139   : > { %v3849_v13 = vunpack.i.h.bf16 %v3847_v52  ;;  %v2203_v61 = vsel %vm420_vm11, %v2200_v11, %v2201_v31  ;;  %v2205_v5 = vsel %vm420_vm11, %v2201_v31, %v2202_v1  ;;  %v3848_v42 = vunpack.i.l.bf16 %v3847_v52  ;;  %v3852_v2 = vpop.permute.xlu0 %3851  ;;  %2085 = vst [vmem:[#allocation2 + $0x40] sm:$0x88] %v2084_v38  ;;  %v3916_v41 = vld [vmem:[#allocation2 + $0x74] ss:$-40 sps:$4 sm:$0x1f]  }
 0x13a   : > { %v2204_v48 = vsel %vm422_vm3, %v3834_v39, %v2203_v61  ;;  %v2206_v23 = vsel %vm422_vm3, %v3838_v16, %v2205_v5  ;;  %v2336_v22 = vsel %vm420_vm11, %v2333_v54, %v2334_v8  ;;  %v3854_v20 = vunpack.i.h.bf16 %v3852_v2  ;;  %v3914_v55 = vld [vmem:[#allocation2 + $0x70] ss:$-40 sps:$4 sm:$0x1f]   ;;  %3415 = vmatprep.subr.bf16.mxu0 %v3313_v28  ;;  %v2474_v16 = vld [vmem:[#allocation2 + $0x20] sm:$0x44] }
 0x13b   : > { %v2465_v4 = vrot.slane %v3849_v13, 4  ;;  %v2210_v58 = vsel %vm4633_vm4, %v2204_v48, %v2209_v10  ;;  %v2213_v0 = vsel %vm4633_vm4, %v2206_v23, %v2212_v57  ;;  %v2337_v24 = vsel %vm763_vm8, %v3843_v17, %v2336_v22  ;;  %v2610_v11 = vld [vmem:[#allocation2 + $0x68] sm:$0x88] }
 0x13c   : > { %v2335_v45 = vrot.slane %v3848_v42, 4  ;;  %v3857_v15 = vpop.permute.xlu1 %3856  ;;  %2211 = vst [vmem:[#allocation2 + $0x20] sm:$0x11] %v2210_v58  ;;  %2214 = vst [vmem:[#allocation2 + $0x68] sm:$0x11] %v2213_v0  ;;  %v2343_v62 = vsel %vm4650_vm13, %v2337_v24, %v2342_v40  ;;  %v3853_v37 = vunpack.i.l.bf16 %v3852_v2  ;;  %v3310_v50 = vand.u32 %v3911_v9, %v5032_v3 }
 0x13d   : > { %v3859_v60 = vunpack.i.h.bf16 %v3857_v15  ;;  %2344 = vst [vmem:[#allocation2 + $0x20] sm:$0x22] %v2343_v62  ;;  %v3858_v56 = vunpack.i.l.bf16 %v3857_v15  ;;  %v2597_v14 = vpop.permute.xlu0 %2596  ;;  %v2467_v18 = vrot.slane %v3854_v20, 4  ;;  %v3319_v34 = vand.u32 %v3916_v41, %v5032_v3 }
 0x13e   : > { %v2338_v44 = vsel %vm420_vm11, %v2334_v8, %v2335_v45  ;;  %v2466_v47 = vrot.slane %v3853_v37, 4  ;;  %v2600_v6 = vrot.slane %v2597_v14, 4  ;;  %3416 = vmatpush1.bf16.msra.mxu0 %v3310_v50  ;;  %v3316_v51 = vand.u32 %v3914_v55, %v5032_v3 }
 0x13f   : > { %v2339_v39 = vsel %vm763_vm8, %v3844_v35, %v2338_v44  ;;  %v2599_v12 = vrot.slane %v3859_v60, 4  ;;  %v2598_v33 = vrot.slane %v3858_v56, 4  ;;  %3456 = vmatprep.subr.bf16.mxu1 %v3319_v34 }
 0x140   : > { %v2346_v53 = vsel %vm4650_vm13, %v2339_v39, %v2345_v43  ;;  %v2468_v46 = vsel %vm420_vm11, %v2465_v4, %v2466_v47  ;;  %v2470_v25 = vsel %vm420_vm11, %v2466_v47, %v2467_v18  ;;  %3457 = vmatpush1.bf16.msra.mxu1 %v3316_v51 }
 0x141   : > { %2347 = vst [vmem:[#allocation2 + $0x68] sm:$0x22] %v2346_v53  ;;  %v2469_v32 = vsel %vm763_vm8, %v3849_v13, %v2468_v46  ;;  %v2471_v49 = vsel %vm763_vm8, %v3853_v37, %v2470_v25  ;;  %v2601_v36 = vsel %vm420_vm11, %v2598_v33, %v2599_v12  ;;  %v2603_v1 = vsel %vm420_vm11, %v2599_v12, %v2600_v6 }
 0x142   : > { %v2475_v35 = vsel %vm4452_vm0, %v2469_v32, %v2474_v16  ;;  %v2478_v17 = vsel %vm4452_vm0, %v2471_v49, %v2477_v26  ;;  %v2602_v3 = vsel %vm1101_vm15, %v3858_v56, %v2601_v36  ;;  %v2604_v63 = vsel %vm1101_vm15, %v3859_v60, %v2603_v1 }
 0x143   : > { %2476 = vst [vmem:[#allocation2 + $0x20] sm:$0x44] %v2475_v35  ;;  %2479 = vst [vmem:[#allocation2 + $0x68] sm:$0x44] %v2478_v17  ;;  %v2608_v31 = vsel %vm4484_vm10, %v2602_v3, %v2607_v7  ;;  %v2611_v52 = vsel %vm4484_vm10, %v2604_v63, %v2610_v11 }
 0x144   : > { %2609 = vst [vmem:[#allocation2 + $0x20] sm:$0x88] %v2608_v31  ;;  %2612 = vst [vmem:[#allocation2 + $0x68] sm:$0x88] %v2611_v52 }
 0x14b   : > { %v3917_v21 = vld [vmem:[#allocation2 + $0x10] ss:$16 sps:$4 sm:$0xff]   ;;  %v3919_v29 = vld [vmem:[#allocation2 + $0x14] ss:$16 sps:$4 sm:$0xff]  }
 0x14c   : > { %v3920_v27 = vld [vmem:[#allocation2 + $0x40] ss:$40 sps:$4 sm:$0xff]   ;;  %v3922_v8 = vld [vmem:[#allocation2 + $0x44] ss:$40 sps:$4 sm:$0xff]   ;;  %3417 = vmatprep.subr.bf16.mxu0 %v3919_v29 }
 0x14d   : > { %3458 = vmatprep.subr.bf16.mxu1 %v3922_v8  ;;  %3418 = vmatpush1.bf16.msra.mxu0 %v3917_v21 }
 0x14e   : > { %3459 = vmatpush1.bf16.msra.mxu1 %v3920_v27 }
 0x150   : > { %3684 = vmatmul.mubr.msk.bf16.vlgmr.msra.gmra.mxu0 %vm3289_vm7, %v5148_v30 }
 0x151   : > { %3685 = vmatmul.mubr.msk.bf16.vlgmr.msra.gmra.mxu1 %vm3289_vm7, %v5148_v30 }
 0x1ea   : > { %v3355_v54 = vpop.f32.mrf.mxu0 }
 0x1eb   : > { %vm3485_vm0 = vcmp.ge.f32.partialorder %v3355_v54, 0.0  ;;  %v3493_v59 = vmul.f32 0.2, %v3355_v54 }
 0x1ec   : > { %v3357_v13 = vpop.f32.mrf.mxu0 }
 0x1ed   : > { %v3501_v38 = vsel %vm3485_vm0, %v3355_v54, %v3493_v59  ;;  %vm3486_vm10 = vcmp.ge.f32.partialorder %v3357_v13, 0.0  ;;  %v3494_v5 = vmul.f32 0.2, %v3357_v13 }
 0x1ee   : > { %v3396_v61 = vpop.f32.mrf.mxu1  ;;  %v3359_v2 = vpop.f32.mrf.mxu0 }
 0x1ef   : > { %vm3487_vm11 = vcmp.ge.f32.partialorder %v3396_v61, 0.0  ;;  %v3495_v42 = vmul.f32 0.2, %v3396_v61  ;;  %v3502_v30 = vsel %vm3486_vm10, %v3357_v13, %v3494_v5 }
 0x1f0   : > { %v3398_v9 = vpop.f32.mrf.mxu1  ;;  %v3695_v10 = vpack.c.bf16 %v3502_v30, %v3501_v38  ;;  %v3360_v48 = vpop.f32.mrf.mxu0 }
 0x1f1   : > { %v3503_v19 = vsel %vm3487_vm11, %v3396_v61, %v3495_v42  ;;  %vm3488_vm15 = vcmp.ge.f32.partialorder %v3398_v9, 0.0  ;;  %v3496_v57 = vmul.f32 0.2, %v3398_v9 }
 0x1f2   : > { %v3400_v23 = vpop.f32.mrf.mxu1  ;;  %3525 = vst [vmem:[%s5235_s25] sm:$0xff] %v3695_v10 }
 0x1f3   : > { %v3504_v22 = vsel %vm3488_vm15, %v3398_v9, %v3496_v57 }
 0x1f4   : > { %v3696_v4 = vpack.c.bf16 %v3504_v22, %v3503_v19  ;;  %v3401_v58 = vpop.f32.mrf.mxu1 }
 0x1f6   : > { %3526 = vst [vmem:[%s5235_s25 + $0x8] sm:$0xff] %v3696_v4 }
 0x210   : > { %v3437_v0 = vpop.f32.mrf.mxu0 }
 0x211   : > { %v3497_v40 = vmul.f32 0.2, %v3437_v0  ;;  %v3478_v24 = vpop.f32.mrf.mxu1  ;;  %vm3489_vm2 = vcmp.ge.f32.partialorder %v3437_v0, 0.0 }
 0x212   : > { %v3499_v45 = vmul.f32 0.2, %v3478_v24  ;;  %v3439_v15 = vpop.f32.mrf.mxu0  ;;  %vm3491_vm4 = vcmp.ge.f32.partialorder %v3478_v24, 0.0 }
 0x213   : > { %vm3490_vm13 = vcmp.ge.f32.partialorder %v3439_v15, 0.0  ;;  %v3498_v41 = vmul.f32 0.2, %v3439_v15  ;;  %v3480_v62 = vpop.f32.mrf.mxu1  ;;  %v3505_v60 = vsel %vm3489_vm2, %v3437_v0, %v3497_v40 }
 0x214   : > { %vm3492_vm3 = vcmp.ge.f32.partialorder %v3480_v62, 0.0  ;;  %v3500_v20 = vmul.f32 0.2, %v3480_v62  ;;  %v3441_v37 = vpop.f32.mrf.mxu0  ;;  %v3507_v56 = vsel %vm3491_vm4, %v3478_v24, %v3499_v45 }
 0x215   : > { %v3506_v55 = vsel %vm3490_vm13, %v3439_v15, %v3498_v41  ;;  %v3482_v44 = vpop.f32.mrf.mxu1 }
 0x216   : > { %v3697_v28 = vpack.c.bf16 %v3506_v55, %v3505_v60  ;;  %v3508_v50 = vsel %vm3492_vm3, %v3480_v62, %v3500_v20  ;;  %v3442_v14 = vpop.f32.mrf.mxu0 }
 0x217   : > { %v3698_v43 = vpack.c.bf16 %v3508_v50, %v3507_v56  ;;  %v3483_v39 = vpop.f32.mrf.mxu1 }
 0x218   : > { %3690 = vst [vmem:[%s5235_s25 + $0x10] sm:$0xff] %v3697_v28 }
 0x219   : > { %3691 = vst [vmem:[%s5235_s25 + $0x18] sm:$0xff] %v3698_v43 }
 0x21a PF: > { %s12_s9 = sadd.s32 1, %s3929_s9  }
 0x21b   : > { %p9_p4 = scmp.ge.s32.totalorder %s12_s9, 4  }
 0x21d   :  { %11 = sbr.rel (!%p9_p4) target bundleno = 1 (0x1), region = 68 }

// kernel: discriminator_recon.5
= control target key start
LH: loop header
LB: loop body
LE: loop exit
PB: predicated region body
PF: predicated region fallthrough
CT: control target
= control target key end

     0   :  { %s785_s12 = smov 0   ;;  %s883_s0 = inlined_call_operand.vmem [shape: bf16[4,8,8,136], index: 0, kind: input, shape index: {}]   ;;  %s884_s1 = inlined_call_operand.vmem [shape: bf16[16,128], index: 1, kind: input, shape index: {}]   ;;  %s885_s2 = inlined_call_operand.vmem [shape: f32[4,16,128], index: 2, kind: output, shape index: {0}]   ;;  %s886_s3 = inlined_call_operand.vmem [shape: f32[2,2,16], index: 3, kind: output, shape index: {1}]  }
   0x1 LB: > { %s791_s13 = sadd.s32 4294967295, %s761_s12   ;;  %p659_p0 = scmp.ge.s32.totalorder %s761_s12, 1  ;;  %s761_s12 = sphi %s785_s12, %s14_s12  }
   0x2   : > { %p142_p1 = scmp.lt.s32.totalorder %s761_s12, 3 }
   0x4   : > { %p143_p2 = pnand %p659_p0, %p142_p1 }
   0x5   : > { %s660_s14 = sshll.u32 (!%p143_p2), %s791_s13, 1  ;;  %s763_s19 = smov (!%p143_p2), 120  }
   0x6   : > { %146 = sbr.rel (%p143_p2) target bundleno = 537 (0x219), region = 28  ;;  %p173_p3 = scmp.lt.s32.totalorder (!%p143_p2), %s660_s14, 3 }
   0x7   : > { %p186_p4 = scmp.lt.s32.totalorder (!%p143_p2), %s791_s13, 1 }
   0xb   : > { %s888_s14 = smov (!%p173_p3, %s660_s14), 3  ;;  %v764_v32 = vmov 0   ;;  %vm219_vm0 = vcmask 982016   ;;  %s890_s13 = smov (!%p186_p4, %s791_s13), 1  ;;  %vm538_vm1 = vcmask 130112   ;;  %vm541_vm2 = vcmask 122880  }
   0xc   : > { %s718_s15 = sshll.u32 %s888_s14, 6  ;;  %503 = vmatprep.mubr.bf16.mxu0 %v764_v32  ;;  %s719_s22 = sshll.u32 %s888_s14, 4 }
   0xd   : > { %s802_s18 = scalar_lea.vmem %s883_s0, %s718_s15  ;;  %s184_s25 = scalar_lea.vmem %s885_s2, %s719_s22 }
   0xe   : > { %v695_v0 = vld [vmem:[%s802_s18 + $0x68] sm:$0xff]  ;;  %v696_v2 = vld [vmem:[%s802_s18 + $0x78] sm:$0xff]  ;;  %v676_v8 = vld [vmem:[%s802_s18 + $0x30] sm:$0xff]  ;;  %s666_s26 = sshll.u32 %s890_s13, 1 }
   0xf   : > { %v679_v1 = vld [vmem:[%s802_s18 + $0x28] sm:$0xff]  ;;  %353 = vrot.lane.b32.xlu1 %v695_v0, %s763_s19  ;;  %v680_v3 = vld [vmem:[%s802_s18 + $0x38] sm:$0xff]  ;;  %v675_v9 = vld [vmem:[%s802_s18 + $0x20] sm:$0xff]  ;;  %s189_s29 = scalar_lea.vmem %s886_s3, %s666_s26 }
  0x10   : > { %265 = vrot.lane.b32.xlu0 %v679_v1, %s763_s19  ;;  %v678_v4 = vld [vmem:[%s802_s18 + $0x18] sm:$0xff]  ;;  %v677_v5 = vld [vmem:[%s802_s18 + $0x8] sm:$0xff]  ;;  %v692_v10 = vld [vmem:[%s802_s18 + $0x70] sm:$0xff] }
  0x11   : > { %v694_v6 = vld [vmem:[%s802_s18 + $0x58] sm:$0xff]  ;;  %v693_v7 = vld [vmem:[%s802_s18 + $0x48] sm:$0xff]  ;;  %v691_v11 = vld [vmem:[%s802_s18 + $0x60] sm:$0xff] }
  0x12   : > { %v674_v12 = vld [vmem:[%s802_s18 + $0x10] sm:$0xff]  ;;  %v214_v13 = vld [vmem:[%s802_s18] sm:$0xff]  ;;  %v672_v14 = vld [vmem:[%s802_s18 + $0x28] sm:$0xf] }
  0x13   : > { %361 = vrot.lane.b32.xlu1 %v696_v2, %s763_s19  ;;  %v673_v15 = vld [vmem:[%s802_s18 + $0x38] sm:$0xf]  ;;  %v687_v16 = vld [vmem:[%s802_s18 + $0x68] sm:$0xf]  ;;  %210 = vst [vmem:[#allocation2 + $0x30] sm:$0xf] %v672_v14 }
  0x14   : > { %273 = vrot.lane.b32.xlu0 %v680_v3, %s763_s19  ;;  %213 = vst [vmem:[#allocation2 + $0x38] sm:$0xf] %v673_v15  ;;  %299 = vst [vmem:[#allocation2 + $0x34] sm:$0xf] %v687_v16  ;;  %v688_v17 = vld [vmem:[%s802_s18 + $0x78] sm:$0xf] }
  0x15   : > { %302 = vst [vmem:[#allocation2 + $0x3c] sm:$0xf] %v688_v17  ;;  %v690_v18 = vld [vmem:[%s802_s18 + $0x50] sm:$0xff]  ;;  %v689_v19 = vld [vmem:[%s802_s18 + $0x40] sm:$0xff]  ;;  %v670_v20 = vld [vmem:[%s802_s18 + $0x8] sm:$0xf] }
  0x16   : > { %v671_v21 = vld [vmem:[%s802_s18 + $0x18] sm:$0xf]  ;;  %v685_v22 = vld [vmem:[%s802_s18 + $0x48] sm:$0xf]  ;;  %204 = vst [vmem:[#allocation2 + $0x20] sm:$0xf] %v670_v20 }
  0x17   : > { %257 = vrot.lane.b32.xlu1 %v678_v4, %s763_s19  ;;  %207 = vst [vmem:[#allocation2 + $0x28] sm:$0xf] %v671_v21  ;;  %293 = vst [vmem:[#allocation2 + $0x24] sm:$0xf] %v685_v22  ;;  %v686_v23 = vld [vmem:[%s802_s18 + $0x58] sm:$0xf] }
  0x18   : > { %249 = vrot.lane.b32.xlu0 %v677_v5, %s763_s19  ;;  %296 = vst [vmem:[#allocation2 + $0x2c] sm:$0xf] %v686_v23  ;;  %v668_v24 = vld [vmem:[%s802_s18 + $0x20] sm:$0xf]  ;;  %v669_v25 = vld [vmem:[%s802_s18 + $0x30] sm:$0xf] }
  0x19   : > { %198 = vst [vmem:[#allocation2 + $0x10] sm:$0xf] %v668_v24  ;;  %201 = vst [vmem:[#allocation2 + $0x18] sm:$0xf] %v669_v25  ;;  %v683_v26 = vld [vmem:[%s802_s18 + $0x60] sm:$0xf] }
  0x1a   : > { %v684_v27 = vld [vmem:[%s802_s18 + $0x70] sm:$0xf]  ;;  %287 = vst [vmem:[#allocation2 + $0x14] sm:$0xf] %v683_v26  ;;  %v191_v28 = vld [vmem:[%s802_s18] sm:$0xf] }
  0x1b   : > { %345 = vrot.lane.b32.xlu1 %v694_v6, %s763_s19  ;;  %290 = vst [vmem:[#allocation2 + $0x1c] sm:$0xf] %v684_v27  ;;  %v667_v29 = vld [vmem:[%s802_s18 + $0x10] sm:$0xf]  ;;  %192 = vst [vmem:[#allocation2] sm:$0xf] %v191_v28 }
  0x1c   : > { %337 = vrot.lane.b32.xlu0 %v693_v7, %s763_s19  ;;  %195 = vst [vmem:[#allocation2 + $0x8] sm:$0xf] %v667_v29  ;;  %v681_v30 = vld [vmem:[%s802_s18 + $0x40] sm:$0xf]  ;;  %v682_v31 = vld [vmem:[%s802_s18 + $0x50] sm:$0xf] }
  0x1d   : > { %281 = vst [vmem:[#allocation2 + $0x4] sm:$0xf] %v681_v30  ;;  %284 = vst [vmem:[#allocation2 + $0xc] sm:$0xf] %v682_v31  ;;  %v742_v23 = vld [vmem:[#allocation2 + $0x34] ss:$8 sps:$4 sm:$0xff]  }
  0x1e   : > { %v744_v26 = vld [vmem:[#allocation2 + $0x30] ss:$8 sps:$4 sm:$0xff]   ;;  %v747_v28 = vld [vmem:[#allocation2 + $0x20] ss:$8 sps:$4 sm:$0xff]  }
  0x1f   : > { %241 = vrot.lane.b32.xlu1 %v676_v8, %s763_s19  ;;  %v745_v27 = vld [vmem:[#allocation2 + $0x24] ss:$8 sps:$4 sm:$0xff]  }
  0x20   : > { %233 = vrot.lane.b32.xlu0 %v675_v9, %s763_s19  ;;  %v750_v30 = vld [vmem:[#allocation2 + $0x10] ss:$8 sps:$4 sm:$0xff]  }
  0x22   : > { %v748_v29 = vld [vmem:[#allocation2 + $0x14] ss:$8 sps:$4 sm:$0xff]  }
  0x23   : > { %329 = vrot.lane.b32.xlu1 %v692_v10, %s763_s19  ;;  %v753_v32 = vld [vmem:[#allocation2] ss:$8 sps:$4 sm:$0xff]  }
  0x24   : > { %321 = vrot.lane.b32.xlu0 %v691_v11, %s763_s19  ;;  %v751_v31 = vld [vmem:[#allocation2 + $0x4] ss:$8 sps:$4 sm:$0xff]  }
  0x27   : > { %225 = vrot.lane.b32.xlu1 %v674_v12, %s763_s19 }
  0x28   : > { %216 = vrot.lane.b32.xlu0 %v214_v13, %s763_s19 }
  0x2b   : > { %313 = vrot.lane.b32.xlu1 %v690_v18, %s763_s19 }
  0x2c   : > { %305 = vrot.lane.b32.xlu0 %v689_v19, %s763_s19 }
  0x81   : > { %v354_v33 = vpop.permute.xlu1 %353 }
  0x82   : > { %v266_v34 = vpop.permute.xlu0 %265  ;;  %v355_v35 = vrot.slane %v354_v33, 4 }
  0x83   : > { %v267_v36 = vrot.slane %v266_v34, 4 }
  0x84   : > { %v356_v37 = vsel %vm219_vm0, %v354_v33, %v355_v35  ;;  %v754_v33 = vld [vmem:[%s884_s1] sm:$0xff]  }
  0x85   : > { %v268_v38 = vsel %vm219_vm0, %v266_v34, %v267_v36  ;;  %358 = vst [vmem:[#allocation2 + $0x74] sm:$0xf] %v356_v37  ;;  %v362_v39 = vpop.permute.xlu1 %361 }
  0x86   : > { %270 = vst [vmem:[#allocation2 + $0x70] sm:$0xf] %v268_v38  ;;  %v274_v40 = vpop.permute.xlu0 %273  ;;  %v363_v41 = vrot.slane %v362_v39, 4 }
  0x87   : > { %v275_v42 = vrot.slane %v274_v40, 4 }
  0x88   : > { %v364_v43 = vsel %vm219_vm0, %v362_v39, %v363_v41 }
  0x89   : > { %v276_v44 = vsel %vm219_vm0, %v274_v40, %v275_v42  ;;  %366 = vst [vmem:[#allocation2 + $0x7c] sm:$0xf] %v364_v43  ;;  %v258_v45 = vpop.permute.xlu1 %257 }
  0x8a   : > { %278 = vst [vmem:[#allocation2 + $0x78] sm:$0xf] %v276_v44  ;;  %v250_v46 = vpop.permute.xlu0 %249  ;;  %v259_v47 = vrot.slane %v258_v45, 4 }
  0x8b   : > { %v251_v48 = vrot.slane %v250_v46, 4 }
  0x8c   : > { %v260_v49 = vsel %vm219_vm0, %v258_v45, %v259_v47 }
  0x8d   : > { %v252_v50 = vsel %vm219_vm0, %v250_v46, %v251_v48  ;;  %262 = vst [vmem:[#allocation2 + $0x68] sm:$0xf] %v260_v49  ;;  %v346_v51 = vpop.permute.xlu1 %345  ;;  %v527_v46 = vlaneseq }
  0x8e   : > { %254 = vst [vmem:[#allocation2 + $0x60] sm:$0xf] %v252_v50  ;;  %v338_v52 = vpop.permute.xlu0 %337  ;;  %v347_v53 = vrot.slane %v346_v51, 4 }
  0x8f   : > { %v339_v54 = vrot.slane %v338_v52, 4  ;;  %v528_v47 = vand.u32 127, %v527_v46  ;;  %v530_v48 = vshrl.u32 %v527_v46, 7 }
  0x90   : > { %v348_v55 = vsel %vm219_vm0, %v346_v51, %v347_v53  ;;  %v730_v57 = vld [vmem:[#allocation2 + $0x74] ss:$8 sps:$4 sm:$0xff]  }
  0x91   : > { %v340_v56 = vsel %vm219_vm0, %v338_v52, %v339_v54  ;;  %v732_v58 = vld [vmem:[#allocation2 + $0x70] ss:$8 sps:$4 sm:$0xff]   ;;  %350 = vst [vmem:[#allocation2 + $0x6c] sm:$0xf] %v348_v55  ;;  %v242_v59 = vpop.permute.xlu1 %241  ;;  %471 = vmatprep.subr.bf16.mxu0 %v730_v57  ;;  %v533_v49 = vadd.s32 4294967288, %v528_v47  ;;  %v531_v51 = vsub.s32 %v528_v47, %v530_v48 }
  0x92   : > { %342 = vst [vmem:[#allocation2 + $0x64] sm:$0xf] %v340_v56  ;;  %v234_v60 = vpop.permute.xlu0 %233  ;;  %v243_v61 = vrot.slane %v242_v59, 4  ;;  %472 = vmatpush1.bf16.msra.mxu0 %v732_v58 }
  0x93   : > { %v235_v62 = vrot.slane %v234_v60, 4  ;;  %v536_v52 = vsub.s32 %v533_v49, %v530_v48 }
  0x94   : > { %v244_v63 = vsel %vm219_vm0, %v242_v59, %v243_v61 }
  0x95   : > { %v236_v0 = vsel %vm219_vm0, %v234_v60, %v235_v62  ;;  %246 = vst [vmem:[#allocation2 + $0x58] sm:$0xf] %v244_v63  ;;  %v330_v1 = vpop.permute.xlu1 %329  ;;  %v735_v10 = vld [vmem:[#allocation2 + $0x60] ss:$8 sps:$4 sm:$0xff]  }
  0x96   : > { %238 = vst [vmem:[#allocation2 + $0x50] sm:$0xf] %v236_v0  ;;  %v322_v2 = vpop.permute.xlu0 %321  ;;  %v331_v3 = vrot.slane %v330_v1, 4 }
  0x97   : > { %v323_v4 = vrot.slane %v322_v2, 4 }
  0x98   : > { %v332_v5 = vsel %vm219_vm0, %v330_v1, %v331_v3 }
  0x99   : > { %v324_v6 = vsel %vm219_vm0, %v322_v2, %v323_v4  ;;  %v733_v7 = vld [vmem:[#allocation2 + $0x64] ss:$8 sps:$4 sm:$0xff]   ;;  %334 = vst [vmem:[#allocation2 + $0x5c] sm:$0xf] %v332_v5  ;;  %v226_v8 = vpop.permute.xlu1 %225 }
  0x9a   : > { %326 = vst [vmem:[#allocation2 + $0x54] sm:$0xf] %v324_v6  ;;  %v217_v9 = vpop.permute.xlu0 %216  ;;  %v227_v11 = vrot.slane %v226_v8, 4  ;;  %473 = vmatprep.subr.bf16.mxu0 %v733_v7 }
  0x9b   : > { %v218_v12 = vrot.slane %v217_v9, 4  ;;  %474 = vmatpush1.bf16.msra.mxu0 %v735_v10 }
  0x9c   : > { %v228_v13 = vsel %vm219_vm0, %v226_v8, %v227_v11 }
  0x9d   : > { %v220_v14 = vsel %vm219_vm0, %v217_v9, %v218_v12  ;;  %230 = vst [vmem:[#allocation2 + $0x48] sm:$0xf] %v228_v13  ;;  %v314_v15 = vpop.permute.xlu1 %313  ;;  %v738_v22 = vld [vmem:[#allocation2 + $0x50] ss:$8 sps:$4 sm:$0xff]  }
  0x9e   : > { %222 = vst [vmem:[#allocation2 + $0x40] sm:$0xf] %v220_v14  ;;  %v306_v16 = vpop.permute.xlu0 %305  ;;  %v315_v17 = vrot.slane %v314_v15, 4 }
  0x9f   : > { %v307_v18 = vrot.slane %v306_v16, 4 }
  0xa0   : > { %v316_v19 = vsel %vm219_vm0, %v314_v15, %v315_v17 }
  0xa1   : > { %v308_v20 = vsel %vm219_vm0, %v306_v16, %v307_v18  ;;  %v736_v21 = vld [vmem:[#allocation2 + $0x54] ss:$8 sps:$4 sm:$0xff]   ;;  %318 = vst [vmem:[#allocation2 + $0x4c] sm:$0xf] %v316_v19 }
  0xa2   : > { %310 = vst [vmem:[#allocation2 + $0x44] sm:$0xf] %v308_v20  ;;  %475 = vmatprep.subr.bf16.mxu0 %v736_v21 }
  0xa3   : > { %476 = vmatpush1.bf16.msra.mxu0 %v738_v22 }
  0xa5   : > { %v741_v25 = vld [vmem:[#allocation2 + $0x40] ss:$8 sps:$4 sm:$0xff]  }
  0xa9   : > { %v739_v24 = vld [vmem:[#allocation2 + $0x44] ss:$8 sps:$4 sm:$0xff]  }
  0xaa   : > { %477 = vmatprep.subr.bf16.mxu0 %v739_v24 }
  0xab   : > { %478 = vmatpush1.bf16.msra.mxu0 %v741_v25 }
  0xac   : > { %479 = vmatprep.subr.bf16.mxu0 %v742_v23 }
  0xaf   : > { %480 = vmatpush1.bf16.msra.mxu0 %v744_v26 }
  0xb0   : > { %481 = vmatprep.subr.bf16.mxu0 %v745_v27 }
  0xb3   : > { %482 = vmatpush1.bf16.msra.mxu0 %v747_v28 }
  0xb4   : > { %483 = vmatprep.subr.bf16.mxu0 %v748_v29 }
  0xb7   : > { %484 = vmatpush1.bf16.msra.mxu0 %v750_v30 }
  0xb8   : > { %485 = vmatprep.subr.bf16.mxu0 %v751_v31 }
  0xbb   : > { %486 = vmatpush1.bf16.msra.mxu0 %v753_v32 }
  0xbe   : > { %504 = vmatmul.mubr.bf16.vlgmr.msra.gmra.mxu0 %v754_v33 }
 0x17e   : > { %v505_v34 = vpop.f32.mrf.mxu0 }
 0x17f   : > { %514 = vst [vmem:[%s184_s25] sm:$0xff] %v505_v34  ;;  %v543_v39 = vmul.f32 %v505_v34, %v505_v34 }
 0x180   : > { %v507_v35 = vpop.f32.mrf.mxu0 }
 0x181   : > { %714 = vst [vmem:[%s184_s25 + $0x10] sm:$0xff] %v507_v35  ;;  %v519_v36 = vadd.f32 %v507_v35, %v505_v34  ;;  %v544_v37 = vmul.f32 %v507_v35, %v507_v35 }
 0x182   : > { %v509_v38 = vpop.f32.mrf.mxu0 }
 0x183   : > { %515 = vst [vmem:[%s184_s25 + $0x8] sm:$0xff] %v509_v38  ;;  %520 = vadd.xlane.f32.xlu0 %v519_v36  ;;  %v547_v42 = vadd.f32 %v544_v37, %v543_v39  ;;  %v545_v44 = vmul.f32 %v509_v38, %v509_v38 }
 0x184   : > { %v511_v40 = vpop.f32.mrf.mxu0 }
 0x185   : > { %715 = vst [vmem:[%s184_s25 + $0x18] sm:$0xff] %v511_v40  ;;  %v546_v41 = vmul.f32 %v511_v40, %v511_v40  ;;  %v522_v43 = vadd.f32 %v511_v40, %v509_v38 }
 0x187   : > { %548 = vadd.xlane.f32.xlu0 %v547_v42  ;;  %523 = vadd.xlane.f32.xlu1 %v522_v43  ;;  %v550_v45 = vadd.f32 %v546_v41, %v545_v44 }
 0x18b   : > { %551 = vadd.xlane.f32.xlu0 %v550_v45 }
 0x20c   : > { %v521_v50 = vpop.xlane.xlu0 %520 }
 0x20d   : > { %v532_v55 = vrot.slane %v521_v50, %v531_v51 }
 0x210   : > { %v549_v53 = vpop.xlane.xlu0 %548  ;;  %v524_v54 = vpop.xlane.xlu1 %523 }
 0x211   : > { %v537_v56 = vrot.slane %v524_v54, %v536_v52  ;;  %v558_v59 = vrot.slane %v549_v53, %v531_v51 }
 0x213   : > { %v539_v57 = vsel %vm538_vm1, %v537_v56, %v532_v55 }
 0x214   : > { %542 = vst.msk [vmem:[%s189_s29] sm:$0x1] %vm541_vm2, %v539_v57  ;;  %v552_v58 = vpop.xlane.xlu0 %551 }
 0x215   : > { %v562_v60 = vrot.slane %v552_v58, %v536_v52 }
 0x217   : > { %v563_v61 = vsel %vm538_vm1, %v562_v60, %v558_v59 }
 0x218   : > { %565 = vst.msk [vmem:[%s189_s29 + $0x1] sm:$0x1] %vm541_vm2, %v563_v61 }
 0x219 PF: > { %s14_s12 = sadd.s32 1, %s761_s12  }
 0x21a   : > { %p11_p5 = scmp.ge.s32.totalorder %s14_s12, 4  }
 0x21c   :  { %13 = sbr.rel (!%p11_p5) target bundleno = 1 (0x1), region = 86 }

// kernel: discriminator_recon.7
= control target key start
LH: loop header
LB: loop body
LE: loop exit
PB: predicated region body
PF: predicated region fallthrough
CT: control target
= control target key end

     0   :  { %s397_s12 = smov 0   ;;  %s463_s0 = inlined_call_operand.vmem [shape: f32[4,32,32], index: 0, kind: input, shape index: {}]   ;;  %s464_s1 = inlined_call_operand.vmem [shape: f32[1,32,1], index: 1, kind: input, shape index: {}]   ;;  %s465_s2 = inlined_call_operand.vmem [shape: f32[1,32,1], index: 2, kind: input, shape index: {}]   ;;  %s466_s3 = inlined_call_operand.vmem [shape: f32[4,32,32], index: 3, kind: output, shape index: {}]  }
   0x1 LB: > { %s342_s13 = sadd.s32 4294967295, %s374_s12   ;;  %p346_p0 = scmp.ge.s32.totalorder %s374_s12, 1  ;;  %s374_s12 = sphi %s397_s12, %s13_s12  }
   0x2   : > { %p139_p1 = scmp.lt.s32.totalorder %s374_s12, 3 }
   0x4   : > { %p140_p2 = pnand %p346_p0, %p139_p1 }
   0x5   : > { %s347_s30 = sshll.u32 (!%p140_p2), %s342_s13, 1 }
   0x6   : > { %143 = sbr.rel (%p140_p2) target bundleno = 157 (0x9d), region = 32  ;;  %p166_p3 = scmp.lt.s32.totalorder (!%p140_p2), %s347_s30, 3 }
   0xb   : > { %v189_v0 = vld [vmem:[%s464_s1 + $0x10] sm:$0xff]  ;;  %v187_v1 = vld [vmem:[%s464_s1] sm:$0xff]  ;;  %v376_v2 = vmov 0   ;;  %v190_v3 = vld [vmem:[%s464_s1 + $0x18] sm:$0xff]  ;;  %s468_s30 = smov (!%p166_p3, %s347_s30), 3  ;;  %vm275_vm0 = vcmask 261120  }
   0xc   : > { %367 = vset.pattern.permute.xlu1 %v376_v2  ;;  %366 = vset.pattern.permute.xlu0 %v376_v2  ;;  %v188_v4 = vld [vmem:[%s464_s1 + $0x8] sm:$0xff]  ;;  %v219_v6 = vld [vmem:[%s465_s2] sm:$0xff]  ;;  %v222_v7 = vld [vmem:[%s465_s2 + $0x18] sm:$0xff]  ;;  %s355_s4 = sshll.u32 %s468_s30, 5 }
   0xd   : > { %203 = vperm.xlu1 %367, %v189_v0   ;;  %193 = vperm.xlu0 %366, %v187_v1   ;;  %v220_v5 = vld [vmem:[%s465_s2 + $0x8] sm:$0xff]  ;;  %v221_v8 = vld [vmem:[%s465_s2 + $0x10] sm:$0xff]  ;;  %s170_s7 = scalar_lea.vmem %s463_s0, %s355_s4  ;;  %s442_s10 = scalar_lea.vmem %s466_s3, %s355_s4 }
   0xe   : > { %v179_v11 = vld [vmem:[%s170_s7] sm:$0xff]  ;;  %v180_v15 = vld [vmem:[%s170_s7 + $0x8] sm:$0xff]  ;;  %v181_v17 = vld [vmem:[%s170_s7 + $0x10] sm:$0xff] }
   0xf   : > { %v183_v12 = vld [vmem:[%s170_s7 + $0x20] sm:$0xff]  ;;  %v184_v16 = vld [vmem:[%s170_s7 + $0x28] sm:$0xff]  ;;  %v185_v18 = vld [vmem:[%s170_s7 + $0x30] sm:$0xff] }
  0x10   : > { %v182_v21 = vld [vmem:[%s170_s7 + $0x18] sm:$0xff] }
  0x11   : > { %208 = vperm.xlu1 %367, %v190_v3   ;;  %198 = vperm.xlu0 %366, %v188_v4   ;;  %v186_v22 = vld [vmem:[%s170_s7 + $0x38] sm:$0xff] }
  0x15   : > { %230 = vperm.xlu1 %367, %v220_v5   ;;  %225 = vperm.xlu0 %366, %v219_v6  }
  0x19   : > { %240 = vperm.xlu1 %367, %v222_v7   ;;  %235 = vperm.xlu0 %366, %v221_v8  }
  0x88   : > { %v204_v9 = vpop.permute.xlu1 %203  ;;  %v194_v10 = vpop.permute.xlu0 %193 }
  0x89   : > { %v211_v19 = vmul.f32 %v194_v10, %v179_v11  ;;  %v215_v20 = vmul.f32 %v194_v10, %v183_v12  ;;  %v213_v31 = vmul.f32 %v204_v9, %v181_v17  ;;  %v217_v32 = vmul.f32 %v204_v9, %v185_v18 }
  0x8c   : > { %v209_v13 = vpop.permute.xlu1 %208  ;;  %v199_v14 = vpop.permute.xlu0 %198 }
  0x8d   : > { %v212_v23 = vmul.f32 %v199_v14, %v180_v15  ;;  %v216_v24 = vmul.f32 %v199_v14, %v184_v16  ;;  %v214_v33 = vmul.f32 %v209_v13, %v182_v21  ;;  %v218_v34 = vmul.f32 %v209_v13, %v186_v22 }
  0x90   : > { %v231_v25 = vpop.permute.xlu1 %230  ;;  %v226_v26 = vpop.permute.xlu0 %225 }
  0x91   : > { %v244_v27 = vadd.f32 %v231_v25, %v212_v23  ;;  %v248_v28 = vadd.f32 %v231_v25, %v216_v24  ;;  %v243_v29 = vadd.f32 %v226_v26, %v211_v19  ;;  %v247_v30 = vadd.f32 %v226_v26, %v215_v20 }
  0x93   : > { %vm252_vm1 = vcmp.ge.f32.partialorder %v244_v27, 0.0  ;;  %vm256_vm2 = vcmp.ge.f32.partialorder %v248_v28, 0.0  ;;  %v260_v35 = vmul.f32 0.2, %v244_v27  ;;  %v264_v36 = vmul.f32 0.2, %v248_v28 }
  0x94   : > { %vm251_vm3 = vcmp.ge.f32.partialorder %v243_v29, 0.0  ;;  %vm255_vm4 = vcmp.ge.f32.partialorder %v247_v30, 0.0  ;;  %v259_v37 = vmul.f32 0.2, %v243_v29  ;;  %v263_v38 = vmul.f32 0.2, %v247_v30  ;;  %v241_v39 = vpop.permute.xlu1 %240  ;;  %v236_v40 = vpop.permute.xlu0 %235 }
  0x95   : > { %v268_v41 = vsel %vm252_vm1, %v244_v27, %v260_v35  ;;  %v272_v42 = vsel %vm256_vm2, %v248_v28, %v264_v36  ;;  %v246_v43 = vadd.f32 %v241_v39, %v214_v33  ;;  %v250_v44 = vadd.f32 %v241_v39, %v218_v34 }
  0x96   : > { %277 = vst.msk [vmem:[%s442_s10 + $0x8] sm:$0xff] %vm275_vm0, %v268_v41  ;;  %v267_v45 = vsel %vm251_vm3, %v243_v29, %v259_v37  ;;  %v271_v46 = vsel %vm255_vm4, %v247_v30, %v263_v38  ;;  %v245_v47 = vadd.f32 %v236_v40, %v213_v31  ;;  %v249_v48 = vadd.f32 %v236_v40, %v217_v32 }
  0x97   : > { %281 = vst.msk [vmem:[%s442_s10 + $0x28] sm:$0xff] %vm275_vm0, %v272_v42  ;;  %276 = vst.msk [vmem:[%s442_s10] sm:$0xff] %vm275_vm0, %v267_v45  ;;  %vm254_vm5 = vcmp.ge.f32.partialorder %v246_v43, 0.0  ;;  %vm258_vm6 = vcmp.ge.f32.partialorder %v250_v44, 0.0  ;;  %v262_v49 = vmul.f32 0.2, %v246_v43 }
  0x98   : > { %v266_v50 = vmul.f32 0.2, %v250_v44  ;;  %280 = vst.msk [vmem:[%s442_s10 + $0x20] sm:$0xff] %vm275_vm0, %v271_v46  ;;  %vm253_vm7 = vcmp.ge.f32.partialorder %v245_v47, 0.0  ;;  %vm257_vm8 = vcmp.ge.f32.partialorder %v249_v48, 0.0 }
  0x99   : > { %v261_v51 = vmul.f32 0.2, %v245_v47  ;;  %v265_v52 = vmul.f32 0.2, %v249_v48  ;;  %v270_v53 = vsel %vm254_vm5, %v246_v43, %v262_v49 }
  0x9a   : > { %v274_v54 = vsel %vm258_vm6, %v250_v44, %v266_v50  ;;  %279 = vst.msk [vmem:[%s442_s10 + $0x18] sm:$0xff] %vm275_vm0, %v270_v53 }
  0x9b   : > { %v269_v55 = vsel %vm253_vm7, %v245_v47, %v261_v51  ;;  %v273_v56 = vsel %vm257_vm8, %v249_v48, %v265_v52  ;;  %283 = vst.msk [vmem:[%s442_s10 + $0x38] sm:$0xff] %vm275_vm0, %v274_v54 }
  0x9c   : > { %278 = vst.msk [vmem:[%s442_s10 + $0x10] sm:$0xff] %vm275_vm0, %v269_v55  ;;  %282 = vst.msk [vmem:[%s442_s10 + $0x30] sm:$0xff] %vm275_vm0, %v273_v56 }
  0x9d PF: > { %s13_s12 = sadd.s32 1, %s374_s12  }
  0x9e   : > { %p10_p4 = scmp.ge.s32.totalorder %s13_s12, 4  }
  0xa0   :  { %12 = sbr.rel (!%p10_p4) target bundleno = 1 (0x1), region = 62 }

// kernel: discriminator_recon.6
= control target key start
LH: loop header
LB: loop body
LE: loop exit
PB: predicated region body
PF: predicated region fallthrough
CT: control target
= control target key end

     0   :  { %s1142_s12 = smov 0   ;;  %s1399_s0 = inlined_call_operand.vmem [shape: bf16[4,8,16,36], index: 0, kind: input, shape index: {}]   ;;  %s1400_s1 = inlined_call_operand.vmem [shape: bf16[32,256], index: 1, kind: input, shape index: {}]   ;;  %s1401_s2 = inlined_call_operand.vmem [shape: f32[4,32,32], index: 2, kind: output, shape index: {0}]   ;;  %s1402_s3 = inlined_call_operand.vmem [shape: f32[2,2,32], index: 3, kind: output, shape index: {1}]  }
   0x1 LB: > { %s1148_s13 = sadd.s32 4294967295, %s1116_s12   ;;  %p936_p0 = scmp.ge.s32.totalorder %s1116_s12, 1  ;;  %s1116_s12 = sphi %s1142_s12, %s14_s12  }
   0x2   : > { %p142_p1 = scmp.lt.s32.totalorder %s1116_s12, 3 }
   0x4   : > { %p143_p2 = pnand %p936_p0, %p142_p1 }
   0x5   : > { %s937_s14 = sshll.u32 (!%p143_p2), %s1148_s13, 1  ;;  %s1118_s19 = smov (!%p143_p2), 28  }
   0x6   : > { %146 = sbr.rel (%p143_p2) target bundleno = 622 (0x26e), region = 28  ;;  %p173_p3 = scmp.lt.s32.totalorder (!%p143_p2), %s937_s14, 3 }
   0x7   : > { %s1119_s20 = smov (!%p143_p2), 124   ;;  %s1120_s21 = smov (!%p143_p2), 32  }
   0x8   : > { %s1121_s7 = smov (!%p143_p2), 96   ;;  %p186_p4 = scmp.lt.s32.totalorder (!%p143_p2), %s1148_s13, 1 }
   0xb   : > { %s1404_s14 = smov (!%p173_p3, %s937_s14), 3  ;;  %vm193_vm0 = vcmask 257024   ;;  %v1106_v62 = vld [vmem:[%s1400_s1 + $0x4] ss:$8 sps:$4 sm:$0xff]   ;;  %vm338_vm1 = vcmask 519424   ;;  %vm755_vm2 = vcmask 523264  }
   0xc   : > { %s1030_s15 = sshll.u32 %s1404_s14, 6  ;;  %712 = vmatprep.mubr.bf16.mxu0 %v1106_v62  ;;  %s1031_s30 = sshll.u32 %s1404_s14, 5  ;;  %vm729_vm3 = vcmask 261120   ;;  %vm783_vm4 = vcmask 130112   ;;  %vm790_vm5 = vcmask 195712   ;;  %vm797_vm6 = vcmask 261312  }
   0xd   : > { %s1159_s18 = scalar_lea.vmem %s1399_s0, %s1030_s15  ;;  %s1353_s6 = scalar_lea.vmem %s1401_s2, %s1031_s30  ;;  %vm800_vm7 = vcmask 253952  }
   0xe   : > { %v1002_v0 = vld [vmem:[%s1159_s18 + $0x78] sm:$0xf]  ;;  %v1003_v2 = vld [vmem:[%s1159_s18 + $0x7c] sm:$0xf]  ;;  %v969_v6 = vld [vmem:[%s1159_s18 + $0x2c] sm:$0xf] }
   0xf   : > { %v970_v1 = vld [vmem:[%s1159_s18 + $0x38] sm:$0xf]  ;;  %520 = vrot.lane.b32.xlu1 %v1002_v0, %s1118_s19  ;;  %v971_v3 = vld [vmem:[%s1159_s18 + $0x3c] sm:$0xf]  ;;  %v968_v7 = vld [vmem:[%s1159_s18 + $0x28] sm:$0xf] }
  0x10   : > { %319 = vrot.lane.b32.xlu0 %v970_v1, %s1119_s20  ;;  %v987_v4 = vld [vmem:[%s1159_s18 + $0x7c] sm:$0xf]  ;;  %v986_v5 = vld [vmem:[%s1159_s18 + $0x78] sm:$0xf]  ;;  %v1001_v8 = vld [vmem:[%s1159_s18 + $0x6c] sm:$0xf] }
  0x11   : > { %v1000_v9 = vld [vmem:[%s1159_s18 + $0x68] sm:$0xf]  ;;  %v985_v10 = vld [vmem:[%s1159_s18 + $0x6c] sm:$0xf]  ;;  %v957_v12 = vld [vmem:[%s1159_s18 + $0x3c] sm:$0xf] }
  0x12   : > { %v984_v11 = vld [vmem:[%s1159_s18 + $0x68] sm:$0xf]  ;;  %230 = vst.msk [vmem:[#allocation2 + $0x3c] sm:$0xf] %vm193_vm0, %v957_v12  ;;  %v956_v13 = vld [vmem:[%s1159_s18 + $0x38] sm:$0xf] }
  0x13   : > { %522 = vrot.lane.b32.xlu1 %v1003_v2, %s1118_s19  ;;  %v955_v14 = vld [vmem:[%s1159_s18 + $0x2c] sm:$0xf]  ;;  %v954_v15 = vld [vmem:[%s1159_s18 + $0x28] sm:$0xf]  ;;  %229 = vst.msk [vmem:[#allocation2 + $0x38] sm:$0xf] %vm193_vm0, %v956_v13 }
  0x14   : > { %321 = vrot.lane.b32.xlu0 %v971_v3, %s1119_s20  ;;  %225 = vst.msk [vmem:[#allocation2 + $0x34] sm:$0xf] %vm193_vm0, %v955_v14  ;;  %224 = vst.msk [vmem:[#allocation2 + $0x30] sm:$0xf] %vm193_vm0, %v954_v15  ;;  %v953_v16 = vld [vmem:[%s1159_s18 + $0x1c] sm:$0xf] }
  0x15   : > { %v952_v17 = vld [vmem:[%s1159_s18 + $0x18] sm:$0xf]  ;;  %220 = vst.msk [vmem:[#allocation2 + $0x2c] sm:$0xf] %vm193_vm0, %v953_v16  ;;  %v967_v18 = vld [vmem:[%s1159_s18 + $0x1c] sm:$0xf] }
  0x16   : > { %219 = vst.msk [vmem:[#allocation2 + $0x28] sm:$0xf] %vm193_vm0, %v952_v17  ;;  %v966_v19 = vld [vmem:[%s1159_s18 + $0x18] sm:$0xf]  ;;  %v999_v20 = vld [vmem:[%s1159_s18 + $0x5c] sm:$0xf] }
  0x17   : > { %426 = vrot.lane.b32.xlu1 %v987_v4, %s1120_s21  ;;  %v998_v21 = vld [vmem:[%s1159_s18 + $0x58] sm:$0xf]  ;;  %v983_v22 = vld [vmem:[%s1159_s18 + $0x5c] sm:$0xf]  ;;  %v951_v24 = vld [vmem:[%s1159_s18 + $0xc] sm:$0xf] }
  0x18   : > { %424 = vrot.lane.b32.xlu0 %v986_v5, %s1120_s21  ;;  %v982_v23 = vld [vmem:[%s1159_s18 + $0x58] sm:$0xf]  ;;  %v950_v25 = vld [vmem:[%s1159_s18 + $0x8] sm:$0xf]  ;;  %215 = vst.msk [vmem:[#allocation2 + $0x24] sm:$0xf] %vm193_vm0, %v951_v24 }
  0x19   : > { %214 = vst.msk [vmem:[#allocation2 + $0x20] sm:$0xf] %vm193_vm0, %v950_v25  ;;  %v965_v26 = vld [vmem:[%s1159_s18 + $0xc] sm:$0xf]  ;;  %v964_v27 = vld [vmem:[%s1159_s18 + $0x8] sm:$0xf] }
  0x1a   : > { %v997_v28 = vld [vmem:[%s1159_s18 + $0x4c] sm:$0xf]  ;;  %v996_v29 = vld [vmem:[%s1159_s18 + $0x48] sm:$0xf]  ;;  %v949_v32 = vld [vmem:[%s1159_s18 + $0x34] sm:$0xf] }
  0x1b   : > { %309 = vrot.lane.b32.xlu1 %v969_v6, %s1119_s20  ;;  %v981_v30 = vld [vmem:[%s1159_s18 + $0x4c] sm:$0xf]  ;;  %v980_v31 = vld [vmem:[%s1159_s18 + $0x48] sm:$0xf]  ;;  %v948_v33 = vld [vmem:[%s1159_s18 + $0x30] sm:$0xf] }
  0x1c   : > { %307 = vrot.lane.b32.xlu0 %v968_v7, %s1119_s20  ;;  %210 = vst.msk [vmem:[#allocation2 + $0x1c] sm:$0xf] %vm193_vm0, %v949_v32  ;;  %209 = vst.msk [vmem:[#allocation2 + $0x18] sm:$0xf] %vm193_vm0, %v948_v33  ;;  %v963_v34 = vld [vmem:[%s1159_s18 + $0x34] sm:$0xf] }
  0x1d   : > { %v962_v35 = vld [vmem:[%s1159_s18 + $0x30] sm:$0xf]  ;;  %v995_v36 = vld [vmem:[%s1159_s18 + $0x74] sm:$0xf]  ;;  %v947_v40 = vld [vmem:[%s1159_s18 + $0x24] sm:$0xf] }
  0x1e   : > { %v994_v37 = vld [vmem:[%s1159_s18 + $0x70] sm:$0xf]  ;;  %v979_v38 = vld [vmem:[%s1159_s18 + $0x74] sm:$0xf]  ;;  %v946_v41 = vld [vmem:[%s1159_s18 + $0x20] sm:$0xf] }
  0x1f   : > { %510 = vrot.lane.b32.xlu1 %v1001_v8, %s1118_s19  ;;  %v978_v39 = vld [vmem:[%s1159_s18 + $0x70] sm:$0xf]  ;;  %205 = vst.msk [vmem:[#allocation2 + $0x14] sm:$0xf] %vm193_vm0, %v947_v40  ;;  %204 = vst.msk [vmem:[#allocation2 + $0x10] sm:$0xf] %vm193_vm0, %v946_v41 }
  0x20   : > { %508 = vrot.lane.b32.xlu0 %v1000_v9, %s1118_s19  ;;  %v961_v42 = vld [vmem:[%s1159_s18 + $0x24] sm:$0xf]  ;;  %v960_v43 = vld [vmem:[%s1159_s18 + $0x20] sm:$0xf]  ;;  %v945_v48 = vld [vmem:[%s1159_s18 + $0x14] sm:$0xf] }
  0x21   : > { %v993_v44 = vld [vmem:[%s1159_s18 + $0x64] sm:$0xf]  ;;  %v992_v45 = vld [vmem:[%s1159_s18 + $0x60] sm:$0xf]  ;;  %v944_v49 = vld [vmem:[%s1159_s18 + $0x10] sm:$0xf] }
  0x22   : > { %v977_v46 = vld [vmem:[%s1159_s18 + $0x64] sm:$0xf]  ;;  %v976_v47 = vld [vmem:[%s1159_s18 + $0x60] sm:$0xf]  ;;  %200 = vst.msk [vmem:[#allocation2 + $0xc] sm:$0xf] %vm193_vm0, %v945_v48 }
  0x23   : > { %413 = vrot.lane.b32.xlu1 %v985_v10, %s1120_s21  ;;  %199 = vst.msk [vmem:[#allocation2 + $0x8] sm:$0xf] %vm193_vm0, %v944_v49  ;;  %v959_v50 = vld [vmem:[%s1159_s18 + $0x14] sm:$0xf]  ;;  %v958_v51 = vld [vmem:[%s1159_s18 + $0x10] sm:$0xf] }
  0x24   : > { %411 = vrot.lane.b32.xlu0 %v984_v11, %s1120_s21  ;;  %v991_v52 = vld [vmem:[%s1159_s18 + $0x54] sm:$0xf]  ;;  %v990_v53 = vld [vmem:[%s1159_s18 + $0x50] sm:$0xf]  ;;  %v192_v56 = vld [vmem:[%s1159_s18 + $0x4] sm:$0xf] }
  0x25   : > { %v975_v54 = vld [vmem:[%s1159_s18 + $0x54] sm:$0xf]  ;;  %v974_v55 = vld [vmem:[%s1159_s18 + $0x50] sm:$0xf]  ;;  %v191_v57 = vld [vmem:[%s1159_s18] sm:$0xf] }
  0x26   : > { %195 = vst.msk [vmem:[#allocation2 + $0x4] sm:$0xf] %vm193_vm0, %v192_v56  ;;  %194 = vst.msk [vmem:[#allocation2] sm:$0xf] %vm193_vm0, %v191_v57  ;;  %v232_v58 = vld [vmem:[%s1159_s18 + $0x4] sm:$0xf] }
  0x27   : > { %297 = vrot.lane.b32.xlu1 %v967_v18, %s1119_s20  ;;  %v231_v59 = vld [vmem:[%s1159_s18] sm:$0xf]  ;;  %v989_v60 = vld [vmem:[%s1159_s18 + $0x44] sm:$0xf]  ;;  %v1109_v1 = vld [vmem:[%s1400_s1 + $0x14] ss:$8 sps:$4 sm:$0xff]  }
  0x28   : > { %295 = vrot.lane.b32.xlu0 %v966_v19, %s1119_s20  ;;  %v988_v61 = vld [vmem:[%s1159_s18 + $0x40] sm:$0xf]  ;;  %v973_v63 = vld [vmem:[%s1159_s18 + $0x44] sm:$0xf]  ;;  %720 = vmatprep.mubr.bf16.mxu1 %v1109_v1  ;;  %s1406_s13 = smov (!%p186_p4, %s1148_s13), 1 }
  0x29   : > { %v972_v0 = vld [vmem:[%s1159_s18 + $0x40] sm:$0xf]  ;;  %s943_s8 = sshll.u32 %s1406_s13, 1 }
  0x2a   : > { %s189_s11 = scalar_lea.vmem %s1402_s3, %s943_s8 }
  0x2b   : > { %498 = vrot.lane.b32.xlu1 %v999_v20, %s1118_s19 }
  0x2c   : > { %496 = vrot.lane.b32.xlu0 %v998_v21, %s1118_s19 }
  0x2f   : > { %400 = vrot.lane.b32.xlu1 %v983_v22, %s1120_s21 }
  0x30   : > { %398 = vrot.lane.b32.xlu0 %v982_v23, %s1120_s21 }
  0x33   : > { %285 = vrot.lane.b32.xlu1 %v965_v26, %s1119_s20 }
  0x34   : > { %283 = vrot.lane.b32.xlu0 %v964_v27, %s1119_s20 }
  0x37   : > { %486 = vrot.lane.b32.xlu1 %v997_v28, %s1118_s19 }
  0x38   : > { %484 = vrot.lane.b32.xlu0 %v996_v29, %s1118_s19 }
  0x3b   : > { %387 = vrot.lane.b32.xlu1 %v981_v30, %s1120_s21 }
  0x3c   : > { %385 = vrot.lane.b32.xlu0 %v980_v31, %s1120_s21 }
  0x3f   : > { %273 = vrot.lane.b32.xlu1 %v963_v34, %s1119_s20 }
  0x40   : > { %271 = vrot.lane.b32.xlu0 %v962_v35, %s1119_s20 }
  0x43   : > { %474 = vrot.lane.b32.xlu1 %v995_v36, %s1118_s19 }
  0x44   : > { %472 = vrot.lane.b32.xlu0 %v994_v37, %s1118_s19 }
  0x47   : > { %374 = vrot.lane.b32.xlu1 %v979_v38, %s1120_s21 }
  0x48   : > { %372 = vrot.lane.b32.xlu0 %v978_v39, %s1120_s21 }
  0x4b   : > { %261 = vrot.lane.b32.xlu1 %v961_v42, %s1119_s20 }
  0x4c   : > { %259 = vrot.lane.b32.xlu0 %v960_v43, %s1119_s20 }
  0x4f   : > { %462 = vrot.lane.b32.xlu1 %v993_v44, %s1118_s19 }
  0x50   : > { %460 = vrot.lane.b32.xlu0 %v992_v45, %s1118_s19 }
  0x53   : > { %361 = vrot.lane.b32.xlu1 %v977_v46, %s1120_s21 }
  0x54   : > { %359 = vrot.lane.b32.xlu0 %v976_v47, %s1120_s21 }
  0x57   : > { %249 = vrot.lane.b32.xlu1 %v959_v50, %s1119_s20 }
  0x58   : > { %247 = vrot.lane.b32.xlu0 %v958_v51, %s1119_s20 }
  0x5b   : > { %450 = vrot.lane.b32.xlu1 %v991_v52, %s1118_s19 }
  0x5c   : > { %448 = vrot.lane.b32.xlu0 %v990_v53, %s1118_s19 }
  0x5f   : > { %348 = vrot.lane.b32.xlu1 %v975_v54, %s1120_s21 }
  0x60   : > { %346 = vrot.lane.b32.xlu0 %v974_v55, %s1120_s21 }
  0x63   : > { %237 = vrot.lane.b32.xlu1 %v232_v58, %s1119_s20 }
  0x64   : > { %235 = vrot.lane.b32.xlu0 %v231_v59, %s1119_s20 }
  0x67   : > { %438 = vrot.lane.b32.xlu1 %v989_v60, %s1118_s19 }
  0x68   : > { %436 = vrot.lane.b32.xlu0 %v988_v61, %s1118_s19 }
  0x6b   : > { %334 = vrot.lane.b32.xlu1 %v973_v63, %s1120_s21 }
  0x6c   : > { %332 = vrot.lane.b32.xlu0 %v972_v0, %s1120_s21 }
  0x81   : > { %v521_v2 = vpop.permute.xlu1 %520 }
  0x82   : > { %v320_v3 = vpop.permute.xlu0 %319 }
  0x83   : > { %325 = vst.msk [vmem:[#allocation2 + $0x78] sm:$0xf] %vm193_vm0, %v320_v3  ;;  %v1107_v3 = vld [vmem:[%s1400_s1 + $0x10] ss:$8 sps:$4 sm:$0xff]  }
  0x84   : > { %526 = vst.msk [vmem:[#allocation2 + $0x78] sm:$0xf] %vm338_vm1, %v521_v2  ;;  %v1104_v2 = vld [vmem:[%s1400_s1] ss:$8 sps:$4 sm:$0xff]  }
  0x85   : > { %v523_v4 = vpop.permute.xlu1 %522 }
  0x86   : > { %v322_v5 = vpop.permute.xlu0 %321 }
  0x87   : > { %326 = vst.msk [vmem:[#allocation2 + $0x7c] sm:$0xf] %vm193_vm0, %v322_v5 }
  0x88   : > { %527 = vst.msk [vmem:[#allocation2 + $0x7c] sm:$0xf] %vm338_vm1, %v523_v4 }
  0x89   : > { %v427_v6 = vpop.permute.xlu1 %426 }
  0x8a   : > { %v425_v7 = vpop.permute.xlu0 %424  ;;  %431 = vst.msk [vmem:[#allocation2 + $0x3c] sm:$0xf] %vm338_vm1, %v427_v6 }
  0x8b   : > { %430 = vst.msk [vmem:[#allocation2 + $0x38] sm:$0xf] %vm338_vm1, %v425_v7 }
  0x8d   : > { %v310_v8 = vpop.permute.xlu1 %309 }
  0x8e   : > { %v308_v9 = vpop.permute.xlu0 %307  ;;  %314 = vst.msk [vmem:[#allocation2 + $0x74] sm:$0xf] %vm193_vm0, %v310_v8 }
  0x8f   : > { %313 = vst.msk [vmem:[#allocation2 + $0x70] sm:$0xf] %vm193_vm0, %v308_v9  ;;  %v1088_v10 = vld [vmem:[#allocation2 + $0x78] sm:$0xff]  }
  0x90   : > { %1032 = vmatprep.subr.bf16.mxu0 %v1088_v10  ;;  %1060 = vmatprep.subr.bf16.mxu1 %v1088_v10 }
  0x91   : > { %v511_v11 = vpop.permute.xlu1 %510 }
  0x92   : > { %v509_v12 = vpop.permute.xlu0 %508  ;;  %v1089_v13 = vld [vmem:[#allocation2 + $0x38] sm:$0xff]   ;;  %515 = vst.msk [vmem:[#allocation2 + $0x74] sm:$0xf] %vm338_vm1, %v511_v11 }
  0x93   : > { %514 = vst.msk [vmem:[#allocation2 + $0x70] sm:$0xf] %vm338_vm1, %v509_v12  ;;  %1033 = vmatpush3.bf16.msra.mxu0 %v1089_v13  ;;  %1068 = vmatpush3.bf16.msra.mxu1 %v1089_v13 }
  0x95   : > { %v414_v14 = vpop.permute.xlu1 %413 }
  0x96   : > { %v412_v15 = vpop.permute.xlu0 %411  ;;  %418 = vst.msk [vmem:[#allocation2 + $0x34] sm:$0xf] %vm338_vm1, %v414_v14 }
  0x97   : > { %417 = vst.msk [vmem:[#allocation2 + $0x30] sm:$0xf] %vm338_vm1, %v412_v15 }
  0x99   : > { %v298_v16 = vpop.permute.xlu1 %297 }
  0x9a   : > { %v296_v17 = vpop.permute.xlu0 %295  ;;  %v1090_v18 = vld [vmem:[#allocation2 + $0x70] sm:$0xff]   ;;  %302 = vst.msk [vmem:[#allocation2 + $0x6c] sm:$0xf] %vm193_vm0, %v298_v16 }
  0x9b   : > { %301 = vst.msk [vmem:[#allocation2 + $0x68] sm:$0xf] %vm193_vm0, %v296_v17  ;;  %1034 = vmatprep.subr.bf16.mxu0 %v1090_v18  ;;  %1061 = vmatprep.subr.bf16.mxu1 %v1090_v18 }
  0x9d   : > { %v499_v19 = vpop.permute.xlu1 %498 }
  0x9e   : > { %v497_v20 = vpop.permute.xlu0 %496  ;;  %v1091_v21 = vld [vmem:[#allocation2 + $0x30] sm:$0xff]   ;;  %503 = vst.msk [vmem:[#allocation2 + $0x6c] sm:$0xf] %vm338_vm1, %v499_v19 }
  0x9f   : > { %502 = vst.msk [vmem:[#allocation2 + $0x68] sm:$0xf] %vm338_vm1, %v497_v20  ;;  %1035 = vmatpush3.bf16.msra.mxu0 %v1091_v21  ;;  %1069 = vmatpush3.bf16.msra.mxu1 %v1091_v21 }
  0xa1   : > { %v401_v22 = vpop.permute.xlu1 %400 }
  0xa2   : > { %v399_v23 = vpop.permute.xlu0 %398  ;;  %405 = vst.msk [vmem:[#allocation2 + $0x2c] sm:$0xf] %vm338_vm1, %v401_v22 }
  0xa3   : > { %404 = vst.msk [vmem:[#allocation2 + $0x28] sm:$0xf] %vm338_vm1, %v399_v23 }
  0xa5   : > { %v286_v24 = vpop.permute.xlu1 %285 }
  0xa6   : > { %v284_v25 = vpop.permute.xlu0 %283  ;;  %v1092_v26 = vld [vmem:[#allocation2 + $0x68] sm:$0xff]   ;;  %290 = vst.msk [vmem:[#allocation2 + $0x64] sm:$0xf] %vm193_vm0, %v286_v24 }
  0xa7   : > { %289 = vst.msk [vmem:[#allocation2 + $0x60] sm:$0xf] %vm193_vm0, %v284_v25  ;;  %1036 = vmatprep.subr.bf16.mxu0 %v1092_v26  ;;  %1062 = vmatprep.subr.bf16.mxu1 %v1092_v26 }
  0xa9   : > { %v487_v27 = vpop.permute.xlu1 %486 }
  0xaa   : > { %v485_v28 = vpop.permute.xlu0 %484  ;;  %v1093_v29 = vld [vmem:[#allocation2 + $0x28] sm:$0xff]   ;;  %491 = vst.msk [vmem:[#allocation2 + $0x64] sm:$0xf] %vm338_vm1, %v487_v27 }
  0xab   : > { %490 = vst.msk [vmem:[#allocation2 + $0x60] sm:$0xf] %vm338_vm1, %v485_v28  ;;  %1037 = vmatpush3.bf16.msra.mxu0 %v1093_v29  ;;  %1070 = vmatpush3.bf16.msra.mxu1 %v1093_v29  ;;  %v772_v29 = vlaneseq }
  0xad   : > { %v388_v30 = vpop.permute.xlu1 %387 }
  0xae   : > { %v386_v31 = vpop.permute.xlu0 %385  ;;  %392 = vst.msk [vmem:[#allocation2 + $0x24] sm:$0xf] %vm338_vm1, %v388_v30 }
  0xaf   : > { %391 = vst.msk [vmem:[#allocation2 + $0x20] sm:$0xf] %vm338_vm1, %v386_v31  ;;  %v773_v31 = vand.u32 127, %v772_v29 }
  0xb1   : > { %v274_v32 = vpop.permute.xlu1 %273 }
  0xb2   : > { %v272_v33 = vpop.permute.xlu0 %271  ;;  %v1094_v34 = vld [vmem:[#allocation2 + $0x60] sm:$0xff]   ;;  %278 = vst.msk [vmem:[#allocation2 + $0x5c] sm:$0xf] %vm193_vm0, %v274_v32 }
  0xb3   : > { %277 = vst.msk [vmem:[#allocation2 + $0x58] sm:$0xf] %vm193_vm0, %v272_v33  ;;  %1038 = vmatprep.subr.bf16.mxu0 %v1094_v34  ;;  %1063 = vmatprep.subr.bf16.mxu1 %v1094_v34  ;;  %v778_v33 = vadd.s32 4294967288, %v773_v31  ;;  %v785_v34 = vadd.s32 4294967280, %v773_v31 }
  0xb5   : > { %v475_v35 = vpop.permute.xlu1 %474 }
  0xb6   : > { %v473_v36 = vpop.permute.xlu0 %472  ;;  %v1095_v37 = vld [vmem:[#allocation2 + $0x20] sm:$0xff]   ;;  %479 = vst.msk [vmem:[#allocation2 + $0x5c] sm:$0xf] %vm338_vm1, %v475_v35  ;;  %v775_v35 = vshrl.u32 %v772_v29, 7 }
  0xb7   : > { %478 = vst.msk [vmem:[#allocation2 + $0x58] sm:$0xf] %vm338_vm1, %v473_v36  ;;  %1039 = vmatpush3.bf16.msra.mxu0 %v1095_v37  ;;  %1071 = vmatpush3.bf16.msra.mxu1 %v1095_v37 }
  0xb8   : > { %v781_v37 = vsub.s32 %v778_v33, %v775_v35 }
  0xb9   : > { %v375_v38 = vpop.permute.xlu1 %374 }
  0xba   : > { %v373_v39 = vpop.permute.xlu0 %372  ;;  %379 = vst.msk [vmem:[#allocation2 + $0x1c] sm:$0xf] %vm338_vm1, %v375_v38  ;;  %v792_v38 = vadd.s32 4294967272, %v773_v31 }
  0xbb   : > { %378 = vst.msk [vmem:[#allocation2 + $0x18] sm:$0xf] %vm338_vm1, %v373_v39  ;;  %v788_v39 = vsub.s32 %v785_v34, %v775_v35 }
  0xbd   : > { %v262_v40 = vpop.permute.xlu1 %261 }
  0xbe   : > { %v260_v41 = vpop.permute.xlu0 %259  ;;  %v1096_v42 = vld [vmem:[#allocation2 + $0x58] sm:$0xff]   ;;  %266 = vst.msk [vmem:[#allocation2 + $0x54] sm:$0xf] %vm193_vm0, %v262_v40  ;;  %v776_v40 = vsub.s32 %v773_v31, %v775_v35 }
  0xbf   : > { %265 = vst.msk [vmem:[#allocation2 + $0x50] sm:$0xf] %vm193_vm0, %v260_v41  ;;  %1040 = vmatprep.subr.bf16.mxu0 %v1096_v42  ;;  %1064 = vmatprep.subr.bf16.mxu1 %v1096_v42 }
  0xc1   : > { %v463_v43 = vpop.permute.xlu1 %462 }
  0xc2   : > { %v461_v44 = vpop.permute.xlu0 %460  ;;  %v1097_v45 = vld [vmem:[#allocation2 + $0x18] sm:$0xff]   ;;  %467 = vst.msk [vmem:[#allocation2 + $0x54] sm:$0xf] %vm338_vm1, %v463_v43 }
  0xc3   : > { %466 = vst.msk [vmem:[#allocation2 + $0x50] sm:$0xf] %vm338_vm1, %v461_v44  ;;  %1041 = vmatpush3.bf16.msra.mxu0 %v1097_v45  ;;  %1072 = vmatpush3.bf16.msra.mxu1 %v1097_v45  ;;  %v795_v44 = vsub.s32 %v792_v38, %v775_v35 }
  0xc5   : > { %v362_v46 = vpop.permute.xlu1 %361 }
  0xc6   : > { %v360_v47 = vpop.permute.xlu0 %359  ;;  %366 = vst.msk [vmem:[#allocation2 + $0x14] sm:$0xf] %vm338_vm1, %v362_v46 }
  0xc7   : > { %365 = vst.msk [vmem:[#allocation2 + $0x10] sm:$0xf] %vm338_vm1, %v360_v47 }
  0xc9   : > { %v250_v48 = vpop.permute.xlu1 %249 }
  0xca   : > { %v248_v49 = vpop.permute.xlu0 %247  ;;  %v1098_v50 = vld [vmem:[#allocation2 + $0x50] sm:$0xff]   ;;  %254 = vst.msk [vmem:[#allocation2 + $0x4c] sm:$0xf] %vm193_vm0, %v250_v48 }
  0xcb   : > { %253 = vst.msk [vmem:[#allocation2 + $0x48] sm:$0xf] %vm193_vm0, %v248_v49  ;;  %1042 = vmatprep.subr.bf16.mxu0 %v1098_v50  ;;  %1065 = vmatprep.subr.bf16.mxu1 %v1098_v50 }
  0xcd   : > { %v451_v51 = vpop.permute.xlu1 %450 }
  0xce   : > { %v449_v52 = vpop.permute.xlu0 %448  ;;  %v1099_v53 = vld [vmem:[#allocation2 + $0x10] sm:$0xff]   ;;  %455 = vst.msk [vmem:[#allocation2 + $0x4c] sm:$0xf] %vm338_vm1, %v451_v51 }
  0xcf   : > { %454 = vst.msk [vmem:[#allocation2 + $0x48] sm:$0xf] %vm338_vm1, %v449_v52  ;;  %1043 = vmatpush3.bf16.msra.mxu0 %v1099_v53  ;;  %1073 = vmatpush3.bf16.msra.mxu1 %v1099_v53 }
  0xd1   : > { %v349_v54 = vpop.permute.xlu1 %348 }
  0xd2   : > { %v347_v55 = vpop.permute.xlu0 %346  ;;  %353 = vst.msk [vmem:[#allocation2 + $0xc] sm:$0xf] %vm338_vm1, %v349_v54 }
  0xd3   : > { %352 = vst.msk [vmem:[#allocation2 + $0x8] sm:$0xf] %vm338_vm1, %v347_v55 }
  0xd5   : > { %v238_v56 = vpop.permute.xlu1 %237 }
  0xd6   : > { %v236_v57 = vpop.permute.xlu0 %235  ;;  %v1100_v58 = vld [vmem:[#allocation2 + $0x48] sm:$0xff]   ;;  %242 = vst.msk [vmem:[#allocation2 + $0x44] sm:$0xf] %vm193_vm0, %v238_v56 }
  0xd7   : > { %241 = vst.msk [vmem:[#allocation2 + $0x40] sm:$0xf] %vm193_vm0, %v236_v57  ;;  %1044 = vmatprep.subr.bf16.mxu0 %v1100_v58  ;;  %1066 = vmatprep.subr.bf16.mxu1 %v1100_v58 }
  0xd9   : > { %v439_v59 = vpop.permute.xlu1 %438 }
  0xda   : > { %v437_v60 = vpop.permute.xlu0 %436  ;;  %v1101_v61 = vld [vmem:[#allocation2 + $0x8] sm:$0xff]   ;;  %443 = vst.msk [vmem:[#allocation2 + $0x44] sm:$0xf] %vm338_vm1, %v439_v59 }
  0xdb   : > { %442 = vst.msk [vmem:[#allocation2 + $0x40] sm:$0xf] %vm338_vm1, %v437_v60  ;;  %1045 = vmatpush3.bf16.msra.mxu0 %v1101_v61  ;;  %1074 = vmatpush3.bf16.msra.mxu1 %v1101_v61 }
  0xdd   : > { %v335_v62 = vpop.permute.xlu1 %334 }
  0xde   : > { %v333_v63 = vpop.permute.xlu0 %332  ;;  %340 = vst.msk [vmem:[#allocation2 + $0x4] sm:$0xf] %vm338_vm1, %v335_v62 }
  0xdf   : > { %339 = vst.msk [vmem:[#allocation2] sm:$0xf] %vm338_vm1, %v333_v63 }
  0xe2   : > { %v1102_v0 = vld [vmem:[#allocation2 + $0x40] sm:$0xff]  }
  0xe3   : > { %1046 = vmatprep.subr.bf16.mxu0 %v1102_v0  ;;  %1067 = vmatprep.subr.bf16.mxu1 %v1102_v0 }
  0xe6   : > { %v1103_v1 = vld [vmem:[#allocation2] sm:$0xff]  }
  0xe7   : > { %1047 = vmatpush3.bf16.msra.mxu0 %v1103_v1  ;;  %1075 = vmatpush3.bf16.msra.mxu1 %v1103_v1 }
  0xea   : > { %713 = vmatmul.mubr.bf16.vlgmr.msra.gmra.mxu0 %v1104_v2  ;;  %721 = vmatmul.mubr.bf16.vlgmr.msra.gmra.mxu1 %v1107_v3 }
 0x1aa   : > { %v1048_v4 = vpop.f32.mrf.mxu0  ;;  %v1054_v5 = vpop.f32.mrf.mxu1 }
 0x1ac   : > { %v1049_v6 = vpop.f32.mrf.mxu0  ;;  %v1055_v7 = vpop.f32.mrf.mxu1 }
 0x1ad   : > { %v1050_v8 = vadd.f32 %v1049_v6, %v1048_v4  ;;  %v1056_v9 = vadd.f32 %v1055_v7, %v1054_v5 }
 0x1ae   : > { %v1051_v10 = vpop.f32.mrf.mxu0  ;;  %v1057_v11 = vpop.f32.mrf.mxu1 }
 0x1af   : > { %738 = vrot.lane.b32.xlu1 %v1050_v8, %s1121_s7  ;;  %v756_v12 = vsel %vm755_vm2, %v1050_v8, 0.0  ;;  %v802_v13 = vmul.f32 %v1050_v8, %v1050_v8  ;;  %730 = vst.msk [vmem:[%s1353_s6] sm:$0xff] %vm729_vm3, %v1050_v8  ;;  %732 = vst.msk [vmem:[%s1353_s6 + $0x10] sm:$0xff] %vm729_vm3, %v1056_v9  ;;  %v804_v17 = vmul.f32 %v1056_v9, %v1056_v9  ;;  %v762_v25 = vsel %vm755_vm2, %v1056_v9, 0.0 }
 0x1b0   : > { %v1052_v14 = vpop.f32.mrf.mxu0  ;;  %757 = vadd.xlane.f32.xlu0 %v756_v12  ;;  %v1058_v15 = vpop.f32.mrf.mxu1 }
 0x1b1   : > { %v1053_v16 = vadd.f32 %v1052_v14, %v1051_v10  ;;  %v1059_v18 = vadd.f32 %v1058_v15, %v1057_v11  ;;  %v806_v19 = vsel %vm755_vm2, %v802_v13, 0.0  ;;  %v812_v20 = vsel %vm755_vm2, %v804_v17, 0.0 }
 0x1b3   : > { %731 = vst.msk [vmem:[%s1353_s6 + $0x8] sm:$0xff] %vm729_vm3, %v1053_v16  ;;  %733 = vst.msk [vmem:[%s1353_s6 + $0x18] sm:$0xff] %vm729_vm3, %v1059_v18  ;;  %v803_v21 = vmul.f32 %v1053_v16, %v1053_v16  ;;  %v805_v22 = vmul.f32 %v1059_v18, %v1059_v18  ;;  %v759_v26 = vsel %vm755_vm2, %v1053_v16, 0.0  ;;  %v765_v27 = vsel %vm755_vm2, %v1059_v18, 0.0 }
 0x1b4   : > { %807 = vadd.xlane.f32.xlu0 %v806_v19 }
 0x1b5   : > { %v809_v23 = vsel %vm755_vm2, %v803_v21, 0.0  ;;  %v815_v24 = vsel %vm755_vm2, %v805_v22, 0.0 }
 0x1b8   : > { %813 = vadd.xlane.f32.xlu0 %v812_v20 }
 0x1bc   : > { %810 = vadd.xlane.f32.xlu0 %v809_v23 }
 0x1c0   : > { %816 = vadd.xlane.f32.xlu0 %v815_v24 }
 0x1d3   : > { %763 = vadd.xlane.f32.xlu1 %v762_v25 }
 0x1d6   : > { %740 = vrot.lane.b32.xlu0 %v1053_v16, %s1121_s7 }
 0x1d7   : > { %760 = vadd.xlane.f32.xlu1 %v759_v26 }
 0x1db   : > { %766 = vadd.xlane.f32.xlu1 %v765_v27 }
 0x1ec   : > { %742 = vrot.lane.b32.xlu1 %v1056_v9, %s1121_s7 }
 0x1f0   : > { %744 = vrot.lane.b32.xlu1 %v1059_v18, %s1121_s7 }
 0x221   : > { %v739_v28 = vpop.permute.xlu1 %738 }
 0x222   : > { %1024 = vst.msk [vmem:[%s1353_s6 + $0x20] sm:$0xff] %vm729_vm3, %v739_v28 }
 0x239   : > { %v758_v30 = vpop.xlane.xlu0 %757 }
 0x23a   : > { %v777_v54 = vrot.slane %v758_v30, %v776_v40 }
 0x23d   : > { %v808_v32 = vpop.xlane.xlu0 %807 }
 0x23e   : > { %v825_v42 = vrot.slane %v808_v32, %v776_v40 }
 0x241   : > { %v814_v36 = vpop.xlane.xlu0 %813 }
 0x242   : > { %v834_v45 = vrot.slane %v814_v36, %v788_v39 }
 0x245   : > { %v811_v41 = vpop.xlane.xlu0 %810 }
 0x246   : > { %v829_v43 = vrot.slane %v811_v41, %v781_v37 }
 0x248   : > { %v830_v46 = vsel %vm783_vm4, %v829_v43, %v825_v42 }
 0x249   : > { %v817_v47 = vpop.xlane.xlu0 %816  ;;  %v835_v49 = vsel %vm790_vm5, %v834_v45, %v830_v46 }
 0x24a   : > { %v839_v48 = vrot.slane %v817_v47, %v795_v44 }
 0x24c   : > { %v840_v50 = vsel %vm797_vm6, %v839_v48, %v835_v49 }
 0x24d   : > { %842 = vst.msk [vmem:[%s189_s11 + $0x1] sm:$0x1] %vm800_vm7, %v840_v50  ;;  %v741_v51 = vpop.permute.xlu0 %740 }
 0x24e   : > { %1025 = vst.msk [vmem:[%s1353_s6 + $0x28] sm:$0xff] %vm729_vm3, %v741_v51 }
 0x25c   : > { %v764_v52 = vpop.xlane.xlu1 %763 }
 0x25d   : > { %v789_v57 = vrot.slane %v764_v52, %v788_v39 }
 0x260   : > { %v761_v53 = vpop.xlane.xlu1 %760 }
 0x261   : > { %v782_v55 = vrot.slane %v761_v53, %v781_v37 }
 0x263   : > { %v784_v56 = vsel %vm783_vm4, %v782_v55, %v777_v54 }
 0x264   : > { %v767_v58 = vpop.xlane.xlu1 %766  ;;  %v791_v60 = vsel %vm790_vm5, %v789_v57, %v784_v56 }
 0x265   : > { %v796_v59 = vrot.slane %v767_v58, %v795_v44 }
 0x267   : > { %v798_v61 = vsel %vm797_vm6, %v796_v59, %v791_v60 }
 0x268   : > { %801 = vst.msk [vmem:[%s189_s11] sm:$0x1] %vm800_vm7, %v798_v61  ;;  %v743_v62 = vpop.permute.xlu1 %742 }
 0x269   : > { %1026 = vst.msk [vmem:[%s1353_s6 + $0x30] sm:$0xff] %vm729_vm3, %v743_v62 }
 0x26c   : > { %v745_v63 = vpop.permute.xlu1 %744 }
 0x26d   : > { %1027 = vst.msk [vmem:[%s1353_s6 + $0x38] sm:$0xff] %vm729_vm3, %v745_v63 }
 0x26e PF: > { %s14_s12 = sadd.s32 1, %s1116_s12  }
 0x26f   : > { %p11_p5 = scmp.ge.s32.totalorder %s14_s12, 4  }
 0x271   :  { %13 = sbr.rel (!%p11_p5) target bundleno = 1 (0x1), region = 86 }

</bundles_post_ra>
